<compile_context>
chip_gen: v7x
topology: tpu7x:2x2x1
jax: 0.10.0
libtpu: 0.0.40
codegen_flags: <defaults>
</compile_context>

<pallas_src>
import jax
import jax.numpy as jnp
from jax import lax
from jax.experimental import pallas as pl
from jax.experimental.pallas import tpu as pltpu


# ---------------------------------------------------------------------------
# Fused kernel: one batch element per grid step.
#   inputs : x_nhwc (1,H,W,C) for the convs, x_flat (1,C,HW) for the residual,
#            per-tap conv weights (9,Cin,Cout) / (9,Cout,Cin) bf16, biases f32.
#   outputs: out (1,C,HW) lane-dense flattened NCHW, pooled (1,1,C).
#   scratch: two zero-bordered (H+2,W+2,C) f32 pads (conv1 input / conv2 input).
# ---------------------------------------------------------------------------
def _global_block_kernel(x_ref, xres_ref, w1_ref, b1_ref, w2_ref, b2_ref,
                         out_ref, pooled_ref, xpad1_ref, xpad2_ref):
    KH, KW = 3, 3
    _, H, W, C = x_ref.shape
    Hp, Wp = H + 2, W + 2
    HW = H * W
    RH = 8                      # output rows (h) per chunk -> 128-lane row blocks
    NC = H // RH

    # Zero only the 1-pixel border strips of both pads (interior is always
    # fully rewritten; border is never written afterwards -> ZeroPad2d(1)).
    for pad in (xpad1_ref, xpad2_ref):
        pad[0:1, :, :] = jnp.zeros((1, Wp, C), pad.dtype)
        pad[Hp - 1:Hp, :, :] = jnp.zeros((1, Wp, C), pad.dtype)
        pad[1:1 + H, 0:1, :] = jnp.zeros((H, 1, C), pad.dtype)
        pad[1:1 + H, Wp - 1:Wp, :] = jnp.zeros((H, 1, C), pad.dtype)

    # conv1 input: x into the interior of xpad1.
    xpad1_ref[1:1 + H, 1:1 + W, :] = x_ref[0].astype(xpad1_ref.dtype)

    def window(pad_ref, kh, kw, h0):
        # shifted (RH*W, C) bf16 window for tap (kh, kw), output rows h0..h0+RH
        win = pad_ref[kh + h0:kh + h0 + RH, kw:kw + W, :]
        return win.reshape(RH * W, C).astype(jnp.bfloat16)

    # ---- conv1 + LeakyReLU(0.2): (HW, C) rows, processed in 128-row chunks.
    pooled_sum = jnp.zeros((1, C), jnp.float32)
    for c in range(NC):
        h0 = c * RH
        acc = jnp.zeros((RH * W, C), jnp.float32)
        for kh in range(KH):
            for kw in range(KW):
                t = kh * KW + kw
                acc = acc + jnp.dot(window(xpad1_ref, kh, kw, h0),
                                    w1_ref[t],
                                    preferred_element_type=jnp.float32)
        acc = acc + b1_ref[...]                               # (1,C) broadcast
        h1c = jnp.where(acc >= 0.0, acc, 0.2 * acc)           # (128, C) f32
        pooled_sum = pooled_sum + jnp.sum(h1c, axis=0, keepdims=True)
        # conv2 input: h1 into the interior of xpad2 (h1 never touches HBM).
        xpad2_ref[1 + h0:1 + h0 + RH, 1:1 + W, :] = (
            h1c.reshape(RH, W, C).astype(xpad2_ref.dtype))

    # AdaptiveAvgPool2d(1); the fc gate (dead code for `out`) runs in wrapper.
    pooled_ref[0] = (pooled_sum * (1.0 / HW)).astype(pooled_ref.dtype)

    # ---- conv2 + LeakyReLU(0.2) in (Cout, HW) orientation + residual.
    # Each chunk stores a full lane-dense (C, 128) tile of the flat-NCHW out.
    for c in range(NC):
        h0 = c * RH
        acc = jnp.zeros((C, RH * W), jnp.float32)
        for kh in range(KH):
            for kw in range(KW):
                t = kh * KW + kw
                # (Cout,Cin) x (RH*W,Cin)^T -> (Cout, RH*W)
                acc = acc + lax.dot_general(
                    w2_ref[t], window(xpad2_ref, kh, kw, h0),
                    dimension_numbers=(((1,), (1,)), ((), ())),
                    preferred_element_type=jnp.float32)
        acc = acc + b2_ref[...]                               # (C,1) lane-broadcast
        h2c = jnp.where(acc >= 0.0, acc, 0.2 * acc)
        sl = slice(h0 * W, (h0 + RH) * W)
        out_ref[0, :, sl] = (0.1 * h2c + xres_ref[0, :, sl]).astype(out_ref.dtype)


# ---------------------------------------------------------------------------
# Full GlobalBlock forward (NCHW in / NCHW out, like the PyTorch module).
# ---------------------------------------------------------------------------
@jax.jit
def global_block_forward(x_nchw, w1, b1, w2, b2, wfc1, wfc2, wfc3):
    B, C, H, W = x_nchw.shape
    KH, KW = w1.shape[0], w1.shape[1]
    HW = H * W

    # Layout plumbing at the jit boundary (free reshapes + one tiny transpose).
    x_nhwc = jnp.transpose(x_nchw, (0, 2, 3, 1))              # conv input view
    x_flat = x_nchw.reshape(B, C, HW)                         # lane-dense residual view
    w1r = w1.reshape(KH * KW, C, C).astype(jnp.bfloat16)      # (tap, Cin, Cout)
    w2r = jnp.transpose(w2.reshape(KH * KW, C, C),
                        (0, 2, 1)).astype(jnp.bfloat16)       # (tap, Cout, Cin)
    b1r = b1.reshape(1, C)
    b2r = b2.reshape(C, 1)

    rep3 = lambda i: (0, 0, 0)
    rep2 = lambda i: (0, 0)
    out_flat, pooled = pl.pallas_call(
        _global_block_kernel,
        out_shape=(jax.ShapeDtypeStruct((B, C, HW), x_nchw.dtype),
                   jax.ShapeDtypeStruct((B, 1, C), jnp.float32)),
        grid=(B,),
        in_specs=[
            pl.BlockSpec((1, H, W, C), lambda i: (i, 0, 0, 0)),   # x (NHWC view)
            pl.BlockSpec((1, C, HW), lambda i: (i, 0, 0)),        # x (flat NCHW view)
            pl.BlockSpec(w1r.shape, rep3),
            pl.BlockSpec(b1r.shape, rep2),
            pl.BlockSpec(w2r.shape, rep3),
            pl.BlockSpec(b2r.shape, rep2),
        ],
        out_specs=(pl.BlockSpec((1, C, HW), lambda i: (i, 0, 0)),
                   pl.BlockSpec((1, 1, C), lambda i: (i, 0, 0))),
        scratch_shapes=[
            pltpu.VMEM((H + 2, W + 2, C), jnp.float32),   # padded conv1 input (x)
            pltpu.VMEM((H + 2, W + 2, C), jnp.float32),   # padded conv2 input (h1)
        ],
        compiler_params=pltpu.CompilerParams(
            dimension_semantics=("parallel",)),
    )(x_nhwc, x_flat, w1r, b1r, w2r, b2r)

    out = out_flat.reshape(B, C, H, W)

    # SE / fc gate (dead code for `out` in the reference forward; aux output).
    pooled = pooled.reshape(B, C)
    z = jnp.maximum(pooled @ wfc1, 0.0)
    z = jnp.maximum(z @ wfc2, 0.0)
    se = jax.nn.sigmoid(z @ wfc3)
    return out, se


# ---------------------------------------------------------------------------
# Pure-JAX reference (matches the PyTorch semantics) for a sanity check.
# ---------------------------------------------------------------------------
def reference_forward(x_nchw, w1, b1, w2, b2, wfc1, wfc2, wfc3):
    x = jnp.transpose(x_nchw, (0, 2, 3, 1))

    def conv(inp, w, b):
        y = lax.conv_general_dilated(
            inp, w, (1, 1), ((1, 1), (1, 1)),
            dimension_numbers=("NHWC", "HWIO", "NHWC"),
            precision=lax.Precision.HIGHEST)
        y = y + b.reshape(1, 1, 1, -1)
        return jnp.where(y >= 0.0, y, 0.2 * y)

    h1 = conv(x, w1, b1)
    pooled = jnp.mean(h1, axis=(1, 2))                        # (B, C)
    z = jnp.maximum(pooled @ wfc1, 0.0)
    z = jnp.maximum(z @ wfc2, 0.0)
    se = jax.nn.sigmoid(z @ wfc3)
    out = 0.1 * conv(h1, w2, b2) + x
    return jnp.transpose(out, (0, 3, 1, 2)), se


if __name__ == "__main__":
    B, C, H, W = 2, 32, 16, 16
    K, RED = 3, 8
    Cr = C // RED

    key = jax.random.PRNGKey(0)
    ks = jax.random.split(key, 8)
    x = jax.random.normal(ks[0], (B, C, H, W), jnp.float32)

    # Deterministic synthetic parameters (shapes per GlobalBlock.__init__).
    w1 = jax.random.normal(ks[1], (K, K, C, C), jnp.float32) * 0.05   # conv1 weight (HWIO)
    b1 = jax.random.normal(ks[2], (1, C), jnp.float32) * 0.05         # conv1 bias
    w2 = jax.random.normal(ks[3], (K, K, C, C), jnp.float32) * 0.05   # conv2 weight (HWIO)
    b2 = jax.random.normal(ks[4], (1, C), jnp.float32) * 0.05         # conv2 bias
    wfc1 = jax.random.normal(ks[5], (C, Cr), jnp.float32) * 0.1       # fc1 (in, out), bias=False
    wfc2 = jax.random.normal(ks[6], (Cr, Cr), jnp.float32) * 0.1      # fc2 (in, out), bias=False
    wfc3 = jax.random.normal(ks[7], (Cr, C), jnp.float32) * 0.1       # fc3 (in, out), bias=False

    out, se = global_block_forward(x, w1, b1, w2, b2, wfc1, wfc2, wfc3)
    jax.block_until_ready((out, se))

    ref_out, ref_se = reference_forward(x, w1, b1, w2, b2, wfc1, wfc2, wfc3)
    assert out.shape == (B, C, H, W) and se.shape == (B, C)
    assert jnp.allclose(out, ref_out, atol=2e-2, rtol=2e-2), "out mismatch vs reference"
    assert jnp.allclose(se, ref_se, atol=2e-2, rtol=2e-2), "se mismatch vs reference"

    print("KERNEL_OK")
</pallas_src>

<mosaic_0001>
module attributes {stable_mosaic.version = 11 : i64} {
  func.func @_global_block_kernel(%arg0: i32, %arg1: memref<1x16x16x32xf32, #tpu.memory_space<vmem>>, %arg2: memref<1x32x256xf32, #tpu.memory_space<vmem>>, %arg3: memref<9x32x32xbf16, #tpu.memory_space<vmem>>, %arg4: memref<1x32xf32, #tpu.memory_space<vmem>>, %arg5: memref<9x32x32xbf16, #tpu.memory_space<vmem>>, %arg6: memref<32x1xf32, #tpu.memory_space<vmem>>, %arg7: memref<1x32x256xf32, #tpu.memory_space<vmem>>, %arg8: memref<1x1x32xf32, #tpu.memory_space<vmem>>, %arg9: memref<18x18x32xf32, #tpu.memory_space<vmem>>, %arg10: memref<18x18x32xf32, #tpu.memory_space<vmem>>) attributes {dimension_semantics = [#tpu.dimension_semantics<parallel>], iteration_bounds = array<i64: 2>, scalar_prefetch = 0 : i64, scratch_operands = 2 : i64, tpu.core_type = #tpu.core_type<tc>, window_params = [{transform_indices = @transform_0, window_bounds = array<i64: 1, 16, 16, 32>}, {transform_indices = @transform_1, window_bounds = array<i64: 1, 32, 256>}, {pipeline_mode = #tpu.pipeline_mode<synchronous>, transform_indices = @transform_2, window_bounds = array<i64: 9, 32, 32>}, {pipeline_mode = #tpu.pipeline_mode<synchronous>, transform_indices = @transform_3, window_bounds = array<i64: 1, 32>}, {pipeline_mode = #tpu.pipeline_mode<synchronous>, transform_indices = @transform_4, window_bounds = array<i64: 9, 32, 32>}, {pipeline_mode = #tpu.pipeline_mode<synchronous>, transform_indices = @transform_5, window_bounds = array<i64: 32, 1>}, {transform_indices = @transform_6, window_bounds = array<i64: 1, 32, 256>}, {transform_indices = @transform_7, window_bounds = array<i64: 1, 1, 32>}]} {
    %cst = arith.constant 0.000000e+00 : f32
    %0 = vector.broadcast %cst : f32 to vector<1x18x32xf32>
    %c0 = arith.constant 0 : index
    %c0_0 = arith.constant 0 : index
    %c0_1 = arith.constant 0 : index
    %1 = vector.load %arg9[%c0, %c0_0, %c0_1] : memref<18x18x32xf32, #tpu.memory_space<vmem>>, vector<1x18x32xf32>
    tpu.vector_store %arg9[%c0, %c0_0, %c0_1], %0 {strides = array<i32>} : memref<18x18x32xf32, #tpu.memory_space<vmem>>, vector<1x18x32xf32>,
    %cst_2 = arith.constant 0.000000e+00 : f32
    %2 = vector.broadcast %cst_2 : f32 to vector<1x18x32xf32>
    %c17 = arith.constant 17 : index
    %c0_3 = arith.constant 0 : index
    %c0_4 = arith.constant 0 : index
    %3 = vector.load %arg9[%c17, %c0_3, %c0_4] : memref<18x18x32xf32, #tpu.memory_space<vmem>>, vector<1x18x32xf32>
    tpu.vector_store %arg9[%c17, %c0_3, %c0_4], %2 {strides = array<i32>} : memref<18x18x32xf32, #tpu.memory_space<vmem>>, vector<1x18x32xf32>,
    %cst_5 = arith.constant 0.000000e+00 : f32
    %4 = vector.broadcast %cst_5 : f32 to vector<16x1x32xf32>
    %c1 = arith.constant 1 : index
    %c0_6 = arith.constant 0 : index
    %c0_7 = arith.constant 0 : index
    %5 = vector.load %arg9[%c1, %c0_6, %c0_7] : memref<18x18x32xf32, #tpu.memory_space<vmem>>, vector<16x1x32xf32>
    tpu.vector_store %arg9[%c1, %c0_6, %c0_7], %4 {strides = array<i32>} : memref<18x18x32xf32, #tpu.memory_space<vmem>>, vector<16x1x32xf32>,
    %cst_8 = arith.constant 0.000000e+00 : f32
    %6 = vector.broadcast %cst_8 : f32 to vector<16x1x32xf32>
    %c1_9 = arith.constant 1 : index
    %c17_10 = arith.constant 17 : index
    %c0_11 = arith.constant 0 : index
    %7 = vector.load %arg9[%c1_9, %c17_10, %c0_11] : memref<18x18x32xf32, #tpu.memory_space<vmem>>, vector<16x1x32xf32>
    tpu.vector_store %arg9[%c1_9, %c17_10, %c0_11], %6 {strides = array<i32>} : memref<18x18x32xf32, #tpu.memory_space<vmem>>, vector<16x1x32xf32>,
    %cst_12 = arith.constant 0.000000e+00 : f32
    %8 = vector.broadcast %cst_12 : f32 to vector<1x18x32xf32>
    %c0_13 = arith.constant 0 : index
    %c0_14 = arith.constant 0 : index
    %c0_15 = arith.constant 0 : index
    %9 = vector.load %arg10[%c0_13, %c0_14, %c0_15] : memref<18x18x32xf32, #tpu.memory_space<vmem>>, vector<1x18x32xf32>
    tpu.vector_store %arg10[%c0_13, %c0_14, %c0_15], %8 {strides = array<i32>} : memref<18x18x32xf32, #tpu.memory_space<vmem>>, vector<1x18x32xf32>,
    %cst_16 = arith.constant 0.000000e+00 : f32
    %10 = vector.broadcast %cst_16 : f32 to vector<1x18x32xf32>
    %c17_17 = arith.constant 17 : index
    %c0_18 = arith.constant 0 : index
    %c0_19 = arith.constant 0 : index
    %11 = vector.load %arg10[%c17_17, %c0_18, %c0_19] : memref<18x18x32xf32, #tpu.memory_space<vmem>>, vector<1x18x32xf32>
    tpu.vector_store %arg10[%c17_17, %c0_18, %c0_19], %10 {strides = array<i32>} : memref<18x18x32xf32, #tpu.memory_space<vmem>>, vector<1x18x32xf32>,
    %cst_20 = arith.constant 0.000000e+00 : f32
    %12 = vector.broadcast %cst_20 : f32 to vector<16x1x32xf32>
    %c1_21 = arith.constant 1 : index
    %c0_22 = arith.constant 0 : index
    %c0_23 = arith.constant 0 : index
    %13 = vector.load %arg10[%c1_21, %c0_22, %c0_23] : memref<18x18x32xf32, #tpu.memory_space<vmem>>, vector<16x1x32xf32>
    tpu.vector_store %arg10[%c1_21, %c0_22, %c0_23], %12 {strides = array<i32>} : memref<18x18x32xf32, #tpu.memory_space<vmem>>, vector<16x1x32xf32>,
    %cst_24 = arith.constant 0.000000e+00 : f32
    %14 = vector.broadcast %cst_24 : f32 to vector<16x1x32xf32>
    %c1_25 = arith.constant 1 : index
    %c17_26 = arith.constant 17 : index
    %c0_27 = arith.constant 0 : index
    %15 = vector.load %arg10[%c1_25, %c17_26, %c0_27] : memref<18x18x32xf32, #tpu.memory_space<vmem>>, vector<16x1x32xf32>
    tpu.vector_store %arg10[%c1_25, %c17_26, %c0_27], %14 {strides = array<i32>} : memref<18x18x32xf32, #tpu.memory_space<vmem>>, vector<16x1x32xf32>,
    %c0_28 = arith.constant 0 : index
    %c0_29 = arith.constant 0 : index
    %c0_30 = arith.constant 0 : index
    %c0_31 = arith.constant 0 : index
    %16 = vector.load %arg1[%c0_28, %c0_29, %c0_30, %c0_31] : memref<1x16x16x32xf32, #tpu.memory_space<vmem>>, vector<1x16x16x32xf32>
    %17 = vector.shape_cast %16 : vector<1x16x16x32xf32> to vector<16x16x32xf32>
    %c1_32 = arith.constant 1 : index
    %c1_33 = arith.constant 1 : index
    %c0_34 = arith.constant 0 : index
    %18 = vector.load %arg9[%c1_32, %c1_33, %c0_34] : memref<18x18x32xf32, #tpu.memory_space<vmem>>, vector<16x16x32xf32>
    tpu.vector_store %arg9[%c1_32, %c1_33, %c0_34], %17 {strides = array<i32>} : memref<18x18x32xf32, #tpu.memory_space<vmem>>, vector<16x16x32xf32>,
    %cst_35 = arith.constant 0.000000e+00 : f32
    %19 = vector.broadcast %cst_35 : f32 to vector<1x32xf32>
    %cst_36 = arith.constant 0.000000e+00 : f32
    %20 = vector.broadcast %cst_36 : f32 to vector<128x32xf32>
    %c0_37 = arith.constant 0 : index
    %c0_38 = arith.constant 0 : index
    %c0_39 = arith.constant 0 : index
    %21 = vector.load %arg9[%c0_37, %c0_38, %c0_39] : memref<18x18x32xf32, #tpu.memory_space<vmem>>, vector<8x16x32xf32>
    %22 = vector.shape_cast %21 : vector<8x16x32xf32> to vector<128x32xf32>
    %23 = arith.truncf %22 : vector<128x32xf32> to vector<128x32xbf16>
    %c0_40 = arith.constant 0 : index
    %c0_41 = arith.constant 0 : index
    %c0_42 = arith.constant 0 : index
    %24 = vector.load %arg3[%c0_40, %c0_41, %c0_42] : memref<9x32x32xbf16, #tpu.memory_space<vmem>>, vector<1x32x32xbf16>
    %25 = vector.shape_cast %24 : vector<1x32x32xbf16> to vector<32x32xbf16>
    %cst_43 = arith.constant dense<0.000000e+00> : vector<128x32xf32>
    %26 = tpu.matmul %23, %25, %cst_43 {dimension_numbers = #tpu.dot_dimension_numbers<[1], [0], [0], [1], [0, 0, 1, 1], [], []>} : vector<128x32xbf16>, vector<32x32xbf16>, vector<128x32xf32> -> vector<128x32xf32>
    %27 = arith.addf %20, %26 : vector<128x32xf32>
    %c0_44 = arith.constant 0 : index
    %c1_45 = arith.constant 1 : index
    %c0_46 = arith.constant 0 : index
    %28 = vector.load %arg9[%c0_44, %c1_45, %c0_46] : memref<18x18x32xf32, #tpu.memory_space<vmem>>, vector<8x16x32xf32>
    %29 = vector.shape_cast %28 : vector<8x16x32xf32> to vector<128x32xf32>
    %30 = arith.truncf %29 : vector<128x32xf32> to vector<128x32xbf16>
    %c1_47 = arith.constant 1 : index
    %c0_48 = arith.constant 0 : index
    %c0_49 = arith.constant 0 : index
    %31 = vector.load %arg3[%c1_47, %c0_48, %c0_49] : memref<9x32x32xbf16, #tpu.memory_space<vmem>>, vector<1x32x32xbf16>
    %32 = vector.shape_cast %31 : vector<1x32x32xbf16> to vector<32x32xbf16>
    %cst_50 = arith.constant dense<0.000000e+00> : vector<128x32xf32>
    %33 = tpu.matmul %30, %32, %cst_50 {dimension_numbers = #tpu.dot_dimension_numbers<[1], [0], [0], [1], [0, 0, 1, 1], [], []>} : vector<128x32xbf16>, vector<32x32xbf16>, vector<128x32xf32> -> vector<128x32xf32>
    %34 = arith.addf %27, %33 : vector<128x32xf32>
    %c0_51 = arith.constant 0 : index
    %c2 = arith.constant 2 : index
    %c0_52 = arith.constant 0 : index
    %35 = vector.load %arg9[%c0_51, %c2, %c0_52] : memref<18x18x32xf32, #tpu.memory_space<vmem>>, vector<8x16x32xf32>
    %36 = vector.shape_cast %35 : vector<8x16x32xf32> to vector<128x32xf32>
    %37 = arith.truncf %36 : vector<128x32xf32> to vector<128x32xbf16>
    %c2_53 = arith.constant 2 : index
    %c0_54 = arith.constant 0 : index
    %c0_55 = arith.constant 0 : index
    %38 = vector.load %arg3[%c2_53, %c0_54, %c0_55] : memref<9x32x32xbf16, #tpu.memory_space<vmem>>, vector<1x32x32xbf16>
    %39 = vector.shape_cast %38 : vector<1x32x32xbf16> to vector<32x32xbf16>
    %cst_56 = arith.constant dense<0.000000e+00> : vector<128x32xf32>
    %40 = tpu.matmul %37, %39, %cst_56 {dimension_numbers = #tpu.dot_dimension_numbers<[1], [0], [0], [1], [0, 0, 1, 1], [], []>} : vector<128x32xbf16>, vector<32x32xbf16>, vector<128x32xf32> -> vector<128x32xf32>
    %41 = arith.addf %34, %40 : vector<128x32xf32>
    %c1_57 = arith.constant 1 : index
    %c0_58 = arith.constant 0 : index
    %c0_59 = arith.constant 0 : index
    %42 = vector.load %arg9[%c1_57, %c0_58, %c0_59] : memref<18x18x32xf32, #tpu.memory_space<vmem>>, vector<8x16x32xf32>
    %43 = vector.shape_cast %42 : vector<8x16x32xf32> to vector<128x32xf32>
    %44 = arith.truncf %43 : vector<128x32xf32> to vector<128x32xbf16>
    %c3 = arith.constant 3 : index
    %c0_60 = arith.constant 0 : index
    %c0_61 = arith.constant 0 : index
    %45 = vector.load %arg3[%c3, %c0_60, %c0_61] : memref<9x32x32xbf16, #tpu.memory_space<vmem>>, vector<1x32x32xbf16>
    %46 = vector.shape_cast %45 : vector<1x32x32xbf16> to vector<32x32xbf16>
    %cst_62 = arith.constant dense<0.000000e+00> : vector<128x32xf32>
    %47 = tpu.matmul %44, %46, %cst_62 {dimension_numbers = #tpu.dot_dimension_numbers<[1], [0], [0], [1], [0, 0, 1, 1], [], []>} : vector<128x32xbf16>, vector<32x32xbf16>, vector<128x32xf32> -> vector<128x32xf32>
    %48 = arith.addf %41, %47 : vector<128x32xf32>
    %c1_63 = arith.constant 1 : index
    %c1_64 = arith.constant 1 : index
    %c0_65 = arith.constant 0 : index
    %49 = vector.load %arg9[%c1_63, %c1_64, %c0_65] : memref<18x18x32xf32, #tpu.memory_space<vmem>>, vector<8x16x32xf32>
    %50 = vector.shape_cast %49 : vector<8x16x32xf32> to vector<128x32xf32>
    %51 = arith.truncf %50 : vector<128x32xf32> to vector<128x32xbf16>
    %c4 = arith.constant 4 : index
    %c0_66 = arith.constant 0 : index
    %c0_67 = arith.constant 0 : index
    %52 = vector.load %arg3[%c4, %c0_66, %c0_67] : memref<9x32x32xbf16, #tpu.memory_space<vmem>>, vector<1x32x32xbf16>
    %53 = vector.shape_cast %52 : vector<1x32x32xbf16> to vector<32x32xbf16>
    %cst_68 = arith.constant dense<0.000000e+00> : vector<128x32xf32>
    %54 = tpu.matmul %51, %53, %cst_68 {dimension_numbers = #tpu.dot_dimension_numbers<[1], [0], [0], [1], [0, 0, 1, 1], [], []>} : vector<128x32xbf16>, vector<32x32xbf16>, vector<128x32xf32> -> vector<128x32xf32>
    %55 = arith.addf %48, %54 : vector<128x32xf32>
    %c1_69 = arith.constant 1 : index
    %c2_70 = arith.constant 2 : index
    %c0_71 = arith.constant 0 : index
    %56 = vector.load %arg9[%c1_69, %c2_70, %c0_71] : memref<18x18x32xf32, #tpu.memory_space<vmem>>, vector<8x16x32xf32>
    %57 = vector.shape_cast %56 : vector<8x16x32xf32> to vector<128x32xf32>
    %58 = arith.truncf %57 : vector<128x32xf32> to vector<128x32xbf16>
    %c5 = arith.constant 5 : index
    %c0_72 = arith.constant 0 : index
    %c0_73 = arith.constant 0 : index
    %59 = vector.load %arg3[%c5, %c0_72, %c0_73] : memref<9x32x32xbf16, #tpu.memory_space<vmem>>, vector<1x32x32xbf16>
    %60 = vector.shape_cast %59 : vector<1x32x32xbf16> to vector<32x32xbf16>
    %cst_74 = arith.constant dense<0.000000e+00> : vector<128x32xf32>
    %61 = tpu.matmul %58, %60, %cst_74 {dimension_numbers = #tpu.dot_dimension_numbers<[1], [0], [0], [1], [0, 0, 1, 1], [], []>} : vector<128x32xbf16>, vector<32x32xbf16>, vector<128x32xf32> -> vector<128x32xf32>
    %62 = arith.addf %55, %61 : vector<128x32xf32>
    %c2_75 = arith.constant 2 : index
    %c0_76 = arith.constant 0 : index
    %c0_77 = arith.constant 0 : index
    %63 = vector.load %arg9[%c2_75, %c0_76, %c0_77] : memref<18x18x32xf32, #tpu.memory_space<vmem>>, vector<8x16x32xf32>
    %64 = vector.shape_cast %63 : vector<8x16x32xf32> to vector<128x32xf32>
    %65 = arith.truncf %64 : vector<128x32xf32> to vector<128x32xbf16>
    %c6 = arith.constant 6 : index
    %c0_78 = arith.constant 0 : index
    %c0_79 = arith.constant 0 : index
    %66 = vector.load %arg3[%c6, %c0_78, %c0_79] : memref<9x32x32xbf16, #tpu.memory_space<vmem>>, vector<1x32x32xbf16>
    %67 = vector.shape_cast %66 : vector<1x32x32xbf16> to vector<32x32xbf16>
    %cst_80 = arith.constant dense<0.000000e+00> : vector<128x32xf32>
    %68 = tpu.matmul %65, %67, %cst_80 {dimension_numbers = #tpu.dot_dimension_numbers<[1], [0], [0], [1], [0, 0, 1, 1], [], []>} : vector<128x32xbf16>, vector<32x32xbf16>, vector<128x32xf32> -> vector<128x32xf32>
    %69 = arith.addf %62, %68 : vector<128x32xf32>
    %c2_81 = arith.constant 2 : index
    %c1_82 = arith.constant 1 : index
    %c0_83 = arith.constant 0 : index
    %70 = vector.load %arg9[%c2_81, %c1_82, %c0_83] : memref<18x18x32xf32, #tpu.memory_space<vmem>>, vector<8x16x32xf32>
    %71 = vector.shape_cast %70 : vector<8x16x32xf32> to vector<128x32xf32>
    %72 = arith.truncf %71 : vector<128x32xf32> to vector<128x32xbf16>
    %c7 = arith.constant 7 : index
    %c0_84 = arith.constant 0 : index
    %c0_85 = arith.constant 0 : index
    %73 = vector.load %arg3[%c7, %c0_84, %c0_85] : memref<9x32x32xbf16, #tpu.memory_space<vmem>>, vector<1x32x32xbf16>
    %74 = vector.shape_cast %73 : vector<1x32x32xbf16> to vector<32x32xbf16>
    %cst_86 = arith.constant dense<0.000000e+00> : vector<128x32xf32>
    %75 = tpu.matmul %72, %74, %cst_86 {dimension_numbers = #tpu.dot_dimension_numbers<[1], [0], [0], [1], [0, 0, 1, 1], [], []>} : vector<128x32xbf16>, vector<32x32xbf16>, vector<128x32xf32> -> vector<128x32xf32>
    %76 = arith.addf %69, %75 : vector<128x32xf32>
    %c2_87 = arith.constant 2 : index
    %c2_88 = arith.constant 2 : index
    %c0_89 = arith.constant 0 : index
    %77 = vector.load %arg9[%c2_87, %c2_88, %c0_89] : memref<18x18x32xf32, #tpu.memory_space<vmem>>, vector<8x16x32xf32>
    %78 = vector.shape_cast %77 : vector<8x16x32xf32> to vector<128x32xf32>
    %79 = arith.truncf %78 : vector<128x32xf32> to vector<128x32xbf16>
    %c8 = arith.constant 8 : index
    %c0_90 = arith.constant 0 : index
    %c0_91 = arith.constant 0 : index
    %80 = vector.load %arg3[%c8, %c0_90, %c0_91] : memref<9x32x32xbf16, #tpu.memory_space<vmem>>, vector<1x32x32xbf16>
    %81 = vector.shape_cast %80 : vector<1x32x32xbf16> to vector<32x32xbf16>
    %cst_92 = arith.constant dense<0.000000e+00> : vector<128x32xf32>
    %82 = tpu.matmul %79, %81, %cst_92 {dimension_numbers = #tpu.dot_dimension_numbers<[1], [0], [0], [1], [0, 0, 1, 1], [], []>} : vector<128x32xbf16>, vector<32x32xbf16>, vector<128x32xf32> -> vector<128x32xf32>
    %83 = arith.addf %76, %82 : vector<128x32xf32>
    %c0_93 = arith.constant 0 : index
    %c0_94 = arith.constant 0 : index
    %84 = vector.load %arg4[%c0_93, %c0_94] : memref<1x32xf32, #tpu.memory_space<vmem>>, vector<1x32xf32>
    %85 = vector.broadcast %84 : vector<1x32xf32> to vector<128x32xf32>
    %86 = arith.addf %83, %85 : vector<128x32xf32>
    %cst_95 = arith.constant 0.000000e+00 : f32
    %87 = vector.broadcast %cst_95 : f32 to vector<128x32xf32>
    %88 = arith.cmpf oge, %86, %87 : vector<128x32xf32>
    %cst_96 = arith.constant 2.000000e-01 : f32
    %89 = vector.broadcast %cst_96 : f32 to vector<128x32xf32>
    %90 = arith.mulf %89, %86 : vector<128x32xf32>
    %91 = arith.select %88, %86, %90 : vector<128x32xi1>, vector<128x32xf32>
    %cst_97 = arith.constant dense<0.000000e+00> : vector<32xf32>
    %92 = vector.multi_reduction <add>, %91, %cst_97 [0] : vector<128x32xf32> to vector<32xf32>
    %93 = vector.shape_cast %92 : vector<32xf32> to vector<1x32xf32>
    %94 = arith.addf %19, %93 : vector<1x32xf32>
    %95 = vector.shape_cast %91 : vector<128x32xf32> to vector<8x16x32xf32>
    %c1_98 = arith.constant 1 : index
    %c1_99 = arith.constant 1 : index
    %c0_100 = arith.constant 0 : index
    %96 = vector.load %arg10[%c1_98, %c1_99, %c0_100] : memref<18x18x32xf32, #tpu.memory_space<vmem>>, vector<8x16x32xf32>
    tpu.vector_store %arg10[%c1_98, %c1_99, %c0_100], %95 {strides = array<i32>} : memref<18x18x32xf32, #tpu.memory_space<vmem>>, vector<8x16x32xf32>,
    %cst_101 = arith.constant 0.000000e+00 : f32
    %97 = vector.broadcast %cst_101 : f32 to vector<128x32xf32>
    %c8_102 = arith.constant 8 : index
    %c0_103 = arith.constant 0 : index
    %c0_104 = arith.constant 0 : index
    %98 = vector.load %arg9[%c8_102, %c0_103, %c0_104] : memref<18x18x32xf32, #tpu.memory_space<vmem>>, vector<8x16x32xf32>
    %99 = vector.shape_cast %98 : vector<8x16x32xf32> to vector<128x32xf32>
    %100 = arith.truncf %99 : vector<128x32xf32> to vector<128x32xbf16>
    %c0_105 = arith.constant 0 : index
    %c0_106 = arith.constant 0 : index
    %c0_107 = arith.constant 0 : index
    %101 = vector.load %arg3[%c0_105, %c0_106, %c0_107] : memref<9x32x32xbf16, #tpu.memory_space<vmem>>, vector<1x32x32xbf16>
    %102 = vector.shape_cast %101 : vector<1x32x32xbf16> to vector<32x32xbf16>
    %cst_108 = arith.constant dense<0.000000e+00> : vector<128x32xf32>
    %103 = tpu.matmul %100, %102, %cst_108 {dimension_numbers = #tpu.dot_dimension_numbers<[1], [0], [0], [1], [0, 0, 1, 1], [], []>} : vector<128x32xbf16>, vector<32x32xbf16>, vector<128x32xf32> -> vector<128x32xf32>
    %104 = arith.addf %97, %103 : vector<128x32xf32>
    %c8_109 = arith.constant 8 : index
    %c1_110 = arith.constant 1 : index
    %c0_111 = arith.constant 0 : index
    %105 = vector.load %arg9[%c8_109, %c1_110, %c0_111] : memref<18x18x32xf32, #tpu.memory_space<vmem>>, vector<8x16x32xf32>
    %106 = vector.shape_cast %105 : vector<8x16x32xf32> to vector<128x32xf32>
    %107 = arith.truncf %106 : vector<128x32xf32> to vector<128x32xbf16>
    %c1_112 = arith.constant 1 : index
    %c0_113 = arith.constant 0 : index
    %c0_114 = arith.constant 0 : index
    %108 = vector.load %arg3[%c1_112, %c0_113, %c0_114] : memref<9x32x32xbf16, #tpu.memory_space<vmem>>, vector<1x32x32xbf16>
    %109 = vector.shape_cast %108 : vector<1x32x32xbf16> to vector<32x32xbf16>
    %cst_115 = arith.constant dense<0.000000e+00> : vector<128x32xf32>
    %110 = tpu.matmul %107, %109, %cst_115 {dimension_numbers = #tpu.dot_dimension_numbers<[1], [0], [0], [1], [0, 0, 1, 1], [], []>} : vector<128x32xbf16>, vector<32x32xbf16>, vector<128x32xf32> -> vector<128x32xf32>
    %111 = arith.addf %104, %110 : vector<128x32xf32>
    %c8_116 = arith.constant 8 : index
    %c2_117 = arith.constant 2 : index
    %c0_118 = arith.constant 0 : index
    %112 = vector.load %arg9[%c8_116, %c2_117, %c0_118] : memref<18x18x32xf32, #tpu.memory_space<vmem>>, vector<8x16x32xf32>
    %113 = vector.shape_cast %112 : vector<8x16x32xf32> to vector<128x32xf32>
    %114 = arith.truncf %113 : vector<128x32xf32> to vector<128x32xbf16>
    %c2_119 = arith.constant 2 : index
    %c0_120 = arith.constant 0 : index
    %c0_121 = arith.constant 0 : index
    %115 = vector.load %arg3[%c2_119, %c0_120, %c0_121] : memref<9x32x32xbf16, #tpu.memory_space<vmem>>, vector<1x32x32xbf16>
    %116 = vector.shape_cast %115 : vector<1x32x32xbf16> to vector<32x32xbf16>
    %cst_122 = arith.constant dense<0.000000e+00> : vector<128x32xf32>
    %117 = tpu.matmul %114, %116, %cst_122 {dimension_numbers = #tpu.dot_dimension_numbers<[1], [0], [0], [1], [0, 0, 1, 1], [], []>} : vector<128x32xbf16>, vector<32x32xbf16>, vector<128x32xf32> -> vector<128x32xf32>
    %118 = arith.addf %111, %117 : vector<128x32xf32>
    %c9 = arith.constant 9 : index
    %c0_123 = arith.constant 0 : index
    %c0_124 = arith.constant 0 : index
    %119 = vector.load %arg9[%c9, %c0_123, %c0_124] : memref<18x18x32xf32, #tpu.memory_space<vmem>>, vector<8x16x32xf32>
    %120 = vector.shape_cast %119 : vector<8x16x32xf32> to vector<128x32xf32>
    %121 = arith.truncf %120 : vector<128x32xf32> to vector<128x32xbf16>
    %c3_125 = arith.constant 3 : index
    %c0_126 = arith.constant 0 : index
    %c0_127 = arith.constant 0 : index
    %122 = vector.load %arg3[%c3_125, %c0_126, %c0_127] : memref<9x32x32xbf16, #tpu.memory_space<vmem>>, vector<1x32x32xbf16>
    %123 = vector.shape_cast %122 : vector<1x32x32xbf16> to vector<32x32xbf16>
    %cst_128 = arith.constant dense<0.000000e+00> : vector<128x32xf32>
    %124 = tpu.matmul %121, %123, %cst_128 {dimension_numbers = #tpu.dot_dimension_numbers<[1], [0], [0], [1], [0, 0, 1, 1], [], []>} : vector<128x32xbf16>, vector<32x32xbf16>, vector<128x32xf32> -> vector<128x32xf32>
    %125 = arith.addf %118, %124 : vector<128x32xf32>
    %c9_129 = arith.constant 9 : index
    %c1_130 = arith.constant 1 : index
    %c0_131 = arith.constant 0 : index
    %126 = vector.load %arg9[%c9_129, %c1_130, %c0_131] : memref<18x18x32xf32, #tpu.memory_space<vmem>>, vector<8x16x32xf32>
    %127 = vector.shape_cast %126 : vector<8x16x32xf32> to vector<128x32xf32>
    %128 = arith.truncf %127 : vector<128x32xf32> to vector<128x32xbf16>
    %c4_132 = arith.constant 4 : index
    %c0_133 = arith.constant 0 : index
    %c0_134 = arith.constant 0 : index
    %129 = vector.load %arg3[%c4_132, %c0_133, %c0_134] : memref<9x32x32xbf16, #tpu.memory_space<vmem>>, vector<1x32x32xbf16>
    %130 = vector.shape_cast %129 : vector<1x32x32xbf16> to vector<32x32xbf16>
    %cst_135 = arith.constant dense<0.000000e+00> : vector<128x32xf32>
    %131 = tpu.matmul %128, %130, %cst_135 {dimension_numbers = #tpu.dot_dimension_numbers<[1], [0], [0], [1], [0, 0, 1, 1], [], []>} : vector<128x32xbf16>, vector<32x32xbf16>, vector<128x32xf32> -> vector<128x32xf32>
    %132 = arith.addf %125, %131 : vector<128x32xf32>
    %c9_136 = arith.constant 9 : index
    %c2_137 = arith.constant 2 : index
    %c0_138 = arith.constant 0 : index
    %133 = vector.load %arg9[%c9_136, %c2_137, %c0_138] : memref<18x18x32xf32, #tpu.memory_space<vmem>>, vector<8x16x32xf32>
    %134 = vector.shape_cast %133 : vector<8x16x32xf32> to vector<128x32xf32>
    %135 = arith.truncf %134 : vector<128x32xf32> to vector<128x32xbf16>
    %c5_139 = arith.constant 5 : index
    %c0_140 = arith.constant 0 : index
    %c0_141 = arith.constant 0 : index
    %136 = vector.load %arg3[%c5_139, %c0_140, %c0_141] : memref<9x32x32xbf16, #tpu.memory_space<vmem>>, vector<1x32x32xbf16>
    %137 = vector.shape_cast %136 : vector<1x32x32xbf16> to vector<32x32xbf16>
    %cst_142 = arith.constant dense<0.000000e+00> : vector<128x32xf32>
    %138 = tpu.matmul %135, %137, %cst_142 {dimension_numbers = #tpu.dot_dimension_numbers<[1], [0], [0], [1], [0, 0, 1, 1], [], []>} : vector<128x32xbf16>, vector<32x32xbf16>, vector<128x32xf32> -> vector<128x32xf32>
    %139 = arith.addf %132, %138 : vector<128x32xf32>
    %c10 = arith.constant 10 : index
    %c0_143 = arith.constant 0 : index
    %c0_144 = arith.constant 0 : index
    %140 = vector.load %arg9[%c10, %c0_143, %c0_144] : memref<18x18x32xf32, #tpu.memory_space<vmem>>, vector<8x16x32xf32>
    %141 = vector.shape_cast %140 : vector<8x16x32xf32> to vector<128x32xf32>
    %142 = arith.truncf %141 : vector<128x32xf32> to vector<128x32xbf16>
    %c6_145 = arith.constant 6 : index
    %c0_146 = arith.constant 0 : index
    %c0_147 = arith.constant 0 : index
    %143 = vector.load %arg3[%c6_145, %c0_146, %c0_147] : memref<9x32x32xbf16, #tpu.memory_space<vmem>>, vector<1x32x32xbf16>
    %144 = vector.shape_cast %143 : vector<1x32x32xbf16> to vector<32x32xbf16>
    %cst_148 = arith.constant dense<0.000000e+00> : vector<128x32xf32>
    %145 = tpu.matmul %142, %144, %cst_148 {dimension_numbers = #tpu.dot_dimension_numbers<[1], [0], [0], [1], [0, 0, 1, 1], [], []>} : vector<128x32xbf16>, vector<32x32xbf16>, vector<128x32xf32> -> vector<128x32xf32>
    %146 = arith.addf %139, %145 : vector<128x32xf32>
    %c10_149 = arith.constant 10 : index
    %c1_150 = arith.constant 1 : index
    %c0_151 = arith.constant 0 : index
    %147 = vector.load %arg9[%c10_149, %c1_150, %c0_151] : memref<18x18x32xf32, #tpu.memory_space<vmem>>, vector<8x16x32xf32>
    %148 = vector.shape_cast %147 : vector<8x16x32xf32> to vector<128x32xf32>
    %149 = arith.truncf %148 : vector<128x32xf32> to vector<128x32xbf16>
    %c7_152 = arith.constant 7 : index
    %c0_153 = arith.constant 0 : index
    %c0_154 = arith.constant 0 : index
    %150 = vector.load %arg3[%c7_152, %c0_153, %c0_154] : memref<9x32x32xbf16, #tpu.memory_space<vmem>>, vector<1x32x32xbf16>
    %151 = vector.shape_cast %150 : vector<1x32x32xbf16> to vector<32x32xbf16>
    %cst_155 = arith.constant dense<0.000000e+00> : vector<128x32xf32>
    %152 = tpu.matmul %149, %151, %cst_155 {dimension_numbers = #tpu.dot_dimension_numbers<[1], [0], [0], [1], [0, 0, 1, 1], [], []>} : vector<128x32xbf16>, vector<32x32xbf16>, vector<128x32xf32> -> vector<128x32xf32>
    %153 = arith.addf %146, %152 : vector<128x32xf32>
    %c10_156 = arith.constant 10 : index
    %c2_157 = arith.constant 2 : index
    %c0_158 = arith.constant 0 : index
    %154 = vector.load %arg9[%c10_156, %c2_157, %c0_158] : memref<18x18x32xf32, #tpu.memory_space<vmem>>, vector<8x16x32xf32>
    %155 = vector.shape_cast %154 : vector<8x16x32xf32> to vector<128x32xf32>
    %156 = arith.truncf %155 : vector<128x32xf32> to vector<128x32xbf16>
    %c8_159 = arith.constant 8 : index
    %c0_160 = arith.constant 0 : index
    %c0_161 = arith.constant 0 : index
    %157 = vector.load %arg3[%c8_159, %c0_160, %c0_161] : memref<9x32x32xbf16, #tpu.memory_space<vmem>>, vector<1x32x32xbf16>
    %158 = vector.shape_cast %157 : vector<1x32x32xbf16> to vector<32x32xbf16>
    %cst_162 = arith.constant dense<0.000000e+00> : vector<128x32xf32>
    %159 = tpu.matmul %156, %158, %cst_162 {dimension_numbers = #tpu.dot_dimension_numbers<[1], [0], [0], [1], [0, 0, 1, 1], [], []>} : vector<128x32xbf16>, vector<32x32xbf16>, vector<128x32xf32> -> vector<128x32xf32>
    %160 = arith.addf %153, %159 : vector<128x32xf32>
    %c0_163 = arith.constant 0 : index
    %c0_164 = arith.constant 0 : index
    %161 = vector.load %arg4[%c0_163, %c0_164] : memref<1x32xf32, #tpu.memory_space<vmem>>, vector<1x32xf32>
    %162 = vector.broadcast %161 : vector<1x32xf32> to vector<128x32xf32>
    %163 = arith.addf %160, %162 : vector<128x32xf32>
    %cst_165 = arith.constant 0.000000e+00 : f32
    %164 = vector.broadcast %cst_165 : f32 to vector<128x32xf32>
    %165 = arith.cmpf oge, %163, %164 : vector<128x32xf32>
    %cst_166 = arith.constant 2.000000e-01 : f32
    %166 = vector.broadcast %cst_166 : f32 to vector<128x32xf32>
    %167 = arith.mulf %166, %163 : vector<128x32xf32>
    %168 = arith.select %165, %163, %167 : vector<128x32xi1>, vector<128x32xf32>
    %cst_167 = arith.constant dense<0.000000e+00> : vector<32xf32>
    %169 = vector.multi_reduction <add>, %168, %cst_167 [0] : vector<128x32xf32> to vector<32xf32>
    %170 = vector.shape_cast %169 : vector<32xf32> to vector<1x32xf32>
    %171 = arith.addf %94, %170 : vector<1x32xf32>
    %172 = vector.shape_cast %168 : vector<128x32xf32> to vector<8x16x32xf32>
    %c9_168 = arith.constant 9 : index
    %c1_169 = arith.constant 1 : index
    %c0_170 = arith.constant 0 : index
    %173 = vector.load %arg10[%c9_168, %c1_169, %c0_170] : memref<18x18x32xf32, #tpu.memory_space<vmem>>, vector<8x16x32xf32>
    tpu.vector_store %arg10[%c9_168, %c1_169, %c0_170], %172 {strides = array<i32>} : memref<18x18x32xf32, #tpu.memory_space<vmem>>, vector<8x16x32xf32>,
    %cst_171 = arith.constant 3.906250e-03 : f32
    %174 = vector.broadcast %cst_171 : f32 to vector<1x32xf32>
    %175 = arith.mulf %171, %174 : vector<1x32xf32>
    %c0_172 = arith.constant 0 : index
    %c0_173 = arith.constant 0 : index
    %c0_174 = arith.constant 0 : index
    %176 = vector.load %arg8[%c0_172, %c0_173, %c0_174] : memref<1x1x32xf32, #tpu.memory_space<vmem>>, vector<1x1x32xf32>
    %177 = vector.shape_cast %176 : vector<1x1x32xf32> to vector<1x32xf32>
    %178 = vector.shape_cast %175 : vector<1x32xf32> to vector<1x1x32xf32>
    tpu.vector_store %arg8[%c0_172, %c0_173, %c0_174], %178 {strides = array<i32>} : memref<1x1x32xf32, #tpu.memory_space<vmem>>, vector<1x1x32xf32>,
    %cst_175 = arith.constant 0.000000e+00 : f32
    %179 = vector.broadcast %cst_175 : f32 to vector<32x128xf32>
    %c0_176 = arith.constant 0 : index
    %c0_177 = arith.constant 0 : index
    %c0_178 = arith.constant 0 : index
    %180 = vector.load %arg5[%c0_176, %c0_177, %c0_178] : memref<9x32x32xbf16, #tpu.memory_space<vmem>>, vector<1x32x32xbf16>
    %181 = vector.shape_cast %180 : vector<1x32x32xbf16> to vector<32x32xbf16>
    %c0_179 = arith.constant 0 : index
    %c0_180 = arith.constant 0 : index
    %c0_181 = arith.constant 0 : index
    %182 = vector.load %arg10[%c0_179, %c0_180, %c0_181] : memref<18x18x32xf32, #tpu.memory_space<vmem>>, vector<8x16x32xf32>
    %183 = vector.shape_cast %182 : vector<8x16x32xf32> to vector<128x32xf32>
    %184 = arith.truncf %183 : vector<128x32xf32> to vector<128x32xbf16>
    %cst_182 = arith.constant dense<0.000000e+00> : vector<32x128xf32>
    %185 = tpu.matmul %181, %184, %cst_182 {dimension_numbers = #tpu.dot_dimension_numbers<[1], [1], [0], [0], [0, 0, 1, 0], [], []>} : vector<32x32xbf16>, vector<128x32xbf16>, vector<32x128xf32> -> vector<32x128xf32>
    %186 = arith.addf %179, %185 : vector<32x128xf32>
    %c1_183 = arith.constant 1 : index
    %c0_184 = arith.constant 0 : index
    %c0_185 = arith.constant 0 : index
    %187 = vector.load %arg5[%c1_183, %c0_184, %c0_185] : memref<9x32x32xbf16, #tpu.memory_space<vmem>>, vector<1x32x32xbf16>
    %188 = vector.shape_cast %187 : vector<1x32x32xbf16> to vector<32x32xbf16>
    %c0_186 = arith.constant 0 : index
    %c1_187 = arith.constant 1 : index
    %c0_188 = arith.constant 0 : index
    %189 = vector.load %arg10[%c0_186, %c1_187, %c0_188] : memref<18x18x32xf32, #tpu.memory_space<vmem>>, vector<8x16x32xf32>
    %190 = vector.shape_cast %189 : vector<8x16x32xf32> to vector<128x32xf32>
    %191 = arith.truncf %190 : vector<128x32xf32> to vector<128x32xbf16>
    %cst_189 = arith.constant dense<0.000000e+00> : vector<32x128xf32>
    %192 = tpu.matmul %188, %191, %cst_189 {dimension_numbers = #tpu.dot_dimension_numbers<[1], [1], [0], [0], [0, 0, 1, 0], [], []>} : vector<32x32xbf16>, vector<128x32xbf16>, vector<32x128xf32> -> vector<32x128xf32>
    %193 = arith.addf %186, %192 : vector<32x128xf32>
    %c2_190 = arith.constant 2 : index
    %c0_191 = arith.constant 0 : index
    %c0_192 = arith.constant 0 : index
    %194 = vector.load %arg5[%c2_190, %c0_191, %c0_192] : memref<9x32x32xbf16, #tpu.memory_space<vmem>>, vector<1x32x32xbf16>
    %195 = vector.shape_cast %194 : vector<1x32x32xbf16> to vector<32x32xbf16>
    %c0_193 = arith.constant 0 : index
    %c2_194 = arith.constant 2 : index
    %c0_195 = arith.constant 0 : index
    %196 = vector.load %arg10[%c0_193, %c2_194, %c0_195] : memref<18x18x32xf32, #tpu.memory_space<vmem>>, vector<8x16x32xf32>
    %197 = vector.shape_cast %196 : vector<8x16x32xf32> to vector<128x32xf32>
    %198 = arith.truncf %197 : vector<128x32xf32> to vector<128x32xbf16>
    %cst_196 = arith.constant dense<0.000000e+00> : vector<32x128xf32>
    %199 = tpu.matmul %195, %198, %cst_196 {dimension_numbers = #tpu.dot_dimension_numbers<[1], [1], [0], [0], [0, 0, 1, 0], [], []>} : vector<32x32xbf16>, vector<128x32xbf16>, vector<32x128xf32> -> vector<32x128xf32>
    %200 = arith.addf %193, %199 : vector<32x128xf32>
    %c3_197 = arith.constant 3 : index
    %c0_198 = arith.constant 0 : index
    %c0_199 = arith.constant 0 : index
    %201 = vector.load %arg5[%c3_197, %c0_198, %c0_199] : memref<9x32x32xbf16, #tpu.memory_space<vmem>>, vector<1x32x32xbf16>
    %202 = vector.shape_cast %201 : vector<1x32x32xbf16> to vector<32x32xbf16>
    %c1_200 = arith.constant 1 : index
    %c0_201 = arith.constant 0 : index
    %c0_202 = arith.constant 0 : index
    %203 = vector.load %arg10[%c1_200, %c0_201, %c0_202] : memref<18x18x32xf32, #tpu.memory_space<vmem>>, vector<8x16x32xf32>
    %204 = vector.shape_cast %203 : vector<8x16x32xf32> to vector<128x32xf32>
    %205 = arith.truncf %204 : vector<128x32xf32> to vector<128x32xbf16>
    %cst_203 = arith.constant dense<0.000000e+00> : vector<32x128xf32>
    %206 = tpu.matmul %202, %205, %cst_203 {dimension_numbers = #tpu.dot_dimension_numbers<[1], [1], [0], [0], [0, 0, 1, 0], [], []>} : vector<32x32xbf16>, vector<128x32xbf16>, vector<32x128xf32> -> vector<32x128xf32>
    %207 = arith.addf %200, %206 : vector<32x128xf32>
    %c4_204 = arith.constant 4 : index
    %c0_205 = arith.constant 0 : index
    %c0_206 = arith.constant 0 : index
    %208 = vector.load %arg5[%c4_204, %c0_205, %c0_206] : memref<9x32x32xbf16, #tpu.memory_space<vmem>>, vector<1x32x32xbf16>
    %209 = vector.shape_cast %208 : vector<1x32x32xbf16> to vector<32x32xbf16>
    %c1_207 = arith.constant 1 : index
    %c1_208 = arith.constant 1 : index
    %c0_209 = arith.constant 0 : index
    %210 = vector.load %arg10[%c1_207, %c1_208, %c0_209] : memref<18x18x32xf32, #tpu.memory_space<vmem>>, vector<8x16x32xf32>
    %211 = vector.shape_cast %210 : vector<8x16x32xf32> to vector<128x32xf32>
    %212 = arith.truncf %211 : vector<128x32xf32> to vector<128x32xbf16>
    %cst_210 = arith.constant dense<0.000000e+00> : vector<32x128xf32>
    %213 = tpu.matmul %209, %212, %cst_210 {dimension_numbers = #tpu.dot_dimension_numbers<[1], [1], [0], [0], [0, 0, 1, 0], [], []>} : vector<32x32xbf16>, vector<128x32xbf16>, vector<32x128xf32> -> vector<32x128xf32>
    %214 = arith.addf %207, %213 : vector<32x128xf32>
    %c5_211 = arith.constant 5 : index
    %c0_212 = arith.constant 0 : index
    %c0_213 = arith.constant 0 : index
    %215 = vector.load %arg5[%c5_211, %c0_212, %c0_213] : memref<9x32x32xbf16, #tpu.memory_space<vmem>>, vector<1x32x32xbf16>
    %216 = vector.shape_cast %215 : vector<1x32x32xbf16> to vector<32x32xbf16>
    %c1_214 = arith.constant 1 : index
    %c2_215 = arith.constant 2 : index
    %c0_216 = arith.constant 0 : index
    %217 = vector.load %arg10[%c1_214, %c2_215, %c0_216] : memref<18x18x32xf32, #tpu.memory_space<vmem>>, vector<8x16x32xf32>
    %218 = vector.shape_cast %217 : vector<8x16x32xf32> to vector<128x32xf32>
    %219 = arith.truncf %218 : vector<128x32xf32> to vector<128x32xbf16>
    %cst_217 = arith.constant dense<0.000000e+00> : vector<32x128xf32>
    %220 = tpu.matmul %216, %219, %cst_217 {dimension_numbers = #tpu.dot_dimension_numbers<[1], [1], [0], [0], [0, 0, 1, 0], [], []>} : vector<32x32xbf16>, vector<128x32xbf16>, vector<32x128xf32> -> vector<32x128xf32>
    %221 = arith.addf %214, %220 : vector<32x128xf32>
    %c6_218 = arith.constant 6 : index
    %c0_219 = arith.constant 0 : index
    %c0_220 = arith.constant 0 : index
    %222 = vector.load %arg5[%c6_218, %c0_219, %c0_220] : memref<9x32x32xbf16, #tpu.memory_space<vmem>>, vector<1x32x32xbf16>
    %223 = vector.shape_cast %222 : vector<1x32x32xbf16> to vector<32x32xbf16>
    %c2_221 = arith.constant 2 : index
    %c0_222 = arith.constant 0 : index
    %c0_223 = arith.constant 0 : index
    %224 = vector.load %arg10[%c2_221, %c0_222, %c0_223] : memref<18x18x32xf32, #tpu.memory_space<vmem>>, vector<8x16x32xf32>
    %225 = vector.shape_cast %224 : vector<8x16x32xf32> to vector<128x32xf32>
    %226 = arith.truncf %225 : vector<128x32xf32> to vector<128x32xbf16>
    %cst_224 = arith.constant dense<0.000000e+00> : vector<32x128xf32>
    %227 = tpu.matmul %223, %226, %cst_224 {dimension_numbers = #tpu.dot_dimension_numbers<[1], [1], [0], [0], [0, 0, 1, 0], [], []>} : vector<32x32xbf16>, vector<128x32xbf16>, vector<32x128xf32> -> vector<32x128xf32>
    %228 = arith.addf %221, %227 : vector<32x128xf32>
    %c7_225 = arith.constant 7 : index
    %c0_226 = arith.constant 0 : index
    %c0_227 = arith.constant 0 : index
    %229 = vector.load %arg5[%c7_225, %c0_226, %c0_227] : memref<9x32x32xbf16, #tpu.memory_space<vmem>>, vector<1x32x32xbf16>
    %230 = vector.shape_cast %229 : vector<1x32x32xbf16> to vector<32x32xbf16>
    %c2_228 = arith.constant 2 : index
    %c1_229 = arith.constant 1 : index
    %c0_230 = arith.constant 0 : index
    %231 = vector.load %arg10[%c2_228, %c1_229, %c0_230] : memref<18x18x32xf32, #tpu.memory_space<vmem>>, vector<8x16x32xf32>
    %232 = vector.shape_cast %231 : vector<8x16x32xf32> to vector<128x32xf32>
    %233 = arith.truncf %232 : vector<128x32xf32> to vector<128x32xbf16>
    %cst_231 = arith.constant dense<0.000000e+00> : vector<32x128xf32>
    %234 = tpu.matmul %230, %233, %cst_231 {dimension_numbers = #tpu.dot_dimension_numbers<[1], [1], [0], [0], [0, 0, 1, 0], [], []>} : vector<32x32xbf16>, vector<128x32xbf16>, vector<32x128xf32> -> vector<32x128xf32>
    %235 = arith.addf %228, %234 : vector<32x128xf32>
    %c8_232 = arith.constant 8 : index
    %c0_233 = arith.constant 0 : index
    %c0_234 = arith.constant 0 : index
    %236 = vector.load %arg5[%c8_232, %c0_233, %c0_234] : memref<9x32x32xbf16, #tpu.memory_space<vmem>>, vector<1x32x32xbf16>
    %237 = vector.shape_cast %236 : vector<1x32x32xbf16> to vector<32x32xbf16>
    %c2_235 = arith.constant 2 : index
    %c2_236 = arith.constant 2 : index
    %c0_237 = arith.constant 0 : index
    %238 = vector.load %arg10[%c2_235, %c2_236, %c0_237] : memref<18x18x32xf32, #tpu.memory_space<vmem>>, vector<8x16x32xf32>
    %239 = vector.shape_cast %238 : vector<8x16x32xf32> to vector<128x32xf32>
    %240 = arith.truncf %239 : vector<128x32xf32> to vector<128x32xbf16>
    %cst_238 = arith.constant dense<0.000000e+00> : vector<32x128xf32>
    %241 = tpu.matmul %237, %240, %cst_238 {dimension_numbers = #tpu.dot_dimension_numbers<[1], [1], [0], [0], [0, 0, 1, 0], [], []>} : vector<32x32xbf16>, vector<128x32xbf16>, vector<32x128xf32> -> vector<32x128xf32>
    %242 = arith.addf %235, %241 : vector<32x128xf32>
    %c0_239 = arith.constant 0 : index
    %c0_240 = arith.constant 0 : index
    %243 = vector.load %arg6[%c0_239, %c0_240] : memref<32x1xf32, #tpu.memory_space<vmem>>, vector<32x1xf32>
    %244 = vector.broadcast %243 : vector<32x1xf32> to vector<32x128xf32>
    %245 = arith.addf %242, %244 : vector<32x128xf32>
    %cst_241 = arith.constant 0.000000e+00 : f32
    %246 = vector.broadcast %cst_241 : f32 to vector<32x128xf32>
    %247 = arith.cmpf oge, %245, %246 : vector<32x128xf32>
    %cst_242 = arith.constant 2.000000e-01 : f32
    %248 = vector.broadcast %cst_242 : f32 to vector<32x128xf32>
    %249 = arith.mulf %248, %245 : vector<32x128xf32>
    %250 = arith.select %247, %245, %249 : vector<32x128xi1>, vector<32x128xf32>
    %cst_243 = arith.constant 1.000000e-01 : f32
    %251 = vector.broadcast %cst_243 : f32 to vector<32x128xf32>
    %252 = arith.mulf %251, %250 : vector<32x128xf32>
    %c0_244 = arith.constant 0 : index
    %c0_245 = arith.constant 0 : index
    %c0_246 = arith.constant 0 : index
    %253 = vector.load %arg2[%c0_244, %c0_245, %c0_246] : memref<1x32x256xf32, #tpu.memory_space<vmem>>, vector<1x32x128xf32>
    %254 = vector.shape_cast %253 : vector<1x32x128xf32> to vector<32x128xf32>
    %255 = arith.addf %252, %254 : vector<32x128xf32>
    %c0_247 = arith.constant 0 : index
    %c0_248 = arith.constant 0 : index
    %c0_249 = arith.constant 0 : index
    %256 = vector.load %arg7[%c0_247, %c0_248, %c0_249] : memref<1x32x256xf32, #tpu.memory_space<vmem>>, vector<1x32x128xf32>
    %257 = vector.shape_cast %256 : vector<1x32x128xf32> to vector<32x128xf32>
    %258 = vector.shape_cast %255 : vector<32x128xf32> to vector<1x32x128xf32>
    tpu.vector_store %arg7[%c0_247, %c0_248, %c0_249], %258 {strides = array<i32>} : memref<1x32x256xf32, #tpu.memory_space<vmem>>, vector<1x32x128xf32>,
    %cst_250 = arith.constant 0.000000e+00 : f32
    %259 = vector.broadcast %cst_250 : f32 to vector<32x128xf32>
    %c0_251 = arith.constant 0 : index
    %c0_252 = arith.constant 0 : index
    %c0_253 = arith.constant 0 : index
    %260 = vector.load %arg5[%c0_251, %c0_252, %c0_253] : memref<9x32x32xbf16, #tpu.memory_space<vmem>>, vector<1x32x32xbf16>
    %261 = vector.shape_cast %260 : vector<1x32x32xbf16> to vector<32x32xbf16>
    %c8_254 = arith.constant 8 : index
    %c0_255 = arith.constant 0 : index
    %c0_256 = arith.constant 0 : index
    %262 = vector.load %arg10[%c8_254, %c0_255, %c0_256] : memref<18x18x32xf32, #tpu.memory_space<vmem>>, vector<8x16x32xf32>
    %263 = vector.shape_cast %262 : vector<8x16x32xf32> to vector<128x32xf32>
    %264 = arith.truncf %263 : vector<128x32xf32> to vector<128x32xbf16>
    %cst_257 = arith.constant dense<0.000000e+00> : vector<32x128xf32>
    %265 = tpu.matmul %261, %264, %cst_257 {dimension_numbers = #tpu.dot_dimension_numbers<[1], [1], [0], [0], [0, 0, 1, 0], [], []>} : vector<32x32xbf16>, vector<128x32xbf16>, vector<32x128xf32> -> vector<32x128xf32>
    %266 = arith.addf %259, %265 : vector<32x128xf32>
    %c1_258 = arith.constant 1 : index
    %c0_259 = arith.constant 0 : index
    %c0_260 = arith.constant 0 : index
    %267 = vector.load %arg5[%c1_258, %c0_259, %c0_260] : memref<9x32x32xbf16, #tpu.memory_space<vmem>>, vector<1x32x32xbf16>
    %268 = vector.shape_cast %267 : vector<1x32x32xbf16> to vector<32x32xbf16>
    %c8_261 = arith.constant 8 : index
    %c1_262 = arith.constant 1 : index
    %c0_263 = arith.constant 0 : index
    %269 = vector.load %arg10[%c8_261, %c1_262, %c0_263] : memref<18x18x32xf32, #tpu.memory_space<vmem>>, vector<8x16x32xf32>
    %270 = vector.shape_cast %269 : vector<8x16x32xf32> to vector<128x32xf32>
    %271 = arith.truncf %270 : vector<128x32xf32> to vector<128x32xbf16>
    %cst_264 = arith.constant dense<0.000000e+00> : vector<32x128xf32>
    %272 = tpu.matmul %268, %271, %cst_264 {dimension_numbers = #tpu.dot_dimension_numbers<[1], [1], [0], [0], [0, 0, 1, 0], [], []>} : vector<32x32xbf16>, vector<128x32xbf16>, vector<32x128xf32> -> vector<32x128xf32>
    %273 = arith.addf %266, %272 : vector<32x128xf32>
    %c2_265 = arith.constant 2 : index
    %c0_266 = arith.constant 0 : index
    %c0_267 = arith.constant 0 : index
    %274 = vector.load %arg5[%c2_265, %c0_266, %c0_267] : memref<9x32x32xbf16, #tpu.memory_space<vmem>>, vector<1x32x32xbf16>
    %275 = vector.shape_cast %274 : vector<1x32x32xbf16> to vector<32x32xbf16>
    %c8_268 = arith.constant 8 : index
    %c2_269 = arith.constant 2 : index
    %c0_270 = arith.constant 0 : index
    %276 = vector.load %arg10[%c8_268, %c2_269, %c0_270] : memref<18x18x32xf32, #tpu.memory_space<vmem>>, vector<8x16x32xf32>
    %277 = vector.shape_cast %276 : vector<8x16x32xf32> to vector<128x32xf32>
    %278 = arith.truncf %277 : vector<128x32xf32> to vector<128x32xbf16>
    %cst_271 = arith.constant dense<0.000000e+00> : vector<32x128xf32>
    %279 = tpu.matmul %275, %278, %cst_271 {dimension_numbers = #tpu.dot_dimension_numbers<[1], [1], [0], [0], [0, 0, 1, 0], [], []>} : vector<32x32xbf16>, vector<128x32xbf16>, vector<32x128xf32> -> vector<32x128xf32>
    %280 = arith.addf %273, %279 : vector<32x128xf32>
    %c3_272 = arith.constant 3 : index
    %c0_273 = arith.constant 0 : index
    %c0_274 = arith.constant 0 : index
    %281 = vector.load %arg5[%c3_272, %c0_273, %c0_274] : memref<9x32x32xbf16, #tpu.memory_space<vmem>>, vector<1x32x32xbf16>
    %282 = vector.shape_cast %281 : vector<1x32x32xbf16> to vector<32x32xbf16>
    %c9_275 = arith.constant 9 : index
    %c0_276 = arith.constant 0 : index
    %c0_277 = arith.constant 0 : index
    %283 = vector.load %arg10[%c9_275, %c0_276, %c0_277] : memref<18x18x32xf32, #tpu.memory_space<vmem>>, vector<8x16x32xf32>
    %284 = vector.shape_cast %283 : vector<8x16x32xf32> to vector<128x32xf32>
    %285 = arith.truncf %284 : vector<128x32xf32> to vector<128x32xbf16>
    %cst_278 = arith.constant dense<0.000000e+00> : vector<32x128xf32>
    %286 = tpu.matmul %282, %285, %cst_278 {dimension_numbers = #tpu.dot_dimension_numbers<[1], [1], [0], [0], [0, 0, 1, 0], [], []>} : vector<32x32xbf16>, vector<128x32xbf16>, vector<32x128xf32> -> vector<32x128xf32>
    %287 = arith.addf %280, %286 : vector<32x128xf32>
    %c4_279 = arith.constant 4 : index
    %c0_280 = arith.constant 0 : index
    %c0_281 = arith.constant 0 : index
    %288 = vector.load %arg5[%c4_279, %c0_280, %c0_281] : memref<9x32x32xbf16, #tpu.memory_space<vmem>>, vector<1x32x32xbf16>
    %289 = vector.shape_cast %288 : vector<1x32x32xbf16> to vector<32x32xbf16>
    %c9_282 = arith.constant 9 : index
    %c1_283 = arith.constant 1 : index
    %c0_284 = arith.constant 0 : index
    %290 = vector.load %arg10[%c9_282, %c1_283, %c0_284] : memref<18x18x32xf32, #tpu.memory_space<vmem>>, vector<8x16x32xf32>
    %291 = vector.shape_cast %290 : vector<8x16x32xf32> to vector<128x32xf32>
    %292 = arith.truncf %291 : vector<128x32xf32> to vector<128x32xbf16>
    %cst_285 = arith.constant dense<0.000000e+00> : vector<32x128xf32>
    %293 = tpu.matmul %289, %292, %cst_285 {dimension_numbers = #tpu.dot_dimension_numbers<[1], [1], [0], [0], [0, 0, 1, 0], [], []>} : vector<32x32xbf16>, vector<128x32xbf16>, vector<32x128xf32> -> vector<32x128xf32>
    %294 = arith.addf %287, %293 : vector<32x128xf32>
    %c5_286 = arith.constant 5 : index
    %c0_287 = arith.constant 0 : index
    %c0_288 = arith.constant 0 : index
    %295 = vector.load %arg5[%c5_286, %c0_287, %c0_288] : memref<9x32x32xbf16, #tpu.memory_space<vmem>>, vector<1x32x32xbf16>
    %296 = vector.shape_cast %295 : vector<1x32x32xbf16> to vector<32x32xbf16>
    %c9_289 = arith.constant 9 : index
    %c2_290 = arith.constant 2 : index
    %c0_291 = arith.constant 0 : index
    %297 = vector.load %arg10[%c9_289, %c2_290, %c0_291] : memref<18x18x32xf32, #tpu.memory_space<vmem>>, vector<8x16x32xf32>
    %298 = vector.shape_cast %297 : vector<8x16x32xf32> to vector<128x32xf32>
    %299 = arith.truncf %298 : vector<128x32xf32> to vector<128x32xbf16>
    %cst_292 = arith.constant dense<0.000000e+00> : vector<32x128xf32>
    %300 = tpu.matmul %296, %299, %cst_292 {dimension_numbers = #tpu.dot_dimension_numbers<[1], [1], [0], [0], [0, 0, 1, 0], [], []>} : vector<32x32xbf16>, vector<128x32xbf16>, vector<32x128xf32> -> vector<32x128xf32>
    %301 = arith.addf %294, %300 : vector<32x128xf32>
    %c6_293 = arith.constant 6 : index
    %c0_294 = arith.constant 0 : index
    %c0_295 = arith.constant 0 : index
    %302 = vector.load %arg5[%c6_293, %c0_294, %c0_295] : memref<9x32x32xbf16, #tpu.memory_space<vmem>>, vector<1x32x32xbf16>
    %303 = vector.shape_cast %302 : vector<1x32x32xbf16> to vector<32x32xbf16>
    %c10_296 = arith.constant 10 : index
    %c0_297 = arith.constant 0 : index
    %c0_298 = arith.constant 0 : index
    %304 = vector.load %arg10[%c10_296, %c0_297, %c0_298] : memref<18x18x32xf32, #tpu.memory_space<vmem>>, vector<8x16x32xf32>
    %305 = vector.shape_cast %304 : vector<8x16x32xf32> to vector<128x32xf32>
    %306 = arith.truncf %305 : vector<128x32xf32> to vector<128x32xbf16>
    %cst_299 = arith.constant dense<0.000000e+00> : vector<32x128xf32>
    %307 = tpu.matmul %303, %306, %cst_299 {dimension_numbers = #tpu.dot_dimension_numbers<[1], [1], [0], [0], [0, 0, 1, 0], [], []>} : vector<32x32xbf16>, vector<128x32xbf16>, vector<32x128xf32> -> vector<32x128xf32>
    %308 = arith.addf %301, %307 : vector<32x128xf32>
    %c7_300 = arith.constant 7 : index
    %c0_301 = arith.constant 0 : index
    %c0_302 = arith.constant 0 : index
    %309 = vector.load %arg5[%c7_300, %c0_301, %c0_302] : memref<9x32x32xbf16, #tpu.memory_space<vmem>>, vector<1x32x32xbf16>
    %310 = vector.shape_cast %309 : vector<1x32x32xbf16> to vector<32x32xbf16>
    %c10_303 = arith.constant 10 : index
    %c1_304 = arith.constant 1 : index
    %c0_305 = arith.constant 0 : index
    %311 = vector.load %arg10[%c10_303, %c1_304, %c0_305] : memref<18x18x32xf32, #tpu.memory_space<vmem>>, vector<8x16x32xf32>
    %312 = vector.shape_cast %311 : vector<8x16x32xf32> to vector<128x32xf32>
    %313 = arith.truncf %312 : vector<128x32xf32> to vector<128x32xbf16>
    %cst_306 = arith.constant dense<0.000000e+00> : vector<32x128xf32>
    %314 = tpu.matmul %310, %313, %cst_306 {dimension_numbers = #tpu.dot_dimension_numbers<[1], [1], [0], [0], [0, 0, 1, 0], [], []>} : vector<32x32xbf16>, vector<128x32xbf16>, vector<32x128xf32> -> vector<32x128xf32>
    %315 = arith.addf %308, %314 : vector<32x128xf32>
    %c8_307 = arith.constant 8 : index
    %c0_308 = arith.constant 0 : index
    %c0_309 = arith.constant 0 : index
    %316 = vector.load %arg5[%c8_307, %c0_308, %c0_309] : memref<9x32x32xbf16, #tpu.memory_space<vmem>>, vector<1x32x32xbf16>
    %317 = vector.shape_cast %316 : vector<1x32x32xbf16> to vector<32x32xbf16>
    %c10_310 = arith.constant 10 : index
    %c2_311 = arith.constant 2 : index
    %c0_312 = arith.constant 0 : index
    %318 = vector.load %arg10[%c10_310, %c2_311, %c0_312] : memref<18x18x32xf32, #tpu.memory_space<vmem>>, vector<8x16x32xf32>
    %319 = vector.shape_cast %318 : vector<8x16x32xf32> to vector<128x32xf32>
    %320 = arith.truncf %319 : vector<128x32xf32> to vector<128x32xbf16>
    %cst_313 = arith.constant dense<0.000000e+00> : vector<32x128xf32>
    %321 = tpu.matmul %317, %320, %cst_313 {dimension_numbers = #tpu.dot_dimension_numbers<[1], [1], [0], [0], [0, 0, 1, 0], [], []>} : vector<32x32xbf16>, vector<128x32xbf16>, vector<32x128xf32> -> vector<32x128xf32>
    %322 = arith.addf %315, %321 : vector<32x128xf32>
    %c0_314 = arith.constant 0 : index
    %c0_315 = arith.constant 0 : index
    %323 = vector.load %arg6[%c0_314, %c0_315] : memref<32x1xf32, #tpu.memory_space<vmem>>, vector<32x1xf32>
    %324 = vector.broadcast %323 : vector<32x1xf32> to vector<32x128xf32>
    %325 = arith.addf %322, %324 : vector<32x128xf32>
    %cst_316 = arith.constant 0.000000e+00 : f32
    %326 = vector.broadcast %cst_316 : f32 to vector<32x128xf32>
    %327 = arith.cmpf oge, %325, %326 : vector<32x128xf32>
    %cst_317 = arith.constant 2.000000e-01 : f32
    %328 = vector.broadcast %cst_317 : f32 to vector<32x128xf32>
    %329 = arith.mulf %328, %325 : vector<32x128xf32>
    %330 = arith.select %327, %325, %329 : vector<32x128xi1>, vector<32x128xf32>
    %cst_318 = arith.constant 1.000000e-01 : f32
    %331 = vector.broadcast %cst_318 : f32 to vector<32x128xf32>
    %332 = arith.mulf %331, %330 : vector<32x128xf32>
    %c0_319 = arith.constant 0 : index
    %c0_320 = arith.constant 0 : index
    %c128 = arith.constant 128 : index
    %333 = vector.load %arg2[%c0_319, %c0_320, %c128] : memref<1x32x256xf32, #tpu.memory_space<vmem>>, vector<1x32x128xf32>
    %334 = vector.shape_cast %333 : vector<1x32x128xf32> to vector<32x128xf32>
    %335 = arith.addf %332, %334 : vector<32x128xf32>
    %c0_321 = arith.constant 0 : index
    %c0_322 = arith.constant 0 : index
    %c128_323 = arith.constant 128 : index
    %336 = vector.load %arg7[%c0_321, %c0_322, %c128_323] : memref<1x32x256xf32, #tpu.memory_space<vmem>>, vector<1x32x128xf32>
    %337 = vector.shape_cast %336 : vector<1x32x128xf32> to vector<32x128xf32>
    %338 = vector.shape_cast %335 : vector<32x128xf32> to vector<1x32x128xf32>
    tpu.vector_store %arg7[%c0_321, %c0_322, %c128_323], %338 {strides = array<i32>} : memref<1x32x256xf32, #tpu.memory_space<vmem>>, vector<1x32x128xf32>,
    return
  }
  func.func @transform_0(%arg0: i32) -> (i32, i32, i32, i32) {
    %c0_i32 = arith.constant 0 : i32
    %c0_i32_0 = arith.constant 0 : i32
    %c0_i32_1 = arith.constant 0 : i32
    %c0_i32_2 = arith.constant 0 : i32
    return %arg0, %c0_i32, %c0_i32_0, %c0_i32_1 : i32, i32, i32, i32
  }
  func.func @transform_1(%arg0: i32) -> (i32, i32, i32) {
    %c0_i32 = arith.constant 0 : i32
    %c0_i32_0 = arith.constant 0 : i32
    %c0_i32_1 = arith.constant 0 : i32
    return %arg0, %c0_i32, %c0_i32_0 : i32, i32, i32
  }
  func.func @transform_2(%arg0: i32) -> (i32, i32, i32) {
    %c0_i32 = arith.constant 0 : i32
    %c0_i32_0 = arith.constant 0 : i32
    %c0_i32_1 = arith.constant 0 : i32
    %c0_i32_2 = arith.constant 0 : i32
    return %c0_i32, %c0_i32_0, %c0_i32_1 : i32, i32, i32
  }
  func.func @transform_3(%arg0: i32) -> (i32, i32) {
    %c0_i32 = arith.constant 0 : i32
    %c0_i32_0 = arith.constant 0 : i32
    %c0_i32_1 = arith.constant 0 : i32
    return %c0_i32, %c0_i32_0 : i32, i32
  }
  func.func @transform_4(%arg0: i32) -> (i32, i32, i32) {
    %c0_i32 = arith.constant 0 : i32
    %c0_i32_0 = arith.constant 0 : i32
    %c0_i32_1 = arith.constant 0 : i32
    %c0_i32_2 = arith.constant 0 : i32
    return %c0_i32, %c0_i32_0, %c0_i32_1 : i32, i32, i32
  }
  func.func @transform_5(%arg0: i32) -> (i32, i32) {
    %c0_i32 = arith.constant 0 : i32
    %c0_i32_0 = arith.constant 0 : i32
    %c0_i32_1 = arith.constant 0 : i32
    return %c0_i32, %c0_i32_0 : i32, i32
  }
  func.func @transform_6(%arg0: i32) -> (i32, i32, i32) {
    %c0_i32 = arith.constant 0 : i32
    %c0_i32_0 = arith.constant 0 : i32
    %c0_i32_1 = arith.constant 0 : i32
    return %arg0, %c0_i32, %c0_i32_0 : i32, i32, i32
  }
  func.func @transform_7(%arg0: i32) -> (i32, i32, i32) {
    %c0_i32 = arith.constant 0 : i32
    %c0_i32_0 = arith.constant 0 : i32
    %c0_i32_1 = arith.constant 0 : i32
    return %arg0, %c0_i32, %c0_i32_0 : i32, i32, i32
  }
}

</mosaic_0001>

<bundles_post_ra>
// kernel: global_block_forward.1
= control target key start
LH: loop header
LB: loop body
LE: loop exit
PB: predicated region body
PF: predicated region fallthrough
CT: control target
= control target key end

     0   :  { %s8296_s24 = smov 0   ;;  %s10010_s0 = inlined_call_operand.vmem [shape: f32[2,16,16,32], index: 0, kind: input, shape index: {}]   ;;  %s10011_s1 = inlined_call_operand.vmem [shape: f32[2,32,256], index: 1, kind: input, shape index: {}]   ;;  %s10012_s2 = inlined_call_operand.vmem [shape: bf16[9,32,32], index: 2, kind: input, shape index: {}]   ;;  %s10013_s3 = inlined_call_operand.vmem [shape: f32[1,32], index: 3, kind: input, shape index: {}]   ;;  %s10014_s4 = inlined_call_operand.vmem [shape: bf16[9,32,32], index: 4, kind: input, shape index: {}]   ;;  %s10015_s5 = inlined_call_operand.vmem [shape: f32[32,1], index: 5, kind: input, shape index: {}]   ;;  %s10016_s6 = inlined_call_operand.vmem [shape: f32[2,32,256], index: 6, kind: output, shape index: {0}]   ;;  %s10017_s7 = inlined_call_operand.vmem [shape: f32[2,1,32], index: 7, kind: output, shape index: {1}]  }
   0x1 LB: > { %s6220_s25 = sadd.s32 4294967295, %s8252_s24   ;;  %p6224_p0 = scmp.ge.s32.totalorder %s8252_s24, 1  ;;  %s8252_s24 = sphi %s8296_s24, %s18_s24  }
   0x2   : > { %p250_p1 = scmp.lt.s32.totalorder %s8252_s24, 3 }
   0x4   : > { %p251_p2 = pnand %p6224_p0, %p250_p1 }
   0x6   : > { %254 = sbr.rel (%p251_p2) target bundleno = 1384 (0x568), region = 44 }
   0xd   : > { %v8174_v0 = vld [vmem:[%s10012_s2 + $0x10] sm:$0xff]   ;;  %vm309_vm0 = vcmask 261120   ;;  %v8313_v2 = vld [vmem:[%s10012_s2 + $0x18] sm:$0xff]   ;;  %v8254_v3 = vmov 0.0   ;;  %vm312_vm1 = vcmask 254976   ;;  %p290_p3 = scmp.lt.s32.totalorder %s6220_s25, 1 }
   0xe   : > { %v8175_v1 = vld [vmem:[%s10012_s2 + $0x10] sm:$0xff]   ;;  %6978 = vmatprep.subr.bf16.mxu0 %v8174_v0  ;;  %310 = vst.msk [vmem:[#allocation2] sm:$0xff] %vm309_vm0, %v8254_v3  ;;  %311 = vst.msk [vmem:[#allocation2 + $0x8] sm:$0xff] %vm309_vm0, %v8254_v3  ;;  %v8334_v4 = vld [vmem:[%s10012_s2 + $0x18] sm:$0xff]   ;;  %vm319_vm2 = vcmask 253952  }
   0xf   : > { %315 = vst.msk [vmem:[#allocation2 + $0x198] sm:$0xff] %vm309_vm0, %v8254_v3  ;;  %316 = vst.msk [vmem:[#allocation2 + $0x1a0] sm:$0xff] %vm309_vm0, %v8254_v3  ;;  %6979 = vmatpush3.bf16.msra.mxu0 %v8174_v0  ;;  %7158 = vmatprep.subr.bf16.mxu1 %v8175_v1  ;;  %v8346_v5 = vld [vmem:[%s10012_s2] sm:$0xff]   ;;  %s10103_s25 = smov (!%p290_p3, %s6220_s25), 1  ;;  %v8179_v29 = vld [vmem:[%s10012_s2 + $0x8] sm:$0xff]  }
  0x10   : > { %352 = vst.msk [vmem:[#allocation3] sm:$0xff] %vm309_vm0, %v8254_v3  ;;  %353 = vst.msk [vmem:[#allocation3 + $0x8] sm:$0xff] %vm309_vm0, %v8254_v3  ;;  %7159 = vmatpush3.bf16.msra.mxu1 %v8175_v1  ;;  %6980 = vmatprep.subr.bf16.mxu0 %v8313_v2  ;;  %v8484_v6 = vld [vmem:[%s10012_s2] sm:$0xff]   ;;  %s6615_s15 = sshll.u32 %s10103_s25, 8  ;;  %v8181_v47 = vld [vmem:[%s10012_s2 + $0x8] sm:$0xff]   ;;  %s307_s26 = scalar_lea.vmem %s10017_s7, %s10103_s25 }
  0x11   : > { %356 = vst.msk [vmem:[#allocation3 + $0x198] sm:$0xff] %vm309_vm0, %v8254_v3  ;;  %357 = vst.msk [vmem:[#allocation3 + $0x1a0] sm:$0xff] %vm309_vm0, %v8254_v3  ;;  %7160 = vmatprep.subr.bf16.mxu1 %v8334_v4  ;;  %s8493_s18 = scalar_lea.vmem %s10010_s0, %s6615_s15  ;;  %v8571_v55 = vld [vmem:[%s10012_s2 + $0x20] sm:$0xff]   ;;  %s6616_s17 = sshll.u32 %s10103_s25, 6 }
  0x12   : > { %313 = vst.msk [vmem:[#allocation2 + $0x10] sm:$0x3] %vm312_vm1, %v8254_v3  ;;  %317 = vst.msk [vmem:[#allocation2 + $0x1a8] sm:$0x3] %vm312_vm1, %v8254_v3  ;;  %v392_v8 = vld [vmem:[%s8493_s18] sm:$0xff]  ;;  %v393_v9 = vld [vmem:[%s8493_s18 + $0x8] sm:$0xff]  ;;  %s9984_s20 = scalar_lea.vmem %s10011_s1, %s6616_s17  ;;  %s9991_s22 = scalar_lea.vmem %s10016_s6, %s6616_s17 }
  0x13   : > { %354 = vst.msk [vmem:[#allocation3 + $0x10] sm:$0x3] %vm312_vm1, %v8254_v3  ;;  %358 = vst.msk [vmem:[#allocation3 + $0x1a8] sm:$0x3] %vm312_vm1, %v8254_v3  ;;  %6981 = vmatpush3.bf16.msra.mxu0 %v8313_v2  ;;  %v406_v11 = vld [vmem:[%s8493_s18 + $0x70] sm:$0xff]  ;;  %v407_v12 = vld [vmem:[%s8493_s18 + $0x78] sm:$0xff] }
  0x14   : > { %320 = vst.msk [vmem:[#allocation2 + $0x18] sm:$0x1] %vm319_vm2, %v8254_v3  ;;  %321 = vst.msk [vmem:[#allocation2 + $0x30] sm:$0x1] %vm319_vm2, %v8254_v3  ;;  %7161 = vmatpush3.bf16.msra.mxu1 %v8334_v4  ;;  %6998 = vmatprep.subr.bf16.mxu0 %v8346_v5  ;;  %v408_v14 = vld [vmem:[%s8493_s18 + $0x80] sm:$0xff]  ;;  %v409_v15 = vld [vmem:[%s8493_s18 + $0x88] sm:$0xff] }
  0x15   : > { %322 = vst.msk [vmem:[#allocation2 + $0x48] sm:$0x1] %vm319_vm2, %v8254_v3  ;;  %323 = vst.msk [vmem:[#allocation2 + $0x60] sm:$0x1] %vm319_vm2, %v8254_v3  ;;  %v484_v7 = vld [vmem:[#allocation2 + $0x1] sm:$0xff]  ;;  %7178 = vmatprep.subr.bf16.mxu1 %v8484_v6  ;;  %v394_v16 = vld [vmem:[%s8493_s18 + $0x10] sm:$0xff] }
  0x16   : > { %324 = vst.msk [vmem:[#allocation2 + $0x78] sm:$0x1] %vm319_vm2, %v8254_v3  ;;  %325 = vst.msk [vmem:[#allocation2 + $0x90] sm:$0x1] %vm319_vm2, %v8254_v3  ;;  %v395_v17 = vld [vmem:[%s8493_s18 + $0x18] sm:$0xff]  ;;  %v396_v18 = vld [vmem:[%s8493_s18 + $0x20] sm:$0xff] }
  0x17   : > { %326 = vst.msk [vmem:[#allocation2 + $0xa8] sm:$0x1] %vm319_vm2, %v8254_v3  ;;  %327 = vst.msk [vmem:[#allocation2 + $0xc0] sm:$0x1] %vm319_vm2, %v8254_v3  ;;  %v397_v19 = vld [vmem:[%s8493_s18 + $0x28] sm:$0xff]  ;;  %v410_v20 = vld [vmem:[%s8493_s18 + $0x90] sm:$0xff] }
  0x18   : > { %328 = vst.msk [vmem:[#allocation2 + $0xd8] sm:$0x1] %vm319_vm2, %v8254_v3  ;;  %329 = vst.msk [vmem:[#allocation2 + $0xf0] sm:$0x1] %vm319_vm2, %v8254_v3  ;;  %v411_v21 = vld [vmem:[%s8493_s18 + $0x98] sm:$0xff]  ;;  %v412_v22 = vld [vmem:[%s8493_s18 + $0xa0] sm:$0xff] }
  0x19   : > { %330 = vst.msk [vmem:[#allocation2 + $0x108] sm:$0x1] %vm319_vm2, %v8254_v3  ;;  %331 = vst.msk [vmem:[#allocation2 + $0x120] sm:$0x1] %vm319_vm2, %v8254_v3  ;;  %v485_v10 = vld [vmem:[#allocation2 + $0x9] sm:$0xff]  ;;  %v399_v25 = vld [vmem:[%s8493_s18 + $0x38] sm:$0xff] }
  0x1a   : > { %332 = vst.msk [vmem:[#allocation2 + $0x138] sm:$0x1] %vm319_vm2, %v8254_v3  ;;  %333 = vst.msk [vmem:[#allocation2 + $0x150] sm:$0x1] %vm319_vm2, %v8254_v3  ;;  %v500_v13 = vpack.c.bf16 %v485_v10, %v484_v7  ;;  %v413_v23 = vld [vmem:[%s8493_s18 + $0xa8] sm:$0xff]  ;;  %v398_v24 = vld [vmem:[%s8493_s18 + $0x30] sm:$0xff] }
  0x1b   : > { %334 = vst.msk [vmem:[#allocation2 + $0x168] sm:$0x1] %vm319_vm2, %v8254_v3  ;;  %335 = vst.msk [vmem:[#allocation2 + $0x180] sm:$0x1] %vm319_vm2, %v8254_v3  ;;  %v400_v26 = vld [vmem:[%s8493_s18 + $0x40] sm:$0xff]  ;;  %v401_v27 = vld [vmem:[%s8493_s18 + $0x48] sm:$0xff] }
  0x1c   : > { %336 = vst.msk [vmem:[#allocation2 + $0x29] sm:$0x1] %vm319_vm2, %v8254_v3  ;;  %337 = vst.msk [vmem:[#allocation2 + $0x41] sm:$0x1] %vm319_vm2, %v8254_v3  ;;  %6982 = vmatprep.mubr.msk.bf16.mxu0 %vm309_vm0, %v500_v13  ;;  %v414_v28 = vld [vmem:[%s8493_s18 + $0xb0] sm:$0xff]  ;;  %v415_v30 = vld [vmem:[%s8493_s18 + $0xb8] sm:$0xff] }
  0x1d   : > { %338 = vst.msk [vmem:[#allocation2 + $0x59] sm:$0x1] %vm319_vm2, %v8254_v3  ;;  %339 = vst.msk [vmem:[#allocation2 + $0x71] sm:$0x1] %vm319_vm2, %v8254_v3  ;;  %v416_v31 = vld [vmem:[%s8493_s18 + $0xc0] sm:$0xff]  ;;  %v417_v32 = vld [vmem:[%s8493_s18 + $0xc8] sm:$0xff] }
  0x1e   : > { %340 = vst.msk [vmem:[#allocation2 + $0x89] sm:$0x1] %vm319_vm2, %v8254_v3  ;;  %341 = vst.msk [vmem:[#allocation2 + $0xa1] sm:$0x1] %vm319_vm2, %v8254_v3  ;;  %v402_v35 = vld [vmem:[%s8493_s18 + $0x50] sm:$0xff]  ;;  %v403_v39 = vld [vmem:[%s8493_s18 + $0x58] sm:$0xff] }
  0x1f   : > { %342 = vst.msk [vmem:[#allocation2 + $0xb9] sm:$0x1] %vm319_vm2, %v8254_v3  ;;  %343 = vst.msk [vmem:[#allocation2 + $0xd1] sm:$0x1] %vm319_vm2, %v8254_v3  ;;  %v404_v62 = vld [vmem:[%s8493_s18 + $0x60] sm:$0xff]  ;;  %v405_v63 = vld [vmem:[%s8493_s18 + $0x68] sm:$0xff] }
  0x20   : > { %344 = vst.msk [vmem:[#allocation2 + $0xe9] sm:$0x1] %vm319_vm2, %v8254_v3  ;;  %345 = vst.msk [vmem:[#allocation2 + $0x101] sm:$0x1] %vm319_vm2, %v8254_v3  ;;  %v418_v1 = vld [vmem:[%s8493_s18 + $0xd0] sm:$0xff]  ;;  %v419_v2 = vld [vmem:[%s8493_s18 + $0xd8] sm:$0xff] }
  0x21   : > { %346 = vst.msk [vmem:[#allocation2 + $0x119] sm:$0x1] %vm319_vm2, %v8254_v3  ;;  %347 = vst.msk [vmem:[#allocation2 + $0x131] sm:$0x1] %vm319_vm2, %v8254_v3  ;;  %v420_v4 = vld [vmem:[%s8493_s18 + $0xe0] sm:$0xff] }
  0x22   : > { %348 = vst.msk [vmem:[#allocation2 + $0x149] sm:$0x1] %vm319_vm2, %v8254_v3  ;;  %349 = vst.msk [vmem:[#allocation2 + $0x161] sm:$0x1] %vm319_vm2, %v8254_v3 }
  0x23   : > { %350 = vst.msk [vmem:[#allocation2 + $0x179] sm:$0x1] %vm319_vm2, %v8254_v3  ;;  %351 = vst.msk [vmem:[#allocation2 + $0x191] sm:$0x1] %vm319_vm2, %v8254_v3 }
  0x24   : > { %360 = vst.msk [vmem:[#allocation3 + $0x18] sm:$0x1] %vm319_vm2, %v8254_v3  ;;  %361 = vst.msk [vmem:[#allocation3 + $0x30] sm:$0x1] %vm319_vm2, %v8254_v3 }
  0x25   : > { %362 = vst.msk [vmem:[#allocation3 + $0x48] sm:$0x1] %vm319_vm2, %v8254_v3  ;;  %363 = vst.msk [vmem:[#allocation3 + $0x60] sm:$0x1] %vm319_vm2, %v8254_v3 }
  0x26   : > { %364 = vst.msk [vmem:[#allocation3 + $0x78] sm:$0x1] %vm319_vm2, %v8254_v3  ;;  %365 = vst.msk [vmem:[#allocation3 + $0x90] sm:$0x1] %vm319_vm2, %v8254_v3 }
  0x27   : > { %366 = vst.msk [vmem:[#allocation3 + $0xa8] sm:$0x1] %vm319_vm2, %v8254_v3  ;;  %367 = vst.msk [vmem:[#allocation3 + $0xc0] sm:$0x1] %vm319_vm2, %v8254_v3 }
  0x28   : > { %368 = vst.msk [vmem:[#allocation3 + $0xd8] sm:$0x1] %vm319_vm2, %v8254_v3  ;;  %369 = vst.msk [vmem:[#allocation3 + $0xf0] sm:$0x1] %vm319_vm2, %v8254_v3 }
  0x29   : > { %370 = vst.msk [vmem:[#allocation3 + $0x108] sm:$0x1] %vm319_vm2, %v8254_v3  ;;  %371 = vst.msk [vmem:[#allocation3 + $0x120] sm:$0x1] %vm319_vm2, %v8254_v3 }
  0x2a   : > { %372 = vst.msk [vmem:[#allocation3 + $0x138] sm:$0x1] %vm319_vm2, %v8254_v3  ;;  %373 = vst.msk [vmem:[#allocation3 + $0x150] sm:$0x1] %vm319_vm2, %v8254_v3 }
  0x2b   : > { %374 = vst.msk [vmem:[#allocation3 + $0x168] sm:$0x1] %vm319_vm2, %v8254_v3  ;;  %375 = vst.msk [vmem:[#allocation3 + $0x180] sm:$0x1] %vm319_vm2, %v8254_v3 }
  0x2c   : > { %376 = vst.msk [vmem:[#allocation3 + $0x29] sm:$0x1] %vm319_vm2, %v8254_v3  ;;  %377 = vst.msk [vmem:[#allocation3 + $0x41] sm:$0x1] %vm319_vm2, %v8254_v3 }
  0x2d   : > { %378 = vst.msk [vmem:[#allocation3 + $0x59] sm:$0x1] %vm319_vm2, %v8254_v3  ;;  %379 = vst.msk [vmem:[#allocation3 + $0x71] sm:$0x1] %vm319_vm2, %v8254_v3 }
  0x2e   : > { %380 = vst.msk [vmem:[#allocation3 + $0x89] sm:$0x1] %vm319_vm2, %v8254_v3  ;;  %381 = vst.msk [vmem:[#allocation3 + $0xa1] sm:$0x1] %vm319_vm2, %v8254_v3 }
  0x2f   : > { %382 = vst.msk [vmem:[#allocation3 + $0xb9] sm:$0x1] %vm319_vm2, %v8254_v3  ;;  %383 = vst.msk [vmem:[#allocation3 + $0xd1] sm:$0x1] %vm319_vm2, %v8254_v3 }
  0x30   : > { %384 = vst.msk [vmem:[#allocation3 + $0xe9] sm:$0x1] %vm319_vm2, %v8254_v3  ;;  %385 = vst.msk [vmem:[#allocation3 + $0x101] sm:$0x1] %vm319_vm2, %v8254_v3 }
  0x31   : > { %386 = vst.msk [vmem:[#allocation3 + $0x119] sm:$0x1] %vm319_vm2, %v8254_v3  ;;  %387 = vst.msk [vmem:[#allocation3 + $0x131] sm:$0x1] %vm319_vm2, %v8254_v3 }
  0x32   : > { %388 = vst.msk [vmem:[#allocation3 + $0x149] sm:$0x1] %vm319_vm2, %v8254_v3  ;;  %389 = vst.msk [vmem:[#allocation3 + $0x161] sm:$0x1] %vm319_vm2, %v8254_v3 }
  0x33   : > { %390 = vst.msk [vmem:[#allocation3 + $0x179] sm:$0x1] %vm319_vm2, %v8254_v3  ;;  %391 = vst.msk [vmem:[#allocation3 + $0x191] sm:$0x1] %vm319_vm2, %v8254_v3 }
  0x34   : > { %424 = vst.msk [vmem:[#allocation2 + $0x19] sm:$0xff] %vm309_vm0, %v392_v8  ;;  %425 = vst.msk [vmem:[#allocation2 + $0x21] sm:$0xff] %vm309_vm0, %v393_v9 }
  0x35   : > { %438 = vst.msk [vmem:[#allocation2 + $0xc1] sm:$0xff] %vm309_vm0, %v406_v11  ;;  %439 = vst.msk [vmem:[#allocation2 + $0xc9] sm:$0xff] %vm309_vm0, %v407_v12 }
  0x36   : > { %440 = vst.msk [vmem:[#allocation2 + $0xd9] sm:$0xff] %vm309_vm0, %v408_v14  ;;  %441 = vst.msk [vmem:[#allocation2 + $0xe1] sm:$0xff] %vm309_vm0, %v409_v15 }
  0x37   : > { %426 = vst.msk [vmem:[#allocation2 + $0x31] sm:$0xff] %vm309_vm0, %v394_v16  ;;  %427 = vst.msk [vmem:[#allocation2 + $0x39] sm:$0xff] %vm309_vm0, %v395_v17 }
  0x38   : > { %428 = vst.msk [vmem:[#allocation2 + $0x49] sm:$0xff] %vm309_vm0, %v396_v18  ;;  %429 = vst.msk [vmem:[#allocation2 + $0x51] sm:$0xff] %vm309_vm0, %v397_v19 }
  0x39   : > { %442 = vst.msk [vmem:[#allocation2 + $0xf1] sm:$0xff] %vm309_vm0, %v410_v20  ;;  %443 = vst.msk [vmem:[#allocation2 + $0xf9] sm:$0xff] %vm309_vm0, %v411_v21  ;;  %v456_v20 = vld [vmem:[#allocation2] sm:$0xff]  ;;  %v457_v21 = vld [vmem:[#allocation2 + $0x8] sm:$0xff] }
  0x3a   : > { %444 = vst.msk [vmem:[#allocation2 + $0x109] sm:$0xff] %vm309_vm0, %v412_v22  ;;  %445 = vst.msk [vmem:[#allocation2 + $0x111] sm:$0xff] %vm309_vm0, %v413_v23 }
  0x3b   : > { %430 = vst.msk [vmem:[#allocation2 + $0x61] sm:$0xff] %vm309_vm0, %v398_v24  ;;  %431 = vst.msk [vmem:[#allocation2 + $0x69] sm:$0xff] %vm309_vm0, %v399_v25  ;;  %v486_v33 = vld [vmem:[#allocation2 + $0x19] sm:$0xff]  ;;  %v487_v34 = vld [vmem:[#allocation2 + $0x21] sm:$0xff] }
  0x3c   : > { %432 = vst.msk [vmem:[#allocation2 + $0x79] sm:$0xff] %vm309_vm0, %v400_v26  ;;  %433 = vst.msk [vmem:[#allocation2 + $0x81] sm:$0xff] %vm309_vm0, %v401_v27  ;;  %v8545_v36 = vpack.c.bf16 %v487_v34, %v486_v33  ;;  %v2180_v37 = vld [vmem:[#allocation2 + $0xc1] sm:$0xff]  ;;  %v2181_v38 = vld [vmem:[#allocation2 + $0xc9] sm:$0xff]  ;;  %v472_v27 = vpack.c.bf16 %v457_v21, %v456_v20 }
  0x3d   : > { %446 = vst.msk [vmem:[#allocation2 + $0x121] sm:$0xff] %vm309_vm0, %v414_v28  ;;  %447 = vst.msk [vmem:[#allocation2 + $0x129] sm:$0xff] %vm309_vm0, %v415_v30  ;;  %v8549_v40 = vpack.c.bf16 %v2181_v38, %v2180_v37  ;;  %v2182_v41 = vld [vmem:[#allocation2 + $0xd9] sm:$0xff]  ;;  %v2183_v42 = vld [vmem:[#allocation2 + $0xe1] sm:$0xff] }
  0x3e   : > { %448 = vst.msk [vmem:[#allocation2 + $0x139] sm:$0xff] %vm309_vm0, %v416_v31  ;;  %449 = vst.msk [vmem:[#allocation2 + $0x141] sm:$0xff] %vm309_vm0, %v417_v32  ;;  %v488_v43 = vld [vmem:[#allocation2 + $0x31] sm:$0xff]  ;;  %6983 = vmatmul.mubr.msk.bf16.vlgmr.msra.gmra.mrb[0].mxu0 %vm309_vm0, %v8545_v36  ;;  %v8554_v44 = vpack.c.bf16 %v2183_v42, %v2182_v41  ;;  %v489_v45 = vld [vmem:[#allocation2 + $0x39] sm:$0xff] }
  0x3f   : > { %434 = vst.msk [vmem:[#allocation2 + $0x91] sm:$0xff] %vm309_vm0, %v402_v35  ;;  %435 = vst.msk [vmem:[#allocation2 + $0x99] sm:$0xff] %vm309_vm0, %v403_v39  ;;  %v490_v46 = vld [vmem:[#allocation2 + $0x49] sm:$0xff]  ;;  %6999 = vmatpush3.bf16.msra.mxu0 %v8346_v5  ;;  %7162 = vmatprep.mubr.msk.bf16.mxu1 %vm309_vm0, %v8549_v40  ;;  %v8562_v48 = vpack.c.bf16 %v489_v45, %v488_v43  ;;  %v491_v49 = vld [vmem:[#allocation2 + $0x51] sm:$0xff] }
  0x40   : > { %v2184_v50 = vld [vmem:[#allocation2 + $0xf1] sm:$0xff]  ;;  %v2185_v51 = vld [vmem:[#allocation2 + $0xf9] sm:$0xff]  ;;  %7163 = vmatmul.mubr.msk.bf16.vlgmr.msra.gmra.mrb[0].mxu1 %vm309_vm0, %v8554_v44  ;;  %7000 = vmatprep.subr.bf16.mxu0 %v8179_v29  ;;  %v8576_v58 = vpack.c.bf16 %v491_v49, %v490_v46  ;;  %436 = vst.msk [vmem:[#allocation2 + $0xa9] sm:$0xff] %vm309_vm0, %v404_v62  ;;  %437 = vst.msk [vmem:[#allocation2 + $0xb1] sm:$0xff] %vm309_vm0, %v405_v63 }
  0x41   : > { %v8566_v52 = vpack.c.bf16 %v2185_v51, %v2184_v50  ;;  %6986 = vmatprep.mubr.msk.bf16.mxu0 %vm309_vm0, %v8562_v48  ;;  %v2186_v56 = vld [vmem:[#allocation2 + $0x109] sm:$0xff]  ;;  %v2187_v57 = vld [vmem:[#allocation2 + $0x111] sm:$0xff]  ;;  %7179 = vmatpush3.bf16.msra.mxu1 %v8484_v6  ;;  %450 = vst.msk [vmem:[#allocation2 + $0x151] sm:$0xff] %vm309_vm0, %v418_v1  ;;  %451 = vst.msk [vmem:[#allocation2 + $0x159] sm:$0xff] %vm309_vm0, %v419_v2 }
  0x42   : > { %v492_v53 = vld [vmem:[#allocation2 + $0x61] sm:$0xff]  ;;  %v493_v54 = vld [vmem:[#allocation2 + $0x69] sm:$0xff]  ;;  %7180 = vmatprep.subr.bf16.mxu1 %v8181_v47  ;;  %v8584_v0 = vpack.c.bf16 %v2187_v57, %v2186_v56  ;;  %452 = vst.msk [vmem:[#allocation2 + $0x169] sm:$0xff] %vm309_vm0, %v420_v4  ;;  %v458_v31 = vld [vmem:[#allocation2 + $0x18] sm:$0xff] }
  0x43   : > { %7166 = vmatprep.mubr.msk.bf16.mxu1 %vm309_vm0, %v8566_v52  ;;  %v8580_v61 = vpack.c.bf16 %v493_v54, %v492_v53  ;;  %7001 = vmatpush3.bf16.msra.mxu0 %v8179_v29  ;;  %v421_v5 = vld [vmem:[%s8493_s18 + $0xe8] sm:$0xff]  ;;  %v494_v6 = vld [vmem:[#allocation2 + $0x79] sm:$0xff]  ;;  %v460_v33 = vld [vmem:[#allocation2 + $0x30] sm:$0xff] }
  0x44   : > { %v2188_v59 = vld [vmem:[#allocation2 + $0x121] sm:$0xff]  ;;  %v2189_v60 = vld [vmem:[#allocation2 + $0x129] sm:$0xff]  ;;  %7018 = vmatprep.subr.bf16.mxu0 %v8571_v55  ;;  %453 = vst.msk [vmem:[#allocation2 + $0x171] sm:$0xff] %vm309_vm0, %v421_v5  ;;  %v461_v34 = vld [vmem:[#allocation2 + $0x38] sm:$0xff] }
  0x45   : > { %v8591_v3 = vpack.c.bf16 %v2189_v60, %v2188_v59  ;;  %7181 = vmatpush3.bf16.msra.mxu1 %v8181_v47  ;;  %v495_v7 = vld [vmem:[#allocation2 + $0x81] sm:$0xff]  ;;  %v2190_v10 = vld [vmem:[#allocation2 + $0x139] sm:$0xff]  ;;  %v2156_v39 = vld [vmem:[#allocation2 + $0xf0] sm:$0xff]  ;;  %v8641_v42 = vpack.c.bf16 %v461_v34, %v460_v33 }
  0x46   : > { %6987 = vmatmul.mubr.msk.bf16.gmra.mrb[4].mxu0 %vm309_vm0, %v8576_v58  ;;  %v496_v8 = vld [vmem:[#allocation2 + $0x91] sm:$0xff]  ;;  %v497_v9 = vld [vmem:[#allocation2 + $0x99] sm:$0xff]  ;;  %v2191_v11 = vld [vmem:[#allocation2 + $0x141] sm:$0xff]  ;;  %v8607_v12 = vpack.c.bf16 %v495_v7, %v494_v6 }
  0x47   : > { %6990 = vmatprep.mubr.msk.bf16.mxu0 %vm309_vm0, %v8580_v61  ;;  %v8609_v13 = vpack.c.bf16 %v497_v9, %v496_v8  ;;  %v8611_v14 = vpack.c.bf16 %v2191_v11, %v2190_v10  ;;  %v498_v18 = vld [vmem:[#allocation2 + $0xa9] sm:$0xff]  ;;  %v499_v19 = vld [vmem:[#allocation2 + $0xb1] sm:$0xff]  ;;  %v2152_v25 = vld [vmem:[#allocation2 + $0xc0] sm:$0xff] }
  0x48   : > { %7167 = vmatmul.mubr.msk.bf16.gmra.mrb[4].mxu1 %vm309_vm0, %v8584_v0  ;;  %v2192_v15 = vld [vmem:[#allocation2 + $0x151] sm:$0xff]  ;;  %v2193_v16 = vld [vmem:[#allocation2 + $0x159] sm:$0xff]  ;;  %v8623_v24 = vpack.c.bf16 %v499_v19, %v498_v18  ;;  %v2153_v26 = vld [vmem:[#allocation2 + $0xc8] sm:$0xff] }
  0x49   : > { %7170 = vmatprep.mubr.msk.bf16.mxu1 %vm309_vm0, %v8591_v3  ;;  %v8613_v17 = vpack.c.bf16 %v2193_v16, %v2192_v15  ;;  %v2194_v22 = vld [vmem:[#allocation2 + $0x169] sm:$0xff]  ;;  %v8184_v29 = vld [vmem:[%s10012_s2 + $0x20] sm:$0xff]   ;;  %v8630_v30 = vpack.c.bf16 %v2153_v26, %v2152_v25  ;;  %v2154_v35 = vld [vmem:[#allocation2 + $0xd8] sm:$0xff] }
  0x4a   : > { %7198 = vmatprep.subr.bf16.mxu1 %v8184_v29  ;;  %v459_v32 = vld [vmem:[#allocation2 + $0x20] sm:$0xff]  ;;  %v2157_v41 = vld [vmem:[#allocation2 + $0xf8] sm:$0xff]  ;;  %v8183_v45 = vld [vmem:[%s10012_s2 + $0x28] sm:$0xff]  }
  0x4b   : > { %v2195_v23 = vld [vmem:[#allocation2 + $0x171] sm:$0xff]  ;;  %v2155_v37 = vld [vmem:[#allocation2 + $0xe0] sm:$0xff]  ;;  %v8639_v38 = vpack.c.bf16 %v459_v32, %v458_v31  ;;  %v8648_v46 = vpack.c.bf16 %v2157_v41, %v2156_v39  ;;  %v8185_v47 = vld [vmem:[%s10012_s2 + $0x28] sm:$0xff]  }
  0x4c   : > { %v8625_v28 = vpack.c.bf16 %v2195_v23, %v2194_v22  ;;  %v8643_v43 = vpack.c.bf16 %v2155_v37, %v2154_v35  ;;  %v462_v49 = vld [vmem:[#allocation2 + $0x48] sm:$0xff]  ;;  %v463_v50 = vld [vmem:[#allocation2 + $0x50] sm:$0xff]  ;;  %v464_v53 = vld [vmem:[#allocation2 + $0x60] sm:$0xff] }
  0x4d   : > { %v2158_v51 = vld [vmem:[#allocation2 + $0x108] sm:$0xff]  ;;  %v8663_v56 = vld [vmem:[%s10012_s2 + $0x30] sm:$0xff]   ;;  %v2160_v57 = vld [vmem:[#allocation2 + $0x120] sm:$0xff]  ;;  %v8667_v60 = vpack.c.bf16 %v463_v50, %v462_v49 }
  0x4e   : > { %6991 = vmatmul.mubr.msk.bf16.gmra.mrb[8].mxu0 %vm309_vm0, %v8607_v12  ;;  %v465_v54 = vld [vmem:[#allocation2 + $0x68] sm:$0xff]  ;;  %v8672_v62 = vld [vmem:[%s10012_s2 + $0x30] sm:$0xff]   ;;  %v466_v2 = vld [vmem:[#allocation2 + $0x78] sm:$0xff] }
  0x4f   : > { %6994 = vmatprep.mubr.msk.bf16.mxu0 %vm309_vm0, %v8609_v13  ;;  %v2161_v59 = vld [vmem:[#allocation2 + $0x128] sm:$0xff]  ;;  %v8674_v63 = vpack.c.bf16 %v465_v54, %v464_v53  ;;  %v467_v4 = vld [vmem:[#allocation2 + $0x80] sm:$0xff]  ;;  %v422_v6 = vld [vmem:[%s8493_s18 + $0xf0] sm:$0xff] }
  0x50   : > { %7171 = vmatmul.mubr.msk.bf16.gmra.mrb[8].mxu1 %vm309_vm0, %v8611_v14  ;;  %v8679_v5 = vpack.c.bf16 %v2161_v59, %v2160_v57  ;;  %v423_v7 = vld [vmem:[%s8493_s18 + $0xf8] sm:$0xff]  ;;  %v2163_v9 = vld [vmem:[#allocation2 + $0x140] sm:$0xff]  ;;  %v468_v10 = vld [vmem:[#allocation2 + $0x90] sm:$0xff]  ;;  %454 = vst.msk [vmem:[#allocation2 + $0x181] sm:$0xff] %vm309_vm0, %v422_v6  ;;  %v8694_v16 = vpack.c.bf16 %v467_v4, %v466_v2 }
  0x51   : > { %7174 = vmatprep.mubr.msk.bf16.mxu1 %vm309_vm0, %v8613_v17  ;;  %v2162_v8 = vld [vmem:[#allocation2 + $0x138] sm:$0xff]  ;;  %455 = vst.msk [vmem:[#allocation2 + $0x189] sm:$0xff] %vm309_vm0, %v423_v7  ;;  %v2164_v15 = vld [vmem:[#allocation2 + $0x150] sm:$0xff]  ;;  %v470_v22 = vld [vmem:[#allocation2 + $0xa8] sm:$0xff] }
  0x52   : > { %v469_v11 = vld [vmem:[#allocation2 + $0x98] sm:$0xff]  ;;  %v8698_v20 = vpack.c.bf16 %v2163_v9, %v2162_v8  ;;  %v471_v23 = vld [vmem:[#allocation2 + $0xb0] sm:$0xff]  ;;  %v2166_v25 = vld [vmem:[#allocation2 + $0x168] sm:$0xff] }
  0x53   : > { %v2165_v18 = vld [vmem:[#allocation2 + $0x158] sm:$0xff]  ;;  %v8696_v19 = vpack.c.bf16 %v469_v11, %v468_v10  ;;  %v2167_v26 = vld [vmem:[#allocation2 + $0x170] sm:$0xff]  ;;  %v2474_v31 = vld [vmem:[#allocation2 + $0xc2] sm:$0xff]  ;;  %v8710_v33 = vpack.c.bf16 %v471_v23, %v470_v22 }
  0x54   : > { %v8700_v21 = vpack.c.bf16 %v2165_v18, %v2164_v15  ;;  %v2475_v32 = vld [vmem:[#allocation2 + $0xca] sm:$0xff]  ;;  %v8712_v35 = vpack.c.bf16 %v2167_v26, %v2166_v25  ;;  %v781_v37 = vld [vmem:[#allocation2 + $0x1a] sm:$0xff]  ;;  %v782_v39 = vld [vmem:[#allocation2 + $0x22] sm:$0xff] }
  0x55   : > { %v8714_v41 = vpack.c.bf16 %v2475_v32, %v2474_v31  ;;  %v2476_v49 = vld [vmem:[#allocation2 + $0xda] sm:$0xff]  ;;  %v2477_v50 = vld [vmem:[#allocation2 + $0xe2] sm:$0xff]  ;;  %v8723_v54 = vpack.c.bf16 %v782_v39, %v781_v37  ;;  %v785_v4 = vld [vmem:[#allocation2 + $0x4a] sm:$0xff] }
  0x56   : > { %6995 = vmatmul.mubr.msk.bf16.gmra.mrb[12].mxu0 %vm309_vm0, %v8623_v24  ;;  %v2479_v53 = vld [vmem:[#allocation2 + $0xfa] sm:$0xff]  ;;  %v8730_v59 = vpack.c.bf16 %v2477_v50, %v2476_v49  ;;  %v786_v6 = vld [vmem:[#allocation2 + $0x52] sm:$0xff]  ;;  %v787_v8 = vld [vmem:[#allocation2 + $0x62] sm:$0xff] }
  0x57   : > { %7002 = vmatprep.mubr.msk.bf16.mxu0 %vm309_vm0, %v472_v27  ;;  %v779_v27 = vld [vmem:[#allocation2 + $0x2] sm:$0xff]  ;;  %v8189_v2 = vld [vmem:[%s10012_s2 + $0x38] sm:$0xff]   ;;  %v788_v9 = vld [vmem:[#allocation2 + $0x6a] sm:$0xff] }
  0x58   : > { %7175 = vmatmul.mubr.msk.bf16.gmra.mrb[12].mxu1 %vm309_vm0, %v8625_v28  ;;  %v8190_v10 = vld [vmem:[%s10012_s2 + $0x40] sm:$0xff]   ;;  %v2480_v11 = vld [vmem:[#allocation2 + $0x10a] sm:$0xff]  ;;  %v2481_v15 = vld [vmem:[#allocation2 + $0x112] sm:$0xff]  ;;  %v8755_v25 = vpack.c.bf16 %v788_v9, %v787_v8 }
  0x59   : > { %7182 = vmatprep.mubr.msk.bf16.mxu1 %vm309_vm0, %v8630_v30  ;;  %v2482_v18 = vld [vmem:[#allocation2 + $0x122] sm:$0xff]  ;;  %v2483_v22 = vld [vmem:[#allocation2 + $0x12a] sm:$0xff]  ;;  %v8757_v26 = vpack.c.bf16 %v2481_v15, %v2480_v11  ;;  %v791_v32 = vld [vmem:[#allocation2 + $0x92] sm:$0xff] }
  0x5a   : > { %v8192_v23 = vld [vmem:[%s10012_s2 + $0x40] sm:$0xff]   ;;  %v8759_v31 = vpack.c.bf16 %v2483_v22, %v2482_v18  ;;  %v2486_v39 = vld [vmem:[#allocation2 + $0x152] sm:$0xff]  ;;  %v8191_v9 = vld [vmem:[%s10012_s2 + $0x48] sm:$0xff]  }
  0x5b   : > { %v2485_v37 = vld [vmem:[#allocation2 + $0x142] sm:$0xff] }
  0x5c   : > { %v8193_v11 = vld [vmem:[%s10012_s2 + $0x48] sm:$0xff]   ;;  %v2666_v15 = vld [vmem:[#allocation2 + $0x180] sm:$0xff] }
  0x5d   : > { %v2667_v18 = vld [vmem:[#allocation2 + $0x188] sm:$0xff] }
  0x5e   : > { %7003 = vmatmul.mubr.msk.bf16.vlgmr.msra.gmra.mrb[0].mxu0 %vm309_vm0, %v8639_v38  ;;  %v8833_v22 = vpack.c.bf16 %v2667_v18, %v2666_v15  ;;  %v3370_v15 = vld [vmem:[#allocation2 + $0x159] sm:$0xff] }
  0x5f   : > { %7019 = vmatpush3.bf16.msra.mxu0 %v8571_v55  ;;  %7006 = vmatprep.mubr.msk.bf16.mxu0 %vm309_vm0, %v8641_v42  ;;  %v2159_v55 = vld [vmem:[#allocation2 + $0x110] sm:$0xff] }
  0x60   : > { %7183 = vmatmul.mubr.msk.bf16.vlgmr.msra.gmra.mrb[0].mxu1 %vm309_vm0, %v8643_v43  ;;  %7020 = vmatprep.subr.bf16.mxu0 %v8183_v45  ;;  %v8676_v1 = vpack.c.bf16 %v2159_v55, %v2158_v51  ;;  %v2478_v51 = vld [vmem:[#allocation2 + $0xf2] sm:$0xff] }
  0x61   : > { %7186 = vmatprep.mubr.msk.bf16.mxu1 %vm309_vm0, %v8648_v46  ;;  %7199 = vmatpush3.bf16.msra.mxu1 %v8184_v29  ;;  %v780_v29 = vld [vmem:[#allocation2 + $0xa] sm:$0xff]  ;;  %v8187_v55 = vld [vmem:[%s10012_s2 + $0x38] sm:$0xff]   ;;  %v8735_v7 = vpack.c.bf16 %v2479_v53, %v2478_v51 }
  0x62   : > { %7200 = vmatprep.subr.bf16.mxu1 %v8185_v47  ;;  %v795_v34 = vpack.c.bf16 %v780_v29, %v779_v27  ;;  %v789_v27 = vld [vmem:[#allocation2 + $0x7a] sm:$0xff]  ;;  %v790_v29 = vld [vmem:[#allocation2 + $0x82] sm:$0xff]  ;;  %v793_v51 = vld [vmem:[#allocation2 + $0xaa] sm:$0xff] }
  0x63   : > { %7021 = vmatpush3.bf16.msra.mxu0 %v8183_v45  ;;  %v783_v45 = vld [vmem:[#allocation2 + $0x32] sm:$0xff] }
  0x64   : > { %7038 = vmatprep.subr.bf16.mxu0 %v8663_v56  ;;  %v794_v53 = vld [vmem:[#allocation2 + $0xb2] sm:$0xff] }
  0x65   : > { %7201 = vmatpush3.bf16.msra.mxu1 %v8185_v47  ;;  %v784_v47 = vld [vmem:[#allocation2 + $0x3a] sm:$0xff] }
  0x66   : > { %7007 = vmatmul.mubr.msk.bf16.gmra.mrb[4].mxu0 %vm309_vm0, %v8667_v60  ;;  %7218 = vmatprep.subr.bf16.mxu1 %v8672_v62  ;;  %v8728_v57 = vpack.c.bf16 %v784_v47, %v783_v45  ;;  %v2487_v45 = vld [vmem:[#allocation2 + $0x15a] sm:$0xff]  ;;  %v8769_v47 = vpack.c.bf16 %v790_v29, %v789_v27 }
  0x67   : > { %7010 = vmatprep.mubr.msk.bf16.mxu0 %vm309_vm0, %v8674_v63  ;;  %v8197_v27 = vld [vmem:[%s10012_s2 + $0x58] sm:$0xff]  }
  0x68   : > { %7187 = vmatmul.mubr.msk.bf16.gmra.mrb[4].mxu1 %vm309_vm0, %v8676_v1 }
  0x69   : > { %7190 = vmatprep.mubr.msk.bf16.mxu1 %vm309_vm0, %v8679_v5 }
  0x6e   : > { %7011 = vmatmul.mubr.msk.bf16.gmra.mrb[8].mxu0 %vm309_vm0, %v8694_v16 }
  0x6f   : > { %7014 = vmatprep.mubr.msk.bf16.mxu0 %vm309_vm0, %v8696_v19 }
  0x70   : > { %7191 = vmatmul.mubr.msk.bf16.gmra.mrb[8].mxu1 %vm309_vm0, %v8698_v20 }
  0x71   : > { %7194 = vmatprep.mubr.msk.bf16.mxu1 %vm309_vm0, %v8700_v21 }
  0x76   : > { %7015 = vmatmul.mubr.msk.bf16.gmra.mrb[12].mxu0 %vm309_vm0, %v8710_v33 }
  0x77   : > { %7022 = vmatprep.mubr.msk.bf16.mxu0 %vm309_vm0, %v795_v34  ;;  %v792_v34 = vld [vmem:[#allocation2 + $0x9a] sm:$0xff] }
  0x78   : > { %7195 = vmatmul.mubr.msk.bf16.gmra.mrb[12].mxu1 %vm309_vm0, %v8712_v35  ;;  %v8771_v49 = vpack.c.bf16 %v792_v34, %v791_v32  ;;  %v3365_v32 = vld [vmem:[#allocation2 + $0x121] sm:$0xff]  ;;  %v3366_v34 = vld [vmem:[#allocation2 + $0x129] sm:$0xff] }
  0x79   : > { %7202 = vmatprep.mubr.msk.bf16.mxu1 %vm309_vm0, %v8714_v41 }
  0x7e   : > { %7023 = vmatmul.mubr.msk.bf16.vlgmr.msra.gmra.mrb[0].mxu0 %vm309_vm0, %v8723_v54 }
  0x7f   : > { %7039 = vmatpush3.bf16.msra.mxu0 %v8663_v56  ;;  %7026 = vmatprep.mubr.msk.bf16.mxu0 %vm309_vm0, %v8728_v57  ;;  %v8753_v56 = vpack.c.bf16 %v786_v6, %v785_v4  ;;  %v2489_v4 = vld [vmem:[#allocation2 + $0x172] sm:$0xff]  ;;  %v8785_v6 = vpack.c.bf16 %v794_v53, %v793_v51  ;;  %v1677_v53 = vld [vmem:[#allocation2 + $0x81] sm:$0xff] }
  0x80   : > { %7203 = vmatmul.mubr.msk.bf16.vlgmr.msra.gmra.mrb[0].mxu1 %vm309_vm0, %v8730_v59  ;;  %7040 = vmatprep.subr.bf16.mxu0 %v8187_v55  ;;  %v1676_v51 = vld [vmem:[#allocation2 + $0x79] sm:$0xff] }
  0x81   : > { %7206 = vmatprep.mubr.msk.bf16.mxu1 %vm309_vm0, %v8735_v7  ;;  %7219 = vmatpush3.bf16.msra.mxu1 %v8672_v62  ;;  %v2484_v62 = vld [vmem:[#allocation2 + $0x13a] sm:$0xff] }
  0x82   : > { %7220 = vmatprep.subr.bf16.mxu1 %v8189_v2  ;;  %v8773_v50 = vpack.c.bf16 %v2485_v37, %v2484_v62 }
  0x83   : > { %7041 = vmatpush3.bf16.msra.mxu0 %v8187_v55  ;;  %v8775_v55 = vpack.c.bf16 %v2487_v45, %v2486_v39  ;;  %v3379_v39 = vpack.c.bf16 %v3366_v34, %v3365_v32  ;;  %v8209_v45 = vld [vmem:[%s10012_s2 + $0x88] sm:$0xff]  }
  0x84   : > { %7058 = vmatprep.subr.bf16.mxu0 %v8190_v10 }
  0x85   : > { %7221 = vmatpush3.bf16.msra.mxu1 %v8189_v2  ;;  %v2488_v2 = vld [vmem:[#allocation2 + $0x16a] sm:$0xff] }
  0x86   : > { %7027 = vmatmul.mubr.msk.bf16.gmra.mrb[4].mxu0 %vm309_vm0, %v8753_v56  ;;  %7238 = vmatprep.subr.bf16.mxu1 %v8192_v23  ;;  %v8787_v8 = vpack.c.bf16 %v2489_v4, %v2488_v2  ;;  %v1678_v2 = vld [vmem:[#allocation2 + $0x91] sm:$0xff]  ;;  %v1679_v4 = vld [vmem:[#allocation2 + $0x99] sm:$0xff] }
  0x87   : > { %7030 = vmatprep.mubr.msk.bf16.mxu0 %vm309_vm0, %v8755_v25  ;;  %v1690_v18 = vpack.c.bf16 %v1679_v4, %v1678_v2 }
  0x88   : > { %7207 = vmatmul.mubr.msk.bf16.gmra.mrb[4].mxu1 %vm309_vm0, %v8757_v26 }
  0x89   : > { %7210 = vmatprep.mubr.msk.bf16.mxu1 %vm309_vm0, %v8759_v31 }
  0x8e   : > { %7031 = vmatmul.mubr.msk.bf16.gmra.mrb[8].mxu0 %vm309_vm0, %v8769_v47 }
  0x8f   : > { %7034 = vmatprep.mubr.msk.bf16.mxu0 %vm309_vm0, %v8771_v49 }
  0x90   : > { %7211 = vmatmul.mubr.msk.bf16.gmra.mrb[8].mxu1 %vm309_vm0, %v8773_v50 }
  0x91   : > { %7214 = vmatprep.mubr.msk.bf16.mxu1 %vm309_vm0, %v8775_v55 }
  0x96   : > { %7035 = vmatmul.mubr.msk.bf16.gmra.mrb[12].mxu0 %vm309_vm0, %v8785_v6 }
  0x97   : > { %7042 = vmatprep.mubr.msk.bf16.mxu0 %vm309_vm0, %v8639_v38  ;;  %v8194_v38 = vld [vmem:[%s10012_s2 + $0x50] sm:$0xff]  }
  0x98   : > { %7215 = vmatmul.mubr.msk.bf16.gmra.mrb[12].mxu1 %vm309_vm0, %v8787_v8 }
  0x99   : > { %7222 = vmatprep.mubr.msk.bf16.mxu1 %vm309_vm0, %v8643_v43 }
  0x9e   : > { %7043 = vmatmul.mubr.msk.bf16.vlgmr.msra.gmra.mrb[0].mxu0 %vm309_vm0, %v8641_v42 }
  0x9f   : > { %7059 = vmatpush3.bf16.msra.mxu0 %v8190_v10  ;;  %7046 = vmatprep.mubr.msk.bf16.mxu0 %vm309_vm0, %v8667_v60  ;;  %v8196_v10 = vld [vmem:[%s10012_s2 + $0x50] sm:$0xff]  }
  0xa0   : > { %7223 = vmatmul.mubr.msk.bf16.vlgmr.msra.gmra.mrb[0].mxu1 %vm309_vm0, %v8648_v46  ;;  %7060 = vmatprep.subr.bf16.mxu0 %v8191_v9 }
  0xa1   : > { %7226 = vmatprep.mubr.msk.bf16.mxu1 %vm309_vm0, %v8676_v1  ;;  %7239 = vmatpush3.bf16.msra.mxu1 %v8192_v23  ;;  %v8195_v23 = vld [vmem:[%s10012_s2 + $0x58] sm:$0xff]  }
  0xa2   : > { %7240 = vmatprep.subr.bf16.mxu1 %v8193_v11 }
  0xa3   : > { %7061 = vmatpush3.bf16.msra.mxu0 %v8191_v9  ;;  %v3367_v9 = vld [vmem:[#allocation2 + $0x139] sm:$0xff] }
  0xa4   : > { %7078 = vmatprep.subr.bf16.mxu0 %v8194_v38 }
  0xa5   : > { %7241 = vmatpush3.bf16.msra.mxu1 %v8193_v11  ;;  %v3368_v11 = vld [vmem:[#allocation2 + $0x141] sm:$0xff] }
  0xa6   : > { %7047 = vmatmul.mubr.msk.bf16.gmra.mrb[4].mxu0 %vm309_vm0, %v8674_v63  ;;  %7258 = vmatprep.subr.bf16.mxu1 %v8196_v10 }
  0xa7   : > { %7050 = vmatprep.mubr.msk.bf16.mxu0 %vm309_vm0, %v8694_v16 }
  0xa8   : > { %7227 = vmatmul.mubr.msk.bf16.gmra.mrb[4].mxu1 %vm309_vm0, %v8679_v5 }
  0xa9   : > { %7230 = vmatprep.mubr.msk.bf16.mxu1 %vm309_vm0, %v8698_v20 }
  0xae   : > { %7051 = vmatmul.mubr.msk.bf16.gmra.mrb[8].mxu0 %vm309_vm0, %v8696_v19 }
  0xaf   : > { %7054 = vmatprep.mubr.msk.bf16.mxu0 %vm309_vm0, %v8710_v33 }
  0xb0   : > { %7231 = vmatmul.mubr.msk.bf16.gmra.mrb[8].mxu1 %vm309_vm0, %v8700_v21 }
  0xb1   : > { %7234 = vmatprep.mubr.msk.bf16.mxu1 %vm309_vm0, %v8712_v35 }
  0xb6   : > { %7055 = vmatmul.mubr.msk.bf16.gmra.mrb[12].mxu0 %vm309_vm0, %v8630_v30 }
  0xb7   : > { %7062 = vmatprep.mubr.msk.bf16.mxu0 %vm309_vm0, %v8545_v36  ;;  %v8198_v36 = vld [vmem:[%s10012_s2 + $0x60] sm:$0xff]  }
  0xb8   : > { %7235 = vmatmul.mubr.msk.bf16.gmra.mrb[12].mxu1 %vm309_vm0, %v8833_v22 }
  0xb9   : > { %7242 = vmatprep.mubr.msk.bf16.mxu1 %vm309_vm0, %v8554_v44  ;;  %v8200_v44 = vld [vmem:[%s10012_s2 + $0x60] sm:$0xff]  }
  0xbe   : > { %7063 = vmatmul.mubr.msk.bf16.vlgmr.msra.gmra.mrb[0].mxu0 %vm309_vm0, %v8562_v48  ;;  %v2843_v48 = vld [vmem:[#allocation2 + $0x181] sm:$0xff] }
  0xbf   : > { %7079 = vmatpush3.bf16.msra.mxu0 %v8194_v38  ;;  %7066 = vmatprep.mubr.msk.bf16.mxu0 %vm309_vm0, %v8576_v58  ;;  %v1689_v38 = vpack.c.bf16 %v1677_v53, %v1676_v51 }
  0xc0   : > { %7243 = vmatmul.mubr.msk.bf16.vlgmr.msra.gmra.mrb[0].mxu1 %vm309_vm0, %v8566_v52  ;;  %7080 = vmatprep.subr.bf16.mxu0 %v8195_v23  ;;  %v2844_v52 = vld [vmem:[#allocation2 + $0x189] sm:$0xff] }
  0xc1   : > { %7246 = vmatprep.mubr.msk.bf16.mxu1 %vm309_vm0, %v8584_v0  ;;  %7259 = vmatpush3.bf16.msra.mxu1 %v8196_v10  ;;  %v8879_v58 = vpack.c.bf16 %v2844_v52, %v2843_v48  ;;  %v8202_v0 = vld [vmem:[%s10012_s2 + $0x70] sm:$0xff]  }
  0xc2   : > { %7260 = vmatprep.subr.bf16.mxu1 %v8197_v27  ;;  %v3369_v10 = vld [vmem:[#allocation2 + $0x151] sm:$0xff]  ;;  %v1683_v48 = vld [vmem:[#allocation2 + $0xc9] sm:$0xff] }
  0xc3   : > { %7081 = vmatpush3.bf16.msra.mxu0 %v8195_v23  ;;  %v3381_v23 = vpack.c.bf16 %v3370_v15, %v3369_v10  ;;  %v3371_v52 = vld [vmem:[#allocation2 + $0x169] sm:$0xff] }
  0xc4   : > { %7098 = vmatprep.subr.bf16.mxu0 %v8198_v36 }
  0xc5   : > { %7261 = vmatpush3.bf16.msra.mxu1 %v8197_v27  ;;  %v1680_v27 = vld [vmem:[#allocation2 + $0xa9] sm:$0xff] }
  0xc6   : > { %7067 = vmatmul.mubr.msk.bf16.gmra.mrb[4].mxu0 %vm309_vm0, %v8580_v61  ;;  %7278 = vmatprep.subr.bf16.mxu1 %v8200_v44  ;;  %v8199_v61 = vld [vmem:[%s10012_s2 + $0x68] sm:$0xff]  }
  0xc7   : > { %7070 = vmatprep.mubr.msk.bf16.mxu0 %vm309_vm0, %v8607_v12  ;;  %v3020_v12 = vld [vmem:[#allocation2 + $0x182] sm:$0xff] }
  0xc8   : > { %7247 = vmatmul.mubr.msk.bf16.gmra.mrb[4].mxu1 %vm309_vm0, %v8591_v3  ;;  %v8204_v3 = vld [vmem:[%s10012_s2 + $0x70] sm:$0xff]  }
  0xc9   : > { %7250 = vmatprep.mubr.msk.bf16.mxu1 %vm309_vm0, %v8611_v14 }
  0xce   : > { %7071 = vmatmul.mubr.msk.bf16.gmra.mrb[8].mxu0 %vm309_vm0, %v8609_v13  ;;  %v3021_v13 = vld [vmem:[#allocation2 + $0x18a] sm:$0xff] }
  0xcf   : > { %7074 = vmatprep.mubr.msk.bf16.mxu0 %vm309_vm0, %v8623_v24  ;;  %v8925_v14 = vpack.c.bf16 %v3021_v13, %v3020_v12  ;;  %v8205_v24 = vld [vmem:[%s10012_s2 + $0x78] sm:$0xff]   ;;  %v1685_v13 = vld [vmem:[#allocation2 + $0xe1] sm:$0xff] }
  0xd0   : > { %7251 = vmatmul.mubr.msk.bf16.gmra.mrb[8].mxu1 %vm309_vm0, %v8613_v17  ;;  %v8203_v17 = vld [vmem:[%s10012_s2 + $0x78] sm:$0xff]  }
  0xd1   : > { %7254 = vmatprep.mubr.msk.bf16.mxu1 %vm309_vm0, %v8625_v28  ;;  %v8206_v28 = vld [vmem:[%s10012_s2 + $0x80] sm:$0xff]  }
  0xd2   : > { %v1684_v12 = vld [vmem:[#allocation2 + $0xd9] sm:$0xff] }
  0xd6   : > { %7075 = vmatmul.mubr.msk.bf16.gmra.mrb[12].mxu0 %vm309_vm0, %v8549_v40  ;;  %v8201_v40 = vld [vmem:[%s10012_s2 + $0x68] sm:$0xff]  }
  0xd7   : > { %7082 = vmatprep.mubr.msk.bf16.mxu0 %vm309_vm0, %v8723_v54  ;;  %v3363_v54 = vld [vmem:[#allocation2 + $0x109] sm:$0xff] }
  0xd8   : > { %7255 = vmatmul.mubr.msk.bf16.gmra.mrb[12].mxu1 %vm309_vm0, %v8879_v58 }
  0xd9   : > { %7262 = vmatprep.mubr.msk.bf16.mxu1 %vm309_vm0, %v8730_v59  ;;  %v3364_v59 = vld [vmem:[#allocation2 + $0x111] sm:$0xff] }
  0xda   : > { %v3378_v37 = vpack.c.bf16 %v3364_v59, %v3363_v54 }
  0xde   : > { %7083 = vmatmul.mubr.msk.bf16.vlgmr.msra.gmra.mrb[0].mxu0 %vm309_vm0, %v8728_v57 }
  0xdf   : > { %7099 = vmatpush3.bf16.msra.mxu0 %v8198_v36  ;;  %7086 = vmatprep.mubr.msk.bf16.mxu0 %vm309_vm0, %v8753_v56  ;;  %v1681_v36 = vld [vmem:[#allocation2 + $0xb1] sm:$0xff] }
  0xe0   : > { %7263 = vmatmul.mubr.msk.bf16.vlgmr.msra.gmra.mrb[0].mxu1 %vm309_vm0, %v8735_v7  ;;  %7100 = vmatprep.subr.bf16.mxu0 %v8199_v61 }
  0xe1   : > { %7266 = vmatprep.mubr.msk.bf16.mxu1 %vm309_vm0, %v8757_v26  ;;  %7279 = vmatpush3.bf16.msra.mxu1 %v8200_v44  ;;  %v1682_v44 = vld [vmem:[#allocation2 + $0xc1] sm:$0xff] }
  0xe2   : > { %7280 = vmatprep.subr.bf16.mxu1 %v8201_v40 }
  0xe3   : > { %7101 = vmatpush3.bf16.msra.mxu0 %v8199_v61  ;;  %v3372_v61 = vld [vmem:[#allocation2 + $0x171] sm:$0xff] }
  0xe4   : > { %7118 = vmatprep.subr.bf16.mxu0 %v8202_v0 }
  0xe5   : > { %7281 = vmatpush3.bf16.msra.mxu1 %v8201_v40  ;;  %v1691_v40 = vpack.c.bf16 %v1681_v36, %v1680_v27 }
  0xe6   : > { %7087 = vmatmul.mubr.msk.bf16.gmra.mrb[4].mxu0 %vm309_vm0, %v8755_v25  ;;  %7298 = vmatprep.subr.bf16.mxu1 %v8204_v3 }
  0xe7   : > { %7090 = vmatprep.mubr.msk.bf16.mxu0 %vm309_vm0, %v8769_v47 }
  0xe8   : > { %7267 = vmatmul.mubr.msk.bf16.gmra.mrb[4].mxu1 %vm309_vm0, %v8759_v31 }
  0xe9   : > { %7270 = vmatprep.mubr.msk.bf16.mxu1 %vm309_vm0, %v8773_v50 }
  0xee   : > { %7091 = vmatmul.mubr.msk.bf16.gmra.mrb[8].mxu0 %vm309_vm0, %v8771_v49 }
  0xef   : > { %7094 = vmatprep.mubr.msk.bf16.mxu0 %vm309_vm0, %v8785_v6 }
  0xf0   : > { %7271 = vmatmul.mubr.msk.bf16.gmra.mrb[8].mxu1 %vm309_vm0, %v8775_v55 }
  0xf1   : > { %7274 = vmatprep.mubr.msk.bf16.mxu1 %vm309_vm0, %v8787_v8 }
  0xf6   : > { %7095 = vmatmul.mubr.msk.bf16.gmra.mrb[12].mxu0 %vm309_vm0, %v8714_v41  ;;  %v1675_v41 = vld [vmem:[#allocation2 + $0x69] sm:$0xff] }
  0xf7   : > { %7102 = vmatprep.mubr.msk.bf16.mxu0 %vm309_vm0, %v8641_v42  ;;  %v8208_v42 = vld [vmem:[%s10012_s2 + $0x80] sm:$0xff]  }
  0xf8   : > { %7275 = vmatmul.mubr.msk.bf16.gmra.mrb[12].mxu1 %vm309_vm0, %v8925_v14 }
  0xf9   : > { %7282 = vmatprep.mubr.msk.bf16.mxu1 %vm309_vm0, %v8648_v46  ;;  %v1670_v46 = vld [vmem:[#allocation2 + $0x31] sm:$0xff] }
  0xfe   : > { %7103 = vmatmul.mubr.msk.bf16.vlgmr.msra.gmra.mrb[0].mxu0 %vm309_vm0, %v8667_v60  ;;  %v1671_v60 = vld [vmem:[#allocation2 + $0x39] sm:$0xff] }
  0xff   : > { %7119 = vmatpush3.bf16.msra.mxu0 %v8202_v0  ;;  %7106 = vmatprep.mubr.msk.bf16.mxu0 %vm309_vm0, %v8674_v63  ;;  %v3198_v63 = vld [vmem:[#allocation2 + $0x198] sm:$0xff]  ;;  %v1692_v0 = vpack.c.bf16 %v1683_v48, %v1682_v44 }
 0x100   : > { %7283 = vmatmul.mubr.msk.bf16.vlgmr.msra.gmra.mrb[0].mxu1 %vm309_vm0, %v8676_v1  ;;  %7120 = vmatprep.subr.bf16.mxu0 %v8203_v17  ;;  %v3199_v1 = vld [vmem:[#allocation2 + $0x1a0] sm:$0xff] }
 0x101   : > { %7286 = vmatprep.mubr.msk.bf16.mxu1 %vm309_vm0, %v8679_v5  ;;  %7299 = vmatpush3.bf16.msra.mxu1 %v8204_v3  ;;  %v3361_v5 = vld [vmem:[#allocation2 + $0xf1] sm:$0xff]  ;;  %v3382_v3 = vpack.c.bf16 %v3372_v61, %v3371_v52 }
 0x102   : > { %7300 = vmatprep.subr.bf16.mxu1 %v8205_v24 }
 0x103   : > { %7121 = vmatpush3.bf16.msra.mxu0 %v8203_v17  ;;  %v3375_v17 = vld [vmem:[#allocation2 + $0x199] sm:$0xff] }
 0x104   : > { %7138 = vmatprep.subr.bf16.mxu0 %v8206_v28 }
 0x105   : > { %7301 = vmatpush3.bf16.msra.mxu1 %v8205_v24  ;;  %v3376_v24 = vld [vmem:[#allocation2 + $0x1a1] sm:$0xff] }
 0x106   : > { %7107 = vmatmul.mubr.msk.bf16.gmra.mrb[4].mxu0 %vm309_vm0, %v8694_v16  ;;  %7318 = vmatprep.subr.bf16.mxu1 %v8208_v42  ;;  %v3362_v16 = vld [vmem:[#allocation2 + $0xf9] sm:$0xff] }
 0x107   : > { %7110 = vmatprep.mubr.msk.bf16.mxu0 %vm309_vm0, %v8696_v19  ;;  %v1686_v19 = vpack.c.bf16 %v1671_v60, %v1670_v46  ;;  %v9039_v60 = vld [vmem:[%s10013_s3] ss:$0 sm:$0xff] }
 0x108   : > { %7287 = vmatmul.mubr.msk.bf16.gmra.mrb[4].mxu1 %vm309_vm0, %v8698_v20  ;;  %v3207_v20 = vpack.c.bf16 %v3199_v1, %v3198_v63 }
 0x109   : > { %7290 = vmatprep.mubr.msk.bf16.mxu1 %vm309_vm0, %v8700_v21  ;;  %v3377_v21 = vpack.c.bf16 %v3362_v16, %v3361_v5 }
 0x10e   : > { %7111 = vmatmul.mubr.msk.bf16.gmra.mrb[8].mxu0 %vm309_vm0, %v8710_v33  ;;  %v1673_v33 = vld [vmem:[#allocation2 + $0x51] sm:$0xff] }
 0x10f   : > { %7114 = vmatprep.mubr.msk.bf16.mxu0 %vm309_vm0, %v8630_v30  ;;  %v1672_v30 = vld [vmem:[#allocation2 + $0x49] sm:$0xff] }
 0x110   : > { %7291 = vmatmul.mubr.msk.bf16.gmra.mrb[8].mxu1 %vm309_vm0, %v8712_v35  ;;  %v1674_v35 = vld [vmem:[#allocation2 + $0x61] sm:$0xff]  ;;  %v1687_v29 = vpack.c.bf16 %v1673_v33, %v1672_v30 }
 0x111   : > { %7294 = vmatprep.mubr.msk.bf16.mxu1 %vm309_vm0, %v8833_v22  ;;  %v1688_v62 = vpack.c.bf16 %v1675_v41, %v1674_v35  ;;  %v3380_v22 = vpack.c.bf16 %v3368_v11, %v3367_v9 }
 0x116   : > { %7115 = vmatmul.mubr.msk.bf16.gmra.mrb[12].mxu0 %vm309_vm0, %v8643_v43  ;;  %v8207_v43 = vld [vmem:[%s10012_s2 + $0x88] sm:$0xff]  }
 0x117   : > { %7122 = vmatprep.mubr.msk.bf16.mxu0 %vm309_vm0, %v1686_v19 }
 0x118   : > { %7295 = vmatmul.mubr.msk.bf16.gmra.mrb[12].mxu1 %vm309_vm0, %v3207_v20 }
 0x119   : > { %7302 = vmatprep.mubr.msk.bf16.mxu1 %vm309_vm0, %v3377_v21 }
 0x11e   : > { %7123 = vmatmul.mubr.msk.bf16.vlgmr.msra.gmra.mrb[0].mxu0 %vm309_vm0, %v1687_v29 }
 0x11f   : > { %7139 = vmatpush3.bf16.msra.mxu0 %v8206_v28  ;;  %7126 = vmatprep.mubr.msk.bf16.mxu0 %vm309_vm0, %v1688_v62  ;;  %v1693_v28 = vpack.c.bf16 %v1685_v13, %v1684_v12 }
 0x120   : > { %7303 = vmatmul.mubr.msk.bf16.vlgmr.msra.gmra.mrb[0].mxu1 %vm309_vm0, %v3378_v37  ;;  %7140 = vmatprep.subr.bf16.mxu0 %v8207_v43 }
 0x121   : > { %7306 = vmatprep.mubr.msk.bf16.mxu1 %vm309_vm0, %v3379_v39  ;;  %7319 = vmatpush3.bf16.msra.mxu1 %v8208_v42  ;;  %v3384_v42 = vpack.c.bf16 %v3376_v24, %v3375_v17 }
 0x122   : > { %7320 = vmatprep.subr.bf16.mxu1 %v8209_v45 }
 0x123   : > { %7141 = vmatpush3.bf16.msra.mxu0 %v8207_v43 }
 0x125   : > { %7321 = vmatpush3.bf16.msra.mxu1 %v8209_v45 }
 0x126   : > { %7127 = vmatmul.mubr.msk.bf16.gmra.mrb[4].mxu0 %vm309_vm0, %v1689_v38 }
 0x127   : > { %7130 = vmatprep.mubr.msk.bf16.mxu0 %vm309_vm0, %v1690_v18 }
 0x128   : > { %7307 = vmatmul.mubr.msk.bf16.gmra.mrb[4].mxu1 %vm309_vm0, %v3380_v22 }
 0x129   : > { %7310 = vmatprep.mubr.msk.bf16.mxu1 %vm309_vm0, %v3381_v23 }
 0x12e   : > { %7131 = vmatmul.mubr.msk.bf16.gmra.mrb[8].mxu0 %vm309_vm0, %v1691_v40 }
 0x12f   : > { %7134 = vmatprep.mubr.msk.bf16.mxu0 %vm309_vm0, %v1692_v0 }
 0x130   : > { %7311 = vmatmul.mubr.msk.bf16.gmra.mrb[8].mxu1 %vm309_vm0, %v3382_v3 }
 0x131   : > { %7314 = vmatprep.mubr.msk.bf16.mxu1 %vm309_vm0, %v8879_v58 }
 0x136   : > { %7135 = vmatmul.mubr.msk.bf16.gmra.mrb[12].mxu0 %vm309_vm0, %v1693_v28 }
 0x137   : > { %7142 = vmatprep.mubr.msk.bf16.mxu0 %vm309_vm0, %v8728_v57  ;;  %v1860_v57 = vld [vmem:[#allocation2 + $0xc2] sm:$0xff] }
 0x138   : > { %7315 = vmatmul.mubr.msk.bf16.gmra.mrb[12].mxu1 %vm309_vm0, %v3384_v42 }
 0x139   : > { %7322 = vmatprep.mubr.msk.bf16.mxu1 %vm309_vm0, %v8735_v7  ;;  %v1861_v7 = vld [vmem:[#allocation2 + $0xca] sm:$0xff] }
 0x13e   : > { %7143 = vmatmul.mubr.msk.bf16.vlgmr.msra.gmra.mrb[0].mxu0 %vm309_vm0, %v8753_v56  ;;  %v1870_v56 = vpack.c.bf16 %v1861_v7, %v1860_v57 }
 0x13f   : > { %7146 = vmatprep.mubr.msk.bf16.mxu0 %vm309_vm0, %v8755_v25  ;;  %v1862_v25 = vld [vmem:[#allocation2 + $0xda] sm:$0xff] }
 0x140   : > { %7323 = vmatmul.mubr.msk.bf16.vlgmr.msra.gmra.mrb[0].mxu1 %vm309_vm0, %v8757_v26  ;;  %v1863_v26 = vld [vmem:[#allocation2 + $0xe2] sm:$0xff] }
 0x141   : > { %7326 = vmatprep.mubr.msk.bf16.mxu1 %vm309_vm0, %v8759_v31  ;;  %v3552_v31 = vld [vmem:[#allocation2 + $0x19a] sm:$0xff] }
 0x146   : > { %7147 = vmatmul.mubr.msk.bf16.gmra.mrb[4].mxu0 %vm309_vm0, %v8769_v47  ;;  %v3553_v47 = vld [vmem:[#allocation2 + $0x1a2] sm:$0xff] }
 0x147   : > { %7150 = vmatprep.mubr.msk.bf16.mxu0 %vm309_vm0, %v8771_v49  ;;  %v1871_v49 = vpack.c.bf16 %v1863_v26, %v1862_v25 }
 0x148   : > { %7327 = vmatmul.mubr.msk.bf16.gmra.mrb[4].mxu1 %vm309_vm0, %v8773_v50  ;;  %v3561_v50 = vpack.c.bf16 %v3553_v47, %v3552_v31 }
 0x149   : > { %7330 = vmatprep.mubr.msk.bf16.mxu1 %vm309_vm0, %v8775_v55  ;;  %v3876_v55 = vld [vmem:[#allocation3 + $0x1] sm:$0xff] }
 0x14e   : > { %7151 = vmatmul.mubr.msk.bf16.gmra.mrb[8].mxu0 %vm309_vm0, %v8785_v6  ;;  %v3877_v6 = vld [vmem:[#allocation3 + $0x9] sm:$0xff] }
 0x14f   : > { %7154 = vmatprep.mubr.msk.bf16.mxu0 %vm309_vm0, %v1870_v56  ;;  %v3892_v58 = vpack.c.bf16 %v3877_v6, %v3876_v55 }
 0x150   : > { %7331 = vmatmul.mubr.msk.bf16.gmra.mrb[8].mxu1 %vm309_vm0, %v8787_v8  ;;  %v8210_v8 = vld [vmem:[%s10014_s4 + $0x10] sm:$0xff]  }
 0x151   : > { %7334 = vmatprep.mubr.msk.bf16.mxu1 %vm309_vm0, %v8925_v14  ;;  %8018 = vmatprep.subr.msk.bf16.mxu0 %vm309_vm0, %v3892_v58  ;;  %v3917_v46 = vsel %vm309_vm0, %v3892_v58, 0  ;;  %v8212_v14 = vld [vmem:[%s10014_s4 + $0x10] sm:$0xff]  }
 0x152   : > { %7339 = vmatpush3.bf16.xpose.msra.mxu0 %v3917_v46 }
 0x156   : > { %7155 = vmatmul.mubr.msk.bf16.gmra.mrb[12].mxu0 %vm309_vm0, %v1871_v49 }
 0x157   : > { %7354 = vmatprep.mubr.msk.bf16.mxu0 %vm309_vm0, %v8210_v8 }
 0x158   : > { %7335 = vmatmul.mubr.msk.bf16.gmra.mrb[12].mxu1 %vm309_vm0, %v3561_v50 }
 0x159   : > { %7534 = vmatprep.mubr.msk.bf16.mxu1 %vm309_vm0, %v8212_v14 }
 0x211   : > { %v7144_v63 = vpop.f32.mrb[0].mxu0 }
 0x212   : > { %v2035_v1 = vadd.f32 %v7144_v63, %v9039_v60  ;;  %v1947_v5 = vpop.f32.mrb[1].mxu0 }
 0x213   : > { %v2033_v16 = vadd.f32 %v9039_v60, %v1947_v5  ;;  %v7324_v19 = vpop.f32.mrb[0].mxu1  ;;  %v7145_v20 = vpop.f32.mrb[2].mxu0 }
 0x214   : > { %vm2051_vm3 = vcmp.ge.f32.partialorder %v2035_v1, 0.0  ;;  %v2067_v21 = vmul.f32 0.2, %v2035_v1  ;;  %v3724_v30 = vadd.f32 %v7324_v19, %v9039_v60  ;;  %v2036_v33 = vadd.f32 %v7145_v20, %v9039_v60  ;;  %v3636_v35 = vpop.f32.mrb[1].mxu1  ;;  %v1950_v41 = vpop.f32.mrb[3].mxu0 }
 0x215   : > { %vm2049_vm4 = vcmp.ge.f32.partialorder %v2033_v16, 0.0  ;;  %v2065_v54 = vmul.f32 0.2, %v2033_v16  ;;  %v3722_v59 = vadd.f32 %v9039_v60, %v3636_v35  ;;  %v2034_v29 = vadd.f32 %v9039_v60, %v1950_v41  ;;  %v7325_v32 = vpop.f32.mrb[2].mxu1 }
 0x216   : > { %v2083_v34 = vsel %vm2051_vm3, %v2035_v1, %v2067_v21  ;;  %vm3740_vm5 = vcmp.ge.f32.partialorder %v3724_v30, 0.0  ;;  %v3756_v62 = vmul.f32 0.2, %v3724_v30  ;;  %vm2052_vm6 = vcmp.ge.f32.partialorder %v2036_v33, 0.0  ;;  %v3639_v37 = vpop.f32.mrb[3].mxu1 }
 0x217   : > { %2137 = vst.msk [vmem:[#allocation3 + $0x31] sm:$0xff] %vm309_vm0, %v2083_v34  ;;  %v2081_v43 = vsel %vm2049_vm4, %v2033_v16, %v2065_v54  ;;  %v2068_v39 = vmul.f32 0.2, %v2036_v33  ;;  %vm3738_vm7 = vcmp.ge.f32.partialorder %v3722_v59, 0.0  ;;  %v2100_v45 = vsel %vm309_vm0, %v2083_v34, 0.0 }
 0x218   : > { %2135 = vst.msk [vmem:[#allocation3 + $0x19] sm:$0xff] %vm309_vm0, %v2081_v43  ;;  %v3772_v51 = vsel %vm3740_vm5, %v3724_v30, %v3756_v62  ;;  %v3754_v53 = vmul.f32 0.2, %v3722_v59  ;;  %vm2050_vm8 = vcmp.ge.f32.partialorder %v2034_v29, 0.0  ;;  %v2097_v2 = vsel %vm309_vm0, %v2081_v43, 0.0 }
 0x219   : > { %3827 = vst.msk [vmem:[#allocation3 + $0xf1] sm:$0xff] %vm309_vm0, %v3772_v51  ;;  %v2084_v4 = vsel %vm2052_vm6, %v2036_v33, %v2068_v39  ;;  %v2066_v9 = vmul.f32 0.2, %v2034_v29  ;;  %v3725_v11 = vadd.f32 %v7325_v32, %v9039_v60  ;;  %v7148_v38 = vpop.f32.mrb[4].mxu0  ;;  %v3789_v10 = vsel %vm309_vm0, %v3772_v51, 0.0 }
 0x21a   : > { %2138 = vst.msk [vmem:[#allocation3 + $0x39] sm:$0xff] %vm309_vm0, %v2084_v4  ;;  %v3770_v15 = vsel %vm3738_vm7, %v3722_v59, %v3754_v53  ;;  %v3723_v18 = vadd.f32 %v9039_v60, %v3639_v37  ;;  %v2039_v22 = vadd.f32 %v7148_v38, %v9039_v60  ;;  %v1963_v23 = vpop.f32.mrb[5].mxu0  ;;  %v2102_v27 = vsel %vm309_vm0, %v2084_v4, 0.0 }
 0x21b   : > { %3825 = vst.msk [vmem:[#allocation3 + $0xd9] sm:$0xff] %vm309_vm0, %v3770_v15  ;;  %v2082_v36 = vsel %vm2050_vm8, %v2034_v29, %v2066_v9  ;;  %vm3741_vm9 = vcmp.ge.f32.partialorder %v3725_v11, 0.0  ;;  %v3757_v44 = vmul.f32 0.2, %v3725_v11  ;;  %v7328_v48 = vpop.f32.mrb[4].mxu1  ;;  %v7149_v52 = vpop.f32.mrb[6].mxu0  ;;  %v2037_v17 = vadd.f32 %v9039_v60, %v1963_v23 }
 0x21c   : > { %v2098_v61 = vsel %vm309_vm0, %v2082_v36, 0.0  ;;  %2136 = vst.msk [vmem:[#allocation3 + $0x21] sm:$0xff] %vm309_vm0, %v2082_v36  ;;  %vm3739_vm10 = vcmp.ge.f32.partialorder %v3723_v18, 0.0  ;;  %v3755_v40 = vmul.f32 0.2, %v3723_v18  ;;  %vm2055_vm11 = vcmp.ge.f32.partialorder %v2039_v22, 0.0 }
 0x21d   : > { %v3652_v0 = vpop.f32.mrb[5].mxu1  ;;  %v2099_v3 = vadd.f32 %v2098_v61, %v2097_v2  ;;  %v3773_v12 = vsel %vm3741_vm9, %v3725_v11, %v3757_v44  ;;  %v2071_v13 = vmul.f32 0.2, %v2039_v22  ;;  %v1966_v24 = vpop.f32.mrb[7].mxu0  ;;  %v3786_v42 = vsel %vm309_vm0, %v3770_v15, 0.0 }
 0x21e   : > { %v7329_v28 = vpop.f32.mrb[6].mxu1  ;;  %3828 = vst.msk [vmem:[#allocation3 + $0xf9] sm:$0xff] %vm309_vm0, %v3773_v12  ;;  %v3771_v57 = vsel %vm3739_vm10, %v3723_v18, %v3755_v40  ;;  %v3728_v7 = vadd.f32 %v7328_v48, %v9039_v60  ;;  %v2040_v56 = vadd.f32 %v7149_v52, %v9039_v60  ;;  %vm2053_vm12 = vcmp.ge.f32.partialorder %v2037_v17, 0.0 }
 0x21f   : > { %v3655_v25 = vpop.f32.mrb[7].mxu1  ;;  %v2101_v26 = vadd.f32 %v2100_v45, %v2099_v3  ;;  %v3787_v31 = vsel %vm309_vm0, %v3771_v57, 0.0  ;;  %3826 = vst.msk [vmem:[#allocation3 + $0xe1] sm:$0xff] %vm309_vm0, %v3771_v57  ;;  %v2087_v47 = vsel %vm2055_vm11, %v2039_v22, %v2071_v13  ;;  %v3791_v49 = vsel %vm309_vm0, %v3773_v12, 0.0 }
 0x220   : > { %v3788_v50 = vadd.f32 %v3787_v31, %v3786_v42  ;;  %2141 = vst.msk [vmem:[#allocation3 + $0x61] sm:$0xff] %vm309_vm0, %v2087_v47  ;;  %v2069_v55 = vmul.f32 0.2, %v2037_v17  ;;  %vm3744_vm13 = vcmp.ge.f32.partialorder %v3728_v7, 0.0  ;;  %v3760_v58 = vmul.f32 0.2, %v3728_v7 }
 0x221   : > { %v2103_v6 = vadd.f32 %v2102_v27, %v2101_v26  ;;  %vm2056_vm14 = vcmp.ge.f32.partialorder %v2040_v56, 0.0  ;;  %v2072_v46 = vmul.f32 0.2, %v2040_v56  ;;  %v7152_v8 = vpop.f32.mrb[8].mxu0  ;;  %v3726_v1 = vadd.f32 %v9039_v60, %v3652_v0 }
 0x222   : > { %v3790_v14 = vadd.f32 %v3789_v10, %v3788_v50  ;;  %v2085_v63 = vsel %vm2053_vm12, %v2037_v17, %v2069_v55  ;;  %v2038_v5 = vadd.f32 %v9039_v60, %v1966_v24  ;;  %v1979_v16 = vpop.f32.mrb[9].mxu0  ;;  %v3776_v20 = vsel %vm3744_vm13, %v3728_v7, %v3760_v58 }
 0x223   : > { %v2104_v19 = vsel %vm309_vm0, %v2085_v63, 0.0  ;;  %2139 = vst.msk [vmem:[#allocation3 + $0x49] sm:$0xff] %vm309_vm0, %v2085_v63  ;;  %v2088_v21 = vsel %vm2056_vm14, %v2040_v56, %v2072_v46  ;;  %v3729_v30 = vadd.f32 %v7329_v28, %v9039_v60  ;;  %v7332_v33 = vpop.f32.mrb[8].mxu1  ;;  %v7153_v35 = vpop.f32.mrb[10].mxu0  ;;  %v2108_v41 = vsel %vm309_vm0, %v2087_v47, 0.0  ;;  %3831 = vst.msk [vmem:[#allocation3 + $0x121] sm:$0xff] %vm309_vm0, %v3776_v20 }
 0x224   : > { %v2105_v54 = vadd.f32 %v2104_v19, %v2103_v6  ;;  %v3797_v59 = vsel %vm309_vm0, %v3776_v20, 0.0  ;;  %2142 = vst.msk [vmem:[#allocation3 + $0x69] sm:$0xff] %vm309_vm0, %v2088_v21  ;;  %vm3742_vm15 = vcmp.ge.f32.partialorder %v3726_v1, 0.0  ;;  %v3668_v29 = vpop.f32.mrb[9].mxu1  ;;  %v1982_v32 = vpop.f32.mrb[11].mxu0  ;;  %v3792_v62 = vadd.f32 %v3791_v49, %v3790_v14  ;;  %v3879_v14 = vld [vmem:[#allocation3 + $0x21] sm:$0xff] }
 0x225   : > { %v3758_v34 = vmul.f32 0.2, %v3726_v1  ;;  %vm2054_vm1 = vcmp.ge.f32.partialorder %v2038_v5, 0.0  ;;  %v2070_v37 = vmul.f32 0.2, %v2038_v5  ;;  %v7333_v43 = vpop.f32.mrb[10].mxu1  ;;  %v3727_v45 = vadd.f32 %v9039_v60, %v3655_v25 }
 0x226   : > { %vm3745_vm3 = vcmp.ge.f32.partialorder %v3729_v30, 0.0  ;;  %v3761_v39 = vmul.f32 0.2, %v3729_v30  ;;  %v2043_v51 = vadd.f32 %v7152_v8, %v9039_v60  ;;  %v9082_v53 = vpop.f32.mrb[11].mxu1  ;;  %v2041_v9 = vadd.f32 %v9039_v60, %v1979_v16  ;;  %v3881_v16 = vld [vmem:[#allocation3 + $0x39] sm:$0xff] }
 0x227   : > { %v3774_v2 = vsel %vm3742_vm15, %v3726_v1, %v3758_v34  ;;  %v2086_v4 = vsel %vm2054_vm1, %v2038_v5, %v2070_v37  ;;  %v3732_v11 = vadd.f32 %v7332_v33, %v9039_v60  ;;  %vm3743_vm4 = vcmp.ge.f32.partialorder %v3727_v45, 0.0 }
 0x228   : > { %v3793_v38 = vsel %vm309_vm0, %v3774_v2, 0.0  ;;  %3829 = vst.msk [vmem:[#allocation3 + $0x109] sm:$0xff] %vm309_vm0, %v3774_v2  ;;  %v2106_v10 = vsel %vm309_vm0, %v2086_v4, 0.0  ;;  %2140 = vst.msk [vmem:[#allocation3 + $0x51] sm:$0xff] %vm309_vm0, %v2086_v4  ;;  %v3777_v15 = vsel %vm3745_vm3, %v3729_v30, %v3761_v39  ;;  %v2110_v18 = vsel %vm309_vm0, %v2088_v21, 0.0  ;;  %v3878_v30 = vld [vmem:[#allocation3 + $0x19] sm:$0xff] }
 0x229   : > { %v3794_v22 = vadd.f32 %v3793_v38, %v3792_v62  ;;  %v2107_v23 = vadd.f32 %v2106_v10, %v2105_v54  ;;  %3832 = vst.msk [vmem:[#allocation3 + $0x129] sm:$0xff] %vm309_vm0, %v3777_v15  ;;  %v3759_v27 = vmul.f32 0.2, %v3727_v45  ;;  %v9092_v36 = vpop.f32.mrb[12].mxu0  ;;  %vm2059_vm5 = vcmp.ge.f32.partialorder %v2043_v51, 0.0  ;;  %v3880_v54 = vld [vmem:[#allocation3 + $0x31] sm:$0xff] }
 0x22a   : > { %v2075_v44 = vmul.f32 0.2, %v2043_v51  ;;  %vm2057_vm6 = vcmp.ge.f32.partialorder %v2041_v9, 0.0  ;;  %v2073_v48 = vmul.f32 0.2, %v2041_v9  ;;  %vm3748_vm7 = vcmp.ge.f32.partialorder %v3732_v11, 0.0 }
 0x22b   : > { %v2109_v52 = vadd.f32 %v2108_v41, %v2107_v23  ;;  %v3775_v61 = vsel %vm3743_vm4, %v3727_v45, %v3759_v27  ;;  %v3764_v40 = vmul.f32 0.2, %v3732_v11  ;;  %v9094_v0 = vpop.f32.mrb[13].mxu0  ;;  %v9096_v3 = vpop.f32.mrb[12].mxu1  ;;  %v2044_v24 = vadd.f32 %v7153_v35, %v9039_v60 }
 0x22c   : > { %v3795_v12 = vsel %vm309_vm0, %v3775_v61, 0.0  ;;  %3830 = vst.msk [vmem:[#allocation3 + $0x111] sm:$0xff] %vm309_vm0, %v3775_v61  ;;  %v2091_v13 = vsel %vm2059_vm5, %v2043_v51, %v2075_v44  ;;  %v2089_v17 = vsel %vm2057_vm6, %v2041_v9, %v2073_v48  ;;  %v7157_v28 = vpop.f32.mrb[14].mxu0  ;;  %v3684_v42 = vpop.f32.mrb[13].mxu1  ;;  %v3799_v57 = vsel %vm309_vm0, %v3777_v15, 0.0 }
 0x22d   : > { %v3796_v7 = vadd.f32 %v3795_v12, %v3794_v22  ;;  %2145 = vst.msk [vmem:[#allocation3 + $0x91] sm:$0xff] %vm309_vm0, %v2091_v13  ;;  %v2111_v56 = vadd.f32 %v2110_v18, %v2109_v52  ;;  %v2112_v25 = vsel %vm309_vm0, %v2089_v17, 0.0  ;;  %2143 = vst.msk [vmem:[#allocation3 + $0x79] sm:$0xff] %vm309_vm0, %v2089_v17  ;;  %v1998_v26 = vpop.f32.mrb[15].mxu0  ;;  %v9105_v31 = vpop.f32.mrb[14].mxu1  ;;  %v3780_v47 = vsel %vm3748_vm7, %v3732_v11, %v3764_v40 }
 0x22e   : > { %vm2060_vm8 = vcmp.ge.f32.partialorder %v2044_v24, 0.0  ;;  %v2076_v49 = vmul.f32 0.2, %v2044_v24  ;;  %v3730_v50 = vadd.f32 %v9039_v60, %v3668_v29  ;;  %v9109_v55 = vpop.f32.mrb[15].mxu1  ;;  %v2116_v58 = vsel %vm309_vm0, %v2091_v13, 0.0  ;;  %3835 = vst.msk [vmem:[#allocation3 + $0x151] sm:$0xff] %vm309_vm0, %v3780_v47 }
 0x22f   : > { %v3798_v6 = vadd.f32 %v3797_v59, %v3796_v7  ;;  %v2113_v46 = vadd.f32 %v2112_v25, %v2111_v56  ;;  %v2042_v8 = vadd.f32 %v9039_v60, %v1982_v32  ;;  %v3733_v5 = vadd.f32 %v7333_v43, %v9039_v60 }
 0x230   : > { %v2092_v63 = vsel %vm2060_vm8, %v2044_v24, %v2076_v49  ;;  %vm3746_vm9 = vcmp.ge.f32.partialorder %v3730_v50, 0.0  ;;  %v3762_v1 = vmul.f32 0.2, %v3730_v50  ;;  %v3805_v19 = vsel %vm309_vm0, %v3780_v47, 0.0 }
 0x231   : > { %2146 = vst.msk [vmem:[#allocation3 + $0x99] sm:$0xff] %vm309_vm0, %v2092_v63  ;;  %v3800_v20 = vadd.f32 %v3799_v57, %v3798_v6  ;;  %vm2058_vm10 = vcmp.ge.f32.partialorder %v2042_v8, 0.0  ;;  %v2074_v21 = vmul.f32 0.2, %v2042_v8  ;;  %vm3749_vm11 = vcmp.ge.f32.partialorder %v3733_v5, 0.0 }
 0x232   : > { %v3778_v33 = vsel %vm3746_vm9, %v3730_v50, %v3762_v1  ;;  %v3765_v35 = vmul.f32 0.2, %v3733_v5  ;;  %v9117_v41 = vpack.c.bf16 %v3879_v14, %v3878_v30  ;;  %v3731_v32 = vadd.f32 %v9039_v60, %v9082_v53 }
 0x233   : > { %v3801_v59 = vsel %vm309_vm0, %v3778_v33, 0.0  ;;  %3833 = vst.msk [vmem:[#allocation3 + $0x139] sm:$0xff] %vm309_vm0, %v3778_v33  ;;  %v2090_v29 = vsel %vm2058_vm10, %v2042_v8, %v2074_v21  ;;  %v9123_v34 = vpack.c.bf16 %v3881_v16, %v3880_v54  ;;  %v2118_v45 = vsel %vm309_vm0, %v2092_v63, 0.0 }
 0x234   : > { %v3802_v62 = vadd.f32 %v3801_v59, %v3800_v20  ;;  %v2114_v37 = vsel %vm309_vm0, %v2090_v29, 0.0  ;;  %2144 = vst.msk [vmem:[#allocation3 + $0x81] sm:$0xff] %vm309_vm0, %v2090_v29  ;;  %v3781_v43 = vsel %vm3749_vm11, %v3733_v5, %v3765_v35  ;;  %8019 = vmatprep.subr.msk.bf16.mxu0 %vm309_vm0, %v9117_v41  ;;  %v9131_v39 = vsel %vm309_vm0, %v9117_v41, 0  ;;  %v5025_v5 = vld [vmem:[#allocation3 + $0xe1] sm:$0xff]  ;;  %v3885_v20 = vld [vmem:[#allocation3 + $0x69] sm:$0xff] }
 0x235   : > { %v2115_v51 = vadd.f32 %v2114_v37, %v2113_v46  ;;  %3836 = vst.msk [vmem:[#allocation3 + $0x159] sm:$0xff] %vm309_vm0, %v3781_v43  ;;  %vm3747_vm12 = vcmp.ge.f32.partialorder %v3731_v32, 0.0  ;;  %v3763_v53 = vmul.f32 0.2, %v3731_v32  ;;  %7341 = vmatpush3.bf16.xpose.msra.mxu0 %v9131_v39  ;;  %v2047_v2 = vadd.f32 %v9092_v36, %v9039_v60  ;;  %v5024_v37 = vld [vmem:[#allocation3 + $0xd9] sm:$0xff] }
 0x236   : > { %8020 = vmatprep.subr.msk.bf16.mxu0 %vm309_vm0, %v9123_v34  ;;  %v2045_v4 = vadd.f32 %v9039_v60, %v9094_v0  ;;  %v3736_v9 = vadd.f32 %v9096_v3, %v9039_v60  ;;  %v2048_v11 = vadd.f32 %v7157_v28, %v9039_v60  ;;  %v3734_v15 = vadd.f32 %v9039_v60, %v3684_v42  ;;  %v3883_v28 = vld [vmem:[#allocation3 + $0x51] sm:$0xff] }
 0x237   : > { %v2117_v38 = vadd.f32 %v2116_v58, %v2115_v51  ;;  %v3779_v10 = vsel %vm3747_vm12, %v3731_v32, %v3763_v53  ;;  %v2046_v18 = vadd.f32 %v9039_v60, %v1998_v26  ;;  %vm2063_vm13 = vcmp.ge.f32.partialorder %v2047_v2, 0.0  ;;  %v3882_v26 = vld [vmem:[#allocation3 + $0x49] sm:$0xff] }
 0x238   : > { %v3803_v22 = vsel %vm309_vm0, %v3779_v10, 0.0  ;;  %3834 = vst.msk [vmem:[#allocation3 + $0x141] sm:$0xff] %vm309_vm0, %v3779_v10  ;;  %v2079_v23 = vmul.f32 0.2, %v2047_v2  ;;  %vm2061_vm14 = vcmp.ge.f32.partialorder %v2045_v4, 0.0  ;;  %vm3752_vm15 = vcmp.ge.f32.partialorder %v3736_v9, 0.0 }
 0x239   : > { %v3804_v27 = vadd.f32 %v3803_v22, %v3802_v62  ;;  %v2077_v36 = vmul.f32 0.2, %v2045_v4  ;;  %v2119_v44 = vadd.f32 %v2118_v45, %v2117_v38  ;;  %v3768_v52 = vmul.f32 0.2, %v3736_v9  ;;  %v3884_v62 = vld [vmem:[#allocation3 + $0x61] sm:$0xff] }
 0x23a   : > { %v2095_v48 = vsel %vm2063_vm13, %v2047_v2, %v2079_v23  ;;  %vm2064_vm1 = vcmp.ge.f32.partialorder %v2048_v11, 0.0  ;;  %v2080_v61 = vmul.f32 0.2, %v2048_v11  ;;  %v3807_v40 = vsel %vm309_vm0, %v3781_v43, 0.0  ;;  %v3886_v23 = vld [vmem:[#allocation3 + $0x79] sm:$0xff] }
 0x23b   : > { %v3806_v0 = vadd.f32 %v3805_v19, %v3804_v27  ;;  %2149 = vst.msk [vmem:[#allocation3 + $0xc1] sm:$0xff] %vm309_vm0, %v2095_v48  ;;  %v2093_v3 = vsel %vm2061_vm14, %v2045_v4, %v2077_v36  ;;  %vm3750_vm3 = vcmp.ge.f32.partialorder %v3734_v15, 0.0  ;;  %v3784_v13 = vsel %vm3752_vm15, %v3736_v9, %v3768_v52  ;;  %v3887_v10 = vld [vmem:[#allocation3 + $0x81] sm:$0xff] }
 0x23c   : > { %v2120_v12 = vsel %vm309_vm0, %v2093_v3, 0.0  ;;  %2147 = vst.msk [vmem:[#allocation3 + $0xa9] sm:$0xff] %vm309_vm0, %v2093_v3  ;;  %v2096_v17 = vsel %vm2064_vm1, %v2048_v11, %v2080_v61  ;;  %v3766_v24 = vmul.f32 0.2, %v3734_v15  ;;  %3839 = vst.msk [vmem:[#allocation3 + $0x181] sm:$0xff] %vm309_vm0, %v3784_v13  ;;  %vm2062_vm4 = vcmp.ge.f32.partialorder %v2046_v18, 0.0 }
 0x23d   : > { %v2121_v42 = vadd.f32 %v2120_v12, %v2119_v44  ;;  %2150 = vst.msk [vmem:[#allocation3 + $0xc9] sm:$0xff] %vm309_vm0, %v2096_v17  ;;  %v3808_v57 = vadd.f32 %v3807_v40, %v3806_v0  ;;  %v2078_v56 = vmul.f32 0.2, %v2046_v18  ;;  %v3737_v25 = vadd.f32 %v9105_v31, %v9039_v60  ;;  %v5026_v44 = vld [vmem:[#allocation3 + $0xf1] sm:$0xff] }
 0x23e   : > { %v3782_v7 = vsel %vm3750_vm3, %v3734_v15, %v3766_v24  ;;  %v3735_v49 = vadd.f32 %v9039_v60, %v9109_v55  ;;  %v9163_v50 = vsel %vm309_vm0, %v9123_v34, 0  ;;  %v9165_v6 = vpack.c.bf16 %v3883_v28, %v3882_v26  ;;  %v5029_v24 = vld [vmem:[#allocation3 + $0x111] sm:$0xff] }
 0x23f   : > { %v3809_v47 = vsel %vm309_vm0, %v3782_v7, 0.0  ;;  %3837 = vst.msk [vmem:[#allocation3 + $0x169] sm:$0xff] %vm309_vm0, %v3782_v7  ;;  %v2094_v46 = vsel %vm2062_vm4, %v2046_v18, %v2078_v56  ;;  %vm3753_vm5 = vcmp.ge.f32.partialorder %v3737_v25, 0.0  ;;  %v3769_v8 = vmul.f32 0.2, %v3737_v25  ;;  %7343 = vmatpush3.bf16.xpose.msra.mxu0 %v9163_v50  ;;  %v5027_v18 = vld [vmem:[#allocation3 + $0xf9] sm:$0xff] }
 0x240   : > { %v3810_v58 = vadd.f32 %v3809_v47, %v3808_v57  ;;  %v2122_v31 = vsel %vm309_vm0, %v2094_v46, 0.0  ;;  %2148 = vst.msk [vmem:[#allocation3 + $0xb1] sm:$0xff] %vm309_vm0, %v2094_v46  ;;  %vm3751_vm6 = vcmp.ge.f32.partialorder %v3735_v49, 0.0  ;;  %v3767_v14 = vmul.f32 0.2, %v3735_v49  ;;  %8021 = vmatprep.subr.msk.bf16.mxu0 %vm309_vm0, %v9165_v6  ;;  %v3888_v57 = vld [vmem:[#allocation3 + $0x91] sm:$0xff] }
 0x241   : > { %v2123_v60 = vadd.f32 %v2122_v31, %v2121_v42  ;;  %v3785_v55 = vsel %vm3753_vm5, %v3737_v25, %v3769_v8  ;;  %v2124_v63 = vsel %vm309_vm0, %v2095_v48, 0.0  ;;  %v2126_v33 = vsel %vm309_vm0, %v2096_v17, 0.0  ;;  %v3889_v17 = vld [vmem:[#allocation3 + $0x99] sm:$0xff]  ;;  %v5028_v7 = vld [vmem:[#allocation3 + $0x109] sm:$0xff]  ;;  %v5030_v31 = vld [vmem:[#allocation3 + $0x121] sm:$0xff] }
 0x242   : > { %3840 = vst.msk [vmem:[#allocation3 + $0x189] sm:$0xff] %vm309_vm0, %v3785_v55  ;;  %v3783_v1 = vsel %vm3751_vm6, %v3735_v49, %v3767_v14  ;;  %v5022_v21 = vld [vmem:[#allocation3 + $0xc1] sm:$0xff]  ;;  %v3813_v59 = vsel %vm309_vm0, %v3784_v13, 0.0  ;;  %v9182_v32 = vsel %vm309_vm0, %v9165_v6, 0  ;;  %v9184_v45 = vpack.c.bf16 %v3885_v20, %v3884_v62  ;;  %v5031_v46 = vld [vmem:[#allocation3 + $0x129] sm:$0xff]  ;;  %v5032_v20 = vld [vmem:[#allocation3 + $0x139] sm:$0xff] }
 0x243   : > { %v2125_v16 = vadd.f32 %v2124_v63, %v2123_v60  ;;  %v3811_v19 = vsel %vm309_vm0, %v3783_v1, 0.0  ;;  %3838 = vst.msk [vmem:[#allocation3 + $0x171] sm:$0xff] %vm309_vm0, %v3783_v1  ;;  %v9192_v53 = vpack.c.bf16 %v5025_v5, %v5024_v37  ;;  %v3815_v4 = vsel %vm309_vm0, %v3785_v55, 0.0  ;;  %v3890_v8 = vld [vmem:[#allocation3 + $0xa9] sm:$0xff]  ;;  %v3847_v1 = vld [vmem:[#allocation3] sm:$0xff]  ;;  %v3849_v37 = vld [vmem:[#allocation3 + $0x18] sm:$0xff] }
 0x244   : > { %v5023_v30 = vld [vmem:[#allocation3 + $0xc9] sm:$0xff]  ;;  %v3812_v35 = vadd.f32 %v3811_v19, %v3810_v58  ;;  %v9201_v36 = vpack.c.bf16 %v3887_v10, %v3886_v23  ;;  %v9205_v52 = vsel %vm309_vm0, %v9184_v45, 0  ;;  %v9211_v40 = vpack.c.bf16 %v5027_v18, %v5026_v44 }
 0x245   : > { %v9177_v54 = vpack.c.bf16 %v5023_v30, %v5022_v21  ;;  %v2127_v29 = vadd.f32 %v2126_v33, %v2125_v16  ;;  %v9209_v61 = vsel %vm309_vm0, %v9192_v53, 0  ;;  %v9223_v25 = vpack.c.bf16 %v3889_v17, %v3888_v57  ;;  %v3848_v5 = vld [vmem:[#allocation3 + $0x8] sm:$0xff] }
 0x246   : > { %v3814_v43 = vadd.f32 %v3813_v59, %v3812_v35  ;;  %v9221_v42 = vsel %vm309_vm0, %v9201_v36, 0  ;;  %v9227_v26 = vsel %vm309_vm0, %v9211_v40, 0  ;;  %v9229_v47 = vpack.c.bf16 %v5029_v24, %v5028_v7  ;;  %v5033_v16 = vld [vmem:[#allocation3 + $0x141] sm:$0xff]  ;;  %v5036_v18 = vld [vmem:[#allocation3 + $0x169] sm:$0xff] }
 0x247   : > { %10046 = vst [vmem:[#allocation4_spill] sm:$0xff] %v9177_v54  ;;  %8090 = vmatprep.subr.msk.bf16.mxu1 %vm309_vm0, %v9177_v54  ;;  %v9190_v51 = vsel %vm309_vm0, %v9177_v54, 0  ;;  %v2128_v2 = vrot.slane %v2127_v29, 4  ;;  %7345 = vmatpush3.bf16.xpose.msra.mxu0 %v9182_v32  ;;  %v3891_v58 = vld [vmem:[#allocation3 + $0xb1] sm:$0xff]  ;;  %v9244_v14 = vsel %vm309_vm0, %v9223_v25, 0  ;;  %v9252_v63 = vpack.c.bf16 %v5031_v46, %v5030_v31  ;;  %v8211_v35 = vld [vmem:[%s10014_s4 + $0x18] sm:$0xff]  }
 0x248   : > { %10047 = vst [vmem:[#allocation5_spill] sm:$0xff] %v9190_v51  ;;  %7519 = vmatpush3.bf16.xpose.msra.mxu1 %v9190_v51  ;;  %v3816_v9 = vadd.f32 %v3815_v4, %v3814_v43  ;;  %8022 = vmatprep.subr.msk.bf16.mxu0 %vm309_vm0, %v9184_v45  ;;  %v9246_v60 = vpack.c.bf16 %v3891_v58, %v3890_v8  ;;  %v9250_v55 = vsel %vm309_vm0, %v9229_v47, 0  ;;  %v3850_v59 = vld [vmem:[#allocation3 + $0x20] sm:$0xff]  ;;  %v5034_v43 = vld [vmem:[#allocation3 + $0x151] sm:$0xff]  ;;  %v8213_v57 = vld [vmem:[%s10014_s4 + $0x18] sm:$0xff]  }
 0x249   : > { %8091 = vmatprep.subr.msk.bf16.mxu1 %vm309_vm0, %v9192_v53  ;;  %v2129_v11 = vadd.f32 %v2128_v2, %v2127_v29  ;;  %v3863_v19 = vpack.c.bf16 %v3848_v5, %v3847_v1  ;;  %v9266_v30 = vsel %vm309_vm0, %v9252_v63, 0  ;;  %v9268_v33 = vpack.c.bf16 %v5033_v16, %v5032_v20  ;;  %v5035_v29 = vld [vmem:[#allocation3 + $0x159] sm:$0xff]  ;;  %v8214_v2 = vld [vmem:[%s10014_s4] sm:$0xff]   ;;  %v3856_v7 = vld [vmem:[#allocation3 + $0x68] sm:$0xff] }
 0x24a   : > { %v3817_v38 = vrot.slane %v3816_v9, 4  ;;  %v9262_v21 = vsel %vm309_vm0, %v9246_v60, 0  ;;  %v9283_v4 = vpack.c.bf16 %v3850_v59, %v3849_v37  ;;  %v5037_v10 = vld [vmem:[#allocation3 + $0x171] sm:$0xff]  ;;  %v3858_v16 = vld [vmem:[#allocation3 + $0x80] sm:$0xff] }
 0x24b   : > { %v2130_v15 = vrot.slane %v2129_v11, 2  ;;  %10048 = vst [vmem:[#allocation6_spill] sm:$0xff] %v9268_v33  ;;  %v4006_v62 = vsel %vm309_vm0, %v3863_v19, 0  ;;  %v9307_v44 = vpack.c.bf16 %v5037_v10, %v5036_v18  ;;  %v4996_v58 = vld [vmem:[#allocation3 + $0xd8] sm:$0xff]  ;;  %v8216_v46 = vld [vmem:[%s10014_s4] sm:$0xff]   ;;  %v5000_v10 = vld [vmem:[#allocation3 + $0x108] sm:$0xff] }
 0x24c   : > { %v3818_v22 = vadd.f32 %v3817_v38, %v3816_v9  ;;  %v9287_v9 = vsel %vm309_vm0, %v9268_v33, 0  ;;  %v3852_v38 = vld [vmem:[#allocation3 + $0x38] sm:$0xff]  ;;  %v5231_v51 = vld [vmem:[#allocation3 + $0xe2] sm:$0xff] }
 0x24d   : > { %v2131_v27 = vadd.f32 %v2130_v15, %v2129_v11  ;;  %10049 = vst [vmem:[#allocation7_spill] sm:$0xff] %v9287_v9  ;;  %v9289_v11 = vpack.c.bf16 %v5035_v29, %v5034_v43  ;;  %v3851_v15 = vld [vmem:[#allocation3 + $0x30] sm:$0xff]  ;;  %10052 = vst [vmem:[#allocation10_spill] sm:$0xff] %v9307_v44  ;;  %v9323_v24 = vsel %vm309_vm0, %v9307_v44, 0  ;;  %v3857_v20 = vld [vmem:[#allocation3 + $0x78] sm:$0xff] }
 0x24e   : > { %v3819_v48 = vrot.slane %v3818_v22, 2  ;;  %v9301_v23 = vpack.c.bf16 %v3852_v38, %v3851_v15  ;;  %10053 = vst [vmem:[#allocation11_spill] sm:$0xff] %v9323_v24  ;;  %v9363_v29 = vpack.c.bf16 %v3858_v16, %v3857_v20  ;;  %v3860_v43 = vld [vmem:[#allocation3 + $0x98] sm:$0xff]  ;;  %v3859_v38 = vld [vmem:[#allocation3 + $0x90] sm:$0xff]  ;;  %v4083_v16 = vld [vmem:[#allocation3 + $0x2] sm:$0xff] }
 0x24f   : > { %v2132_v0 = vrot.slane %v2131_v27, 1  ;;  %7347 = vmatpush3.bf16.xpose.msra.mxu0 %v9205_v52  ;;  %10050 = vst [vmem:[#allocation8_spill] sm:$0xff] %v9289_v11  ;;  %v9381_v18 = vpack.c.bf16 %v3860_v43, %v3859_v38  ;;  %v5005_v20 = vld [vmem:[#allocation3 + $0x140] sm:$0xff]  ;;  %v5004_v43 = vld [vmem:[#allocation3 + $0x138] sm:$0xff] }
 0x250   : > { %7521 = vmatpush3.bf16.xpose.msra.mxu1 %v9209_v61  ;;  %v3820_v3 = vadd.f32 %v3819_v48, %v3818_v22  ;;  %8023 = vmatprep.subr.msk.bf16.mxu0 %vm309_vm0, %v9201_v36  ;;  %v9299_v22 = vsel %vm309_vm0, %v9283_v4, 0  ;;  %v3854_v48 = vld [vmem:[#allocation3 + $0x50] sm:$0xff]  ;;  %v9379_v15 = vsel %vm309_vm0, %v9363_v29, 0 }
 0x251   : > { %8092 = vmatprep.subr.msk.bf16.mxu1 %vm309_vm0, %v9211_v40  ;;  %v2133_v12 = vadd.f32 %v2132_v0, %v2131_v27  ;;  %v9305_v27 = vsel %vm309_vm0, %v9289_v11, 0  ;;  %v4995_v0 = vld [vmem:[#allocation3 + $0xc8] sm:$0xff] }
 0x252   : > { %v3821_v13 = vrot.slane %v3820_v3, 1  ;;  %10051 = vst [vmem:[#allocation9_spill] sm:$0xff] %v9305_v27 }
 0x254   : > { %v3822_v28 = vadd.f32 %v3821_v13, %v3820_v3  ;;  %v3853_v3 = vld [vmem:[#allocation3 + $0x48] sm:$0xff]  ;;  %v9317_v13 = vsel %vm309_vm0, %v9301_v23, 0 }
 0x255   : > { %v9319_v17 = vpack.c.bf16 %v3854_v48, %v3853_v3  ;;  %v3862_v3 = vld [vmem:[#allocation3 + $0xb0] sm:$0xff] }
 0x256   : > { %v3823_v56 = vadd.f32 %v3822_v28, %v2133_v12  ;;  %v4994_v12 = vld [vmem:[#allocation3 + $0xc0] sm:$0xff] }
 0x257   : > { %7349 = vmatpush3.bf16.xpose.msra.mxu0 %v9221_v42  ;;  %v9325_v28 = vpack.c.bf16 %v4995_v0, %v4994_v12  ;;  %v9341_v8 = vsel %vm309_vm0, %v9319_v17, 0  ;;  %v5003_v12 = vld [vmem:[#allocation3 + $0x128] sm:$0xff] }
 0x258   : > { %7523 = vmatpush3.bf16.xpose.msra.mxu1 %v9227_v26  ;;  %v3841_v49 = vmul.f32 0.00390625, %v3823_v56  ;;  %8024 = vmatprep.subr.msk.bf16.mxu0 %vm309_vm0, %v9223_v25  ;;  %v4997_v56 = vld [vmem:[#allocation3 + $0xe0] sm:$0xff] }
 0x259   : > { %8093 = vmatprep.subr.msk.bf16.mxu1 %vm309_vm0, %v9229_v47  ;;  %v9348_v1 = vsel %vm309_vm0, %v9325_v28, 0  ;;  %v9350_v5 = vpack.c.bf16 %v4997_v56, %v4996_v58  ;;  %v9397_v56 = vsel %vm309_vm0, %v9381_v18, 0 }
 0x25a   : > { %3842 = vst.msk [vmem:[%s307_s26] sm:$0x1] %vm319_vm2, %v3841_v49  ;;  %v3855_v49 = vld [vmem:[#allocation3 + $0x60] sm:$0xff] }
 0x25b   : > { %v9343_v31 = vpack.c.bf16 %v3856_v7, %v3855_v49  ;;  %v5002_v7 = vld [vmem:[#allocation3 + $0x120] sm:$0xff] }
 0x25d   : > { %v9361_v59 = vsel %vm309_vm0, %v9343_v31, 0 }
 0x25f   : > { %7351 = vmatpush3.bf16.xpose.msra.mxu0 %v9244_v14 }
 0x260   : > { %7525 = vmatpush3.bf16.xpose.msra.mxu1 %v9250_v55  ;;  %8025 = vmatprep.subr.msk.bf16.mxu0 %vm309_vm0, %v9246_v60 }
 0x261   : > { %8094 = vmatprep.subr.msk.bf16.mxu1 %vm309_vm0, %v9252_v63 }
 0x267   : > { %7353 = vmatpush3.bf16.xpose.msra.mxu0 %v9262_v21 }
 0x268   : > { %7527 = vmatpush3.bf16.xpose.msra.mxu1 %v9266_v30  ;;  %8026 = vmatprep.subr.msk.bf16.mxu0 %vm309_vm0, %v3863_v19  ;;  %v4999_v19 = vld [vmem:[#allocation3 + $0xf8] sm:$0xff] }
 0x269   : > { %8095 = vmatprep.subr.msk.bf16.mxu1 %vm309_vm0, %v9268_v33 }
 0x26e   : > { %7355 = vmatmul.mubr.msk.bf16.vlgmr.msra.gmra.mrb[16].mxu0 %vm309_vm0, %v8211_v35  ;;  %v4998_v35 = vld [vmem:[#allocation3 + $0xf0] sm:$0xff] }
 0x26f   : > { %7359 = vmatpush3.bf16.xpose.msra.mxu0 %v4006_v62  ;;  %7374 = vmatprep.mubr.msk.bf16.mxu0 %vm309_vm0, %v8214_v2  ;;  %v9367_v62 = vsel %vm309_vm0, %v9350_v5, 0  ;;  %v9369_v37 = vpack.c.bf16 %v4999_v19, %v4998_v35  ;;  %v5001_v2 = vld [vmem:[#allocation3 + $0x110] sm:$0xff] }
 0x270   : > { %7529 = vmatpush3.bf16.xpose.msra.mxu1 %v9287_v9  ;;  %8027 = vmatprep.subr.msk.bf16.mxu0 %vm309_vm0, %v9283_v4  ;;  %v9387_v0 = vpack.c.bf16 %v5001_v2, %v5000_v10  ;;  %v4084_v19 = vld [vmem:[#allocation3 + $0xa] sm:$0xff]  ;;  %v9421_v10 = vpack.c.bf16 %v5005_v20, %v5004_v43  ;;  %v5230_v9 = vld [vmem:[#allocation3 + $0xda] sm:$0xff] }
 0x271   : > { %8096 = vmatprep.subr.msk.bf16.mxu1 %vm309_vm0, %v9289_v11  ;;  %v9385_v48 = vsel %vm309_vm0, %v9369_v37, 0  ;;  %v4099_v35 = vpack.c.bf16 %v4084_v19, %v4083_v16  ;;  %v5006_v19 = vld [vmem:[#allocation3 + $0x150] sm:$0xff]  ;;  %v9503_v54 = vpack.c.bf16 %v5231_v51, %v5230_v9 }
 0x272   : > { %v9403_v58 = vsel %vm309_vm0, %v9387_v0, 0  ;;  %v8218_v20 = vld [vmem:[%s10014_s4 + $0x20] sm:$0xff]  }
 0x273   : > { %v4124_v16 = vsel %vm309_vm0, %v4099_v35, 0  ;;  %v4090_v11 = vld [vmem:[#allocation3 + $0x52] sm:$0xff]  ;;  %10062 = vst [vmem:[#allocation20_spill] sm:$0xff] %v9503_v54 }
 0x277   : > { %7361 = vmatpush3.bf16.xpose.msra.mxu0 %v9299_v22 }
 0x278   : > { %7531 = vmatpush3.bf16.xpose.msra.mxu1 %v9305_v27  ;;  %8028 = vmatprep.subr.msk.bf16.mxu0 %vm309_vm0, %v9301_v23 }
 0x279   : > { %8097 = vmatprep.subr.msk.bf16.mxu1 %vm309_vm0, %v9307_v44 }
 0x27f   : > { %7363 = vmatpush3.bf16.xpose.msra.mxu0 %v9317_v13 }
 0x280   : > { %7533 = vmatpush3.bf16.xpose.msra.mxu1 %v9323_v24  ;;  %8029 = vmatprep.subr.msk.bf16.mxu0 %vm309_vm0, %v9319_v17  ;;  %v9440_v24 = vsel %vm309_vm0, %v9421_v10, 0 }
 0x281   : > { %8098 = vmatprep.subr.msk.bf16.mxu1 %vm309_vm0, %v9325_v28 }
 0x287   : > { %7535 = vmatmul.mubr.msk.bf16.vlgmr.msra.gmra.mrb[16].mxu1 %vm309_vm0, %v8213_v57  ;;  %7365 = vmatpush3.bf16.xpose.msra.mxu0 %v9341_v8  ;;  %v3861_v57 = vld [vmem:[#allocation3 + $0xa8] sm:$0xff] }
 0x288   : > { %7539 = vmatpush3.bf16.xpose.msra.mxu1 %v9348_v1  ;;  %8030 = vmatprep.subr.msk.bf16.mxu0 %vm309_vm0, %v9343_v31  ;;  %v9399_v49 = vpack.c.bf16 %v3862_v3, %v3861_v57  ;;  %v8215_v3 = vld [vmem:[%s10014_s4 + $0x8] sm:$0xff]   ;;  %v4086_v57 = vld [vmem:[#allocation3 + $0x22] sm:$0xff] }
 0x289   : > { %8099 = vmatprep.subr.msk.bf16.mxu1 %vm309_vm0, %v9350_v5  ;;  %7554 = vmatprep.mubr.msk.bf16.mxu1 %vm309_vm0, %v8216_v46  ;;  %v9405_v46 = vpack.c.bf16 %v5003_v12, %v5002_v7  ;;  %v4085_v12 = vld [vmem:[#allocation3 + $0x1a] sm:$0xff] }
 0x28a   : > { %v9415_v2 = vsel %vm309_vm0, %v9399_v49, 0  ;;  %v5007_v7 = vld [vmem:[#allocation3 + $0x158] sm:$0xff]  ;;  %v9436_v43 = vpack.c.bf16 %v4086_v57, %v4085_v12  ;;  %v5009_v12 = vld [vmem:[#allocation3 + $0x170] sm:$0xff]  ;;  %v5008_v57 = vld [vmem:[#allocation3 + $0x168] sm:$0xff] }
 0x28b   : > { %v9419_v38 = vsel %vm309_vm0, %v9405_v46, 0  ;;  %v9442_v44 = vpack.c.bf16 %v5007_v7, %v5006_v19  ;;  %v9460_v19 = vpack.c.bf16 %v5009_v12, %v5008_v57 }
 0x28c   : > { %10054 = vst [vmem:[#allocation12_spill] sm:$0xff] %v9436_v43  ;;  %v9452_v27 = vsel %vm309_vm0, %v9436_v43, 0 }
 0x28d   : > { %10055 = vst [vmem:[#allocation13_spill] sm:$0xff] %v9452_v27  ;;  %v9476_v57 = vsel %vm309_vm0, %v9460_v19, 0 }
 0x28f   : > { %7367 = vmatpush3.bf16.xpose.msra.mxu0 %v9361_v59 }
 0x290   : > { %7541 = vmatpush3.bf16.xpose.msra.mxu1 %v9367_v62  ;;  %8031 = vmatprep.subr.msk.bf16.mxu0 %vm309_vm0, %v9363_v29 }
 0x291   : > { %8100 = vmatprep.subr.msk.bf16.mxu1 %vm309_vm0, %v9369_v37 }
 0x297   : > { %7369 = vmatpush3.bf16.xpose.msra.mxu0 %v9379_v15 }
 0x298   : > { %7543 = vmatpush3.bf16.xpose.msra.mxu1 %v9385_v48  ;;  %8032 = vmatprep.subr.msk.bf16.mxu0 %vm309_vm0, %v9381_v18 }
 0x299   : > { %8101 = vmatprep.subr.msk.bf16.mxu1 %vm309_vm0, %v9387_v0 }
 0x29f   : > { %7371 = vmatpush3.bf16.xpose.msra.mxu0 %v9397_v56 }
 0x2a0   : > { %7545 = vmatpush3.bf16.xpose.msra.mxu1 %v9403_v58  ;;  %8033 = vmatprep.subr.msk.bf16.mxu0 %vm309_vm0, %v9399_v49 }
 0x2a1   : > { %8102 = vmatprep.subr.msk.bf16.mxu1 %vm309_vm0, %v9405_v46 }
 0x2a7   : > { %7373 = vmatpush3.bf16.xpose.msra.mxu0 %v9415_v2 }
 0x2a8   : > { %7547 = vmatpush3.bf16.xpose.msra.mxu1 %v9419_v38  ;;  %8034 = vmatprep.subr.msk.bf16.mxu0 %vm309_vm0, %v4099_v35  ;;  %v4087_v35 = vld [vmem:[#allocation3 + $0x32] sm:$0xff] }
 0x2a9   : > { %8103 = vmatprep.subr.msk.bf16.mxu1 %vm309_vm0, %v9421_v10 }
 0x2ae   : > { %7375 = vmatmul.mubr.msk.bf16.vlgmr.msra.gmra.mrb[16].mxu0 %vm309_vm0, %v8215_v3  ;;  %v4088_v3 = vld [vmem:[#allocation3 + $0x3a] sm:$0xff] }
 0x2af   : > { %7379 = vmatpush3.bf16.xpose.msra.mxu0 %v4124_v16  ;;  %7394 = vmatprep.mubr.msk.bf16.mxu0 %vm309_vm0, %v8218_v20  ;;  %v9454_v7 = vpack.c.bf16 %v4088_v3, %v4087_v35  ;;  %v9458_v16 = vsel %vm309_vm0, %v9442_v44, 0  ;;  %v4089_v20 = vld [vmem:[#allocation3 + $0x4a] sm:$0xff]  ;;  %v5228_v35 = vld [vmem:[#allocation3 + $0xc2] sm:$0xff] }
 0x2b0   : > { %7549 = vmatpush3.bf16.xpose.msra.mxu1 %v9440_v24  ;;  %8035 = vmatprep.subr.msk.bf16.mxu0 %vm309_vm0, %v9436_v43  ;;  %v5229_v3 = vld [vmem:[#allocation3 + $0xca] sm:$0xff]  ;;  %v9472_v12 = vpack.c.bf16 %v4090_v11, %v4089_v20  ;;  %v8217_v11 = vld [vmem:[%s10014_s4 + $0x8] sm:$0xff]  }
 0x2b1   : > { %8104 = vmatprep.subr.msk.bf16.mxu1 %vm309_vm0, %v9442_v44  ;;  %10056 = vst [vmem:[#allocation14_spill] sm:$0xff] %v9454_v7  ;;  %v9470_v43 = vsel %vm309_vm0, %v9454_v7, 0  ;;  %v4092_v20 = vld [vmem:[#allocation3 + $0x6a] sm:$0xff] }
 0x2b2   : > { %10057 = vst [vmem:[#allocation15_spill] sm:$0xff] %v9470_v43  ;;  %10058 = vst [vmem:[#allocation16_spill] sm:$0xff] %v9472_v12 }
 0x2b7   : > { %7381 = vmatpush3.bf16.xpose.msra.mxu0 %v9452_v27  ;;  %v9478_v27 = vpack.c.bf16 %v5229_v3, %v5228_v35  ;;  %v8220_v35 = vld [vmem:[%s10014_s4 + $0x20] sm:$0xff]   ;;  %v9494_v3 = vsel %vm309_vm0, %v9472_v12, 0 }
 0x2b8   : > { %7551 = vmatpush3.bf16.xpose.msra.mxu1 %v9458_v16  ;;  %8036 = vmatprep.subr.msk.bf16.mxu0 %vm309_vm0, %v9454_v7  ;;  %v4091_v7 = vld [vmem:[#allocation3 + $0x62] sm:$0xff] }
 0x2b9   : > { %8105 = vmatprep.subr.msk.bf16.mxu1 %vm309_vm0, %v9460_v19  ;;  %10059 = vst [vmem:[#allocation17_spill] sm:$0xff] %v9478_v27  ;;  %v9501_v33 = vsel %vm309_vm0, %v9478_v27, 0 }
 0x2ba   : > { %10061 = vst [vmem:[#allocation19_spill] sm:$0xff] %v9501_v33 }
 0x2bf   : > { %7383 = vmatpush3.bf16.xpose.msra.mxu0 %v9470_v43  ;;  %v9496_v43 = vpack.c.bf16 %v4092_v20, %v4091_v7  ;;  %v5232_v7 = vld [vmem:[#allocation3 + $0xf2] sm:$0xff]  ;;  %v4094_v20 = vld [vmem:[#allocation3 + $0x82] sm:$0xff] }
 0x2c0   : > { %7553 = vmatpush3.bf16.xpose.msra.mxu1 %v9476_v57  ;;  %8037 = vmatprep.subr.msk.bf16.mxu0 %vm309_vm0, %v9472_v12  ;;  %v5233_v12 = vld [vmem:[#allocation3 + $0xfa] sm:$0xff] }
 0x2c1   : > { %8106 = vmatprep.subr.msk.bf16.mxu1 %vm309_vm0, %v9478_v27  ;;  %10060 = vst [vmem:[#allocation18_spill] sm:$0xff] %v9496_v43  ;;  %v9514_v51 = vsel %vm309_vm0, %v9496_v43, 0  ;;  %v9522_v27 = vpack.c.bf16 %v5233_v12, %v5232_v7 }
 0x2c2   : > { %10063 = vst [vmem:[#allocation21_spill] sm:$0xff] %v9514_v51 }
 0x2c3   : > { %10066 = vst [vmem:[#allocation24_spill] sm:$0xff] %v9522_v27  ;;  %v9538_v7 = vsel %vm309_vm0, %v9522_v27, 0 }
 0x2c4   : > { %10069 = vst [vmem:[#allocation27_spill] sm:$0xff] %v9538_v7 }
 0x2c7   : > { %7555 = vmatmul.mubr.msk.bf16.vlgmr.msra.gmra.mrb[16].mxu1 %vm309_vm0, %v8217_v11  ;;  %7385 = vmatpush3.bf16.xpose.msra.mxu0 %v9494_v3  ;;  %v4093_v11 = vld [vmem:[#allocation3 + $0x7a] sm:$0xff] }
 0x2c8   : > { %7559 = vmatpush3.bf16.xpose.msra.mxu1 %v9501_v33  ;;  %8038 = vmatprep.subr.msk.bf16.mxu0 %vm309_vm0, %v9496_v43  ;;  %v9516_v9 = vpack.c.bf16 %v4094_v20, %v4093_v11  ;;  %v9520_v33 = vsel %vm309_vm0, %v9503_v54, 0  ;;  %v4095_v43 = vld [vmem:[#allocation3 + $0x92] sm:$0xff]  ;;  %v4096_v11 = vld [vmem:[#allocation3 + $0x9a] sm:$0xff] }
 0x2c9   : > { %8107 = vmatprep.subr.msk.bf16.mxu1 %vm309_vm0, %v9503_v54  ;;  %7574 = vmatprep.mubr.msk.bf16.mxu1 %vm309_vm0, %v8220_v35  ;;  %10065 = vst [vmem:[#allocation23_spill] sm:$0xff] %v9520_v33  ;;  %v5234_v35 = vld [vmem:[#allocation3 + $0x10a] sm:$0xff]  ;;  %v5235_v20 = vld [vmem:[#allocation3 + $0x112] sm:$0xff]  ;;  %v9534_v12 = vpack.c.bf16 %v4096_v11, %v4095_v43 }
 0x2ca   : > { %10064 = vst [vmem:[#allocation22_spill] sm:$0xff] %v9516_v9  ;;  %v9532_v54 = vsel %vm309_vm0, %v9516_v9, 0  ;;  %v4098_v43 = vld [vmem:[#allocation3 + $0xb2] sm:$0xff]  ;;  %v5237_v11 = vld [vmem:[#allocation3 + $0x12a] sm:$0xff] }
 0x2cb   : > { %10067 = vst [vmem:[#allocation25_spill] sm:$0xff] %v9532_v54  ;;  %10068 = vst [vmem:[#allocation26_spill] sm:$0xff] %v9534_v12 }
 0x2cf   : > { %7387 = vmatpush3.bf16.xpose.msra.mxu0 %v9514_v51  ;;  %v4097_v51 = vld [vmem:[#allocation3 + $0xaa] sm:$0xff] }
 0x2d0   : > { %7561 = vmatpush3.bf16.xpose.msra.mxu1 %v9520_v33  ;;  %8039 = vmatprep.subr.msk.bf16.mxu0 %vm309_vm0, %v9516_v9  ;;  %v9540_v33 = vpack.c.bf16 %v5235_v20, %v5234_v35  ;;  %v5236_v9 = vld [vmem:[#allocation3 + $0x122] sm:$0xff]  ;;  %v9552_v35 = vpack.c.bf16 %v4098_v43, %v4097_v51 }
 0x2d1   : > { %8108 = vmatprep.subr.msk.bf16.mxu1 %vm309_vm0, %v9522_v27  ;;  %v9550_v27 = vsel %vm309_vm0, %v9534_v12, 0 }
 0x2d2   : > { %10070 = vst [vmem:[#allocation28_spill] sm:$0xff] %v9552_v35  ;;  %v9556_v20 = vsel %vm309_vm0, %v9540_v33, 0  ;;  %v9568_v51 = vsel %vm309_vm0, %v9552_v35, 0 }
 0x2d3   : > { %10071 = vst [vmem:[#allocation29_spill] sm:$0xff] %v9556_v20 }
 0x2d7   : > { %7389 = vmatpush3.bf16.xpose.msra.mxu0 %v9532_v54  ;;  %v5239_v54 = vld [vmem:[#allocation3 + $0x142] sm:$0xff] }
 0x2d8   : > { %7563 = vmatpush3.bf16.xpose.msra.mxu1 %v9538_v7  ;;  %8040 = vmatprep.subr.msk.bf16.mxu0 %vm309_vm0, %v9534_v12  ;;  %v9558_v7 = vpack.c.bf16 %v5237_v11, %v5236_v9  ;;  %v5238_v12 = vld [vmem:[#allocation3 + $0x13a] sm:$0xff] }
 0x2d9   : > { %8109 = vmatprep.subr.msk.bf16.mxu1 %vm309_vm0, %v9540_v33  ;;  %v9574_v43 = vpack.c.bf16 %v5239_v54, %v5238_v12  ;;  %v8219_v11 = vld [vmem:[%s10014_s4 + $0x28] sm:$0xff]   ;;  %v8222_v54 = vld [vmem:[%s10014_s4 + $0x30] sm:$0xff]  }
 0x2da   : > { %v9572_v9 = vsel %vm309_vm0, %v9558_v7, 0 }
 0x2db   : > { %10072 = vst [vmem:[#allocation30_spill] sm:$0xff] %v9572_v9  ;;  %10073 = vst [vmem:[#allocation31_spill] sm:$0xff] %v9574_v43  ;;  %v9591_v12 = vsel %vm309_vm0, %v9574_v43, 0 }
 0x2df   : > { %7391 = vmatpush3.bf16.xpose.msra.mxu0 %v9550_v27 }
 0x2e0   : > { %7565 = vmatpush3.bf16.xpose.msra.mxu1 %v9556_v20  ;;  %8041 = vmatprep.subr.msk.bf16.mxu0 %vm309_vm0, %v9552_v35  ;;  %v5240_v35 = vld [vmem:[#allocation3 + $0x152] sm:$0xff]  ;;  %v5241_v20 = vld [vmem:[#allocation3 + $0x15a] sm:$0xff] }
 0x2e1   : > { %8110 = vmatprep.subr.msk.bf16.mxu1 %vm309_vm0, %v9558_v7 }
 0x2e7   : > { %7393 = vmatpush3.bf16.xpose.msra.mxu0 %v9568_v51 }
 0x2e8   : > { %7567 = vmatpush3.bf16.xpose.msra.mxu1 %v9572_v9  ;;  %8042 = vmatprep.subr.msk.bf16.mxu0 %vm309_vm0, %v9283_v4  ;;  %v9593_v4 = vpack.c.bf16 %v5241_v20, %v5240_v35  ;;  %v5242_v9 = vld [vmem:[#allocation3 + $0x16a] sm:$0xff] }
 0x2e9   : > { %8111 = vmatprep.subr.msk.bf16.mxu1 %vm309_vm0, %v9574_v43 }
 0x2ea   : > { %v9604_v43 = vsel %vm309_vm0, %v9593_v4, 0 }
 0x2ee   : > { %7395 = vmatmul.mubr.msk.bf16.vlgmr.msra.gmra.mrb[16].mxu0 %vm309_vm0, %v8219_v11  ;;  %v5243_v11 = vld [vmem:[#allocation3 + $0x172] sm:$0xff] }
 0x2ef   : > { %7399 = vmatpush3.bf16.xpose.msra.mxu0 %v9299_v22  ;;  %7414 = vmatprep.mubr.msk.bf16.mxu0 %vm309_vm0, %v8222_v54  ;;  %v9606_v35 = vpack.c.bf16 %v5243_v11, %v5242_v9  ;;  %v5605_v9 = vld [vmem:[#allocation3 + $0x182] sm:$0xff]  ;;  %v5606_v54 = vld [vmem:[#allocation3 + $0x18a] sm:$0xff] }
 0x2f0   : > { %7569 = vmatpush3.bf16.xpose.msra.mxu1 %v9591_v12  ;;  %8043 = vmatprep.subr.msk.bf16.mxu0 %vm309_vm0, %v9301_v23  ;;  %v8221_v23 = vld [vmem:[%s10014_s4 + $0x28] sm:$0xff]  }
 0x2f1   : > { %8112 = vmatprep.subr.msk.bf16.mxu1 %vm309_vm0, %v9593_v4  ;;  %v9616_v22 = vsel %vm309_vm0, %v9606_v35, 0 }
 0x2f7   : > { %7401 = vmatpush3.bf16.xpose.msra.mxu0 %v9317_v13  ;;  %v8224_v13 = vld [vmem:[%s10014_s4 + $0x30] sm:$0xff]  }
 0x2f8   : > { %7571 = vmatpush3.bf16.xpose.msra.mxu1 %v9604_v43  ;;  %8044 = vmatprep.subr.msk.bf16.mxu0 %vm309_vm0, %v9319_v17  ;;  %v8223_v17 = vld [vmem:[%s10014_s4 + $0x38] sm:$0xff]  }
 0x2f9   : > { %8113 = vmatprep.subr.msk.bf16.mxu1 %vm309_vm0, %v9606_v35 }
 0x2ff   : > { %7403 = vmatpush3.bf16.xpose.msra.mxu0 %v9341_v8 }
 0x300   : > { %7573 = vmatpush3.bf16.xpose.msra.mxu1 %v9616_v22  ;;  %8045 = vmatprep.subr.msk.bf16.mxu0 %vm309_vm0, %v9343_v31  ;;  %v10087_v31 = vld [vmem:[#allocation18_spill] sm:$0xff] }
 0x301   : > { %8114 = vmatprep.subr.msk.bf16.mxu1 %vm309_vm0, %v9350_v5  ;;  %v8229_v5 = vld [vmem:[%s10014_s4 + $0x48] sm:$0xff]  }
 0x307   : > { %7575 = vmatmul.mubr.msk.bf16.vlgmr.msra.gmra.mrb[16].mxu1 %vm309_vm0, %v8221_v23  ;;  %7405 = vmatpush3.bf16.xpose.msra.mxu0 %v9361_v59  ;;  %v8232_v59 = vld [vmem:[%s10014_s4 + $0x50] sm:$0xff]   ;;  %v9815_v23 = vpack.c.bf16 %v5606_v54, %v5605_v9 }
 0x308   : > { %7579 = vmatpush3.bf16.xpose.msra.mxu1 %v9367_v62  ;;  %8046 = vmatprep.subr.msk.bf16.mxu0 %vm309_vm0, %v9363_v29  ;;  %v10089_v29 = vld [vmem:[#allocation21_spill] sm:$0xff]  ;;  %v10090_v62 = vld [vmem:[#allocation23_spill] sm:$0xff] }
 0x309   : > { %8115 = vmatprep.subr.msk.bf16.mxu1 %vm309_vm0, %v9369_v37  ;;  %7594 = vmatprep.mubr.msk.bf16.mxu1 %vm309_vm0, %v8224_v13  ;;  %v10091_v37 = vld [vmem:[#allocation22_spill] sm:$0xff]  ;;  %v4578_v13 = vld [vmem:[#allocation3 + $0x78] sm:$0xff] }
 0x30f   : > { %7407 = vmatpush3.bf16.xpose.msra.mxu0 %v9379_v15  ;;  %v10092_v15 = vld [vmem:[#allocation24_spill] sm:$0xff] }
 0x310   : > { %7581 = vmatpush3.bf16.xpose.msra.mxu1 %v9385_v48  ;;  %8047 = vmatprep.subr.msk.bf16.mxu0 %vm309_vm0, %v9381_v18  ;;  %v10093_v18 = vld [vmem:[#allocation25_spill] sm:$0xff]  ;;  %v10094_v48 = vld [vmem:[#allocation27_spill] sm:$0xff] }
 0x311   : > { %8116 = vmatprep.subr.msk.bf16.mxu1 %vm309_vm0, %v9387_v0  ;;  %v10095_v0 = vld [vmem:[#allocation26_spill] sm:$0xff] }
 0x317   : > { %7409 = vmatpush3.bf16.xpose.msra.mxu0 %v9397_v56  ;;  %v10096_v56 = vld [vmem:[#allocation29_spill] sm:$0xff] }
 0x318   : > { %7583 = vmatpush3.bf16.xpose.msra.mxu1 %v9403_v58  ;;  %8048 = vmatprep.subr.msk.bf16.mxu0 %vm309_vm0, %v9399_v49  ;;  %v10097_v49 = vld [vmem:[#allocation28_spill] sm:$0xff]  ;;  %v10098_v58 = vld [vmem:[#allocation30_spill] sm:$0xff] }
 0x319   : > { %8117 = vmatprep.subr.msk.bf16.mxu1 %vm309_vm0, %v9405_v46  ;;  %v10099_v46 = vld [vmem:[#allocation17_spill] sm:$0xff] }
 0x31f   : > { %7411 = vmatpush3.bf16.xpose.msra.mxu0 %v9415_v2  ;;  %v10100_v2 = vld [vmem:[#allocation31_spill] sm:$0xff] }
 0x320   : > { %7585 = vmatpush3.bf16.xpose.msra.mxu1 %v9419_v38  ;;  %8049 = vmatprep.subr.msk.bf16.mxu0 %vm309_vm0, %v9325_v28  ;;  %v8226_v28 = vld [vmem:[%s10014_s4 + $0x40] sm:$0xff]  }
 0x321   : > { %8118 = vmatprep.subr.msk.bf16.mxu1 %vm309_vm0, %v9421_v10  ;;  %v10101_v10 = vld [vmem:[#allocation19_spill] sm:$0xff] }
 0x327   : > { %7413 = vmatpush3.bf16.xpose.msra.mxu0 %v9348_v1  ;;  %v10088_v1 = vld [vmem:[#allocation20_spill] sm:$0xff] }
 0x328   : > { %7587 = vmatpush3.bf16.xpose.msra.mxu1 %v9440_v24  ;;  %8050 = vmatprep.subr.msk.bf16.mxu0 %vm309_vm0, %v9117_v41  ;;  %v5364_v41 = vld [vmem:[#allocation3 + $0x188] sm:$0xff] }
 0x329   : > { %8119 = vmatprep.subr.msk.bf16.mxu1 %vm309_vm0, %v9442_v44  ;;  %v5363_v44 = vld [vmem:[#allocation3 + $0x180] sm:$0xff] }
 0x32a   : > { %v9676_v24 = vpack.c.bf16 %v5364_v41, %v5363_v44  ;;  %v9824_v44 = vsel %vm309_vm0, %v9815_v23, 0 }
 0x32e   : > { %7415 = vmatmul.mubr.msk.bf16.vlgmr.msra.gmra.mrb[16].mxu0 %vm309_vm0, %v8223_v17  ;;  %v5713_v17 = vld [vmem:[#allocation3 + $0xf0] sm:$0xff] }
 0x32f   : > { %7419 = vmatpush3.bf16.xpose.msra.mxu0 %v9131_v39  ;;  %7434 = vmatprep.mubr.msk.bf16.mxu0 %vm309_vm0, %v8226_v28  ;;  %v8225_v39 = vld [vmem:[%s10014_s4 + $0x38] sm:$0xff]  }
 0x330   : > { %7589 = vmatpush3.bf16.xpose.msra.mxu1 %v9458_v16  ;;  %8051 = vmatprep.subr.msk.bf16.mxu0 %vm309_vm0, %v9123_v34  ;;  %v9686_v34 = vsel %vm309_vm0, %v9676_v24, 0  ;;  %v8231_v16 = vld [vmem:[%s10014_s4 + $0x58] sm:$0xff]  }
 0x331   : > { %8120 = vmatprep.subr.msk.bf16.mxu1 %vm309_vm0, %v9460_v19  ;;  %v4575_v19 = vld [vmem:[#allocation3 + $0x50] sm:$0xff] }
 0x337   : > { %7421 = vmatpush3.bf16.xpose.msra.mxu0 %v9163_v50  ;;  %v8228_v50 = vld [vmem:[%s10014_s4 + $0x40] sm:$0xff]  }
 0x338   : > { %7591 = vmatpush3.bf16.xpose.msra.mxu1 %v9476_v57  ;;  %8052 = vmatprep.subr.msk.bf16.mxu0 %vm309_vm0, %v9165_v6  ;;  %v10074_v6 = vld [vmem:[#allocation4_spill] sm:$0xff]  ;;  %v4574_v57 = vld [vmem:[#allocation3 + $0x48] sm:$0xff] }
 0x339   : > { %8121 = vmatprep.subr.msk.bf16.mxu1 %vm309_vm0, %v9676_v24  ;;  %v4589_v20 = vpack.c.bf16 %v4575_v19, %v4574_v57 }
 0x33f   : > { %7423 = vmatpush3.bf16.xpose.msra.mxu0 %v9182_v32  ;;  %v10075_v32 = vld [vmem:[#allocation6_spill] sm:$0xff] }
 0x340   : > { %7593 = vmatpush3.bf16.xpose.msra.mxu1 %v9686_v34  ;;  %8053 = vmatprep.subr.msk.bf16.mxu0 %vm309_vm0, %v9184_v45  ;;  %v10076_v45 = vld [vmem:[#allocation5_spill] sm:$0xff] }
 0x341   : > { %8122 = vmatprep.subr.msk.bf16.mxu1 %vm309_vm0, %v9192_v53  ;;  %v10077_v53 = vld [vmem:[#allocation7_spill] sm:$0xff] }
 0x347   : > { %7595 = vmatmul.mubr.msk.bf16.vlgmr.msra.gmra.mrb[16].mxu1 %vm309_vm0, %v8225_v39  ;;  %7425 = vmatpush3.bf16.xpose.msra.mxu0 %v9205_v52  ;;  %v10079_v52 = vld [vmem:[#allocation8_spill] sm:$0xff] }
 0x348   : > { %7599 = vmatpush3.bf16.xpose.msra.mxu1 %v9209_v61  ;;  %8054 = vmatprep.subr.msk.bf16.mxu0 %vm309_vm0, %v9201_v36  ;;  %v10078_v36 = vld [vmem:[#allocation12_spill] sm:$0xff]  ;;  %v8227_v61 = vld [vmem:[%s10014_s4 + $0x48] sm:$0xff]  }
 0x349   : > { %8123 = vmatprep.subr.msk.bf16.mxu1 %vm309_vm0, %v9211_v40  ;;  %7614 = vmatprep.mubr.msk.bf16.mxu1 %vm309_vm0, %v8228_v50  ;;  %v8230_v40 = vld [vmem:[%s10014_s4 + $0x50] sm:$0xff]   ;;  %v4581_v50 = vld [vmem:[#allocation3 + $0x98] sm:$0xff] }
 0x34f   : > { %7427 = vmatpush3.bf16.xpose.msra.mxu0 %v9221_v42  ;;  %v10080_v42 = vld [vmem:[#allocation13_spill] sm:$0xff] }
 0x350   : > { %7601 = vmatpush3.bf16.xpose.msra.mxu1 %v9227_v26  ;;  %8055 = vmatprep.subr.msk.bf16.mxu0 %vm309_vm0, %v9223_v25  ;;  %v10081_v25 = vld [vmem:[#allocation9_spill] sm:$0xff]  ;;  %v10082_v26 = vld [vmem:[#allocation14_spill] sm:$0xff] }
 0x351   : > { %8124 = vmatprep.subr.msk.bf16.mxu1 %vm309_vm0, %v9229_v47  ;;  %v10083_v47 = vld [vmem:[#allocation10_spill] sm:$0xff] }
 0x357   : > { %7429 = vmatpush3.bf16.xpose.msra.mxu0 %v9244_v14  ;;  %v5485_v14 = vld [vmem:[#allocation3 + $0x189] sm:$0xff] }
 0x358   : > { %7603 = vmatpush3.bf16.xpose.msra.mxu1 %v9250_v55  ;;  %8056 = vmatprep.subr.msk.bf16.mxu0 %vm309_vm0, %v9246_v60  ;;  %v5484_v60 = vld [vmem:[#allocation3 + $0x181] sm:$0xff] }
 0x359   : > { %8125 = vmatprep.subr.msk.bf16.mxu1 %vm309_vm0, %v9252_v63  ;;  %v9746_v55 = vpack.c.bf16 %v5485_v14, %v5484_v60  ;;  %v10084_v63 = vld [vmem:[#allocation15_spill] sm:$0xff] }
 0x35b   : > { %v9756_v8 = vsel %vm309_vm0, %v9746_v55, 0 }
 0x35f   : > { %7431 = vmatpush3.bf16.xpose.msra.mxu0 %v9262_v21  ;;  %v10085_v21 = vld [vmem:[#allocation11_spill] sm:$0xff] }
 0x360   : > { %7605 = vmatpush3.bf16.xpose.msra.mxu1 %v9266_v30  ;;  %8057 = vmatprep.subr.msk.bf16.mxu0 %vm309_vm0, %v10074_v6  ;;  %v10086_v30 = vld [vmem:[#allocation16_spill] sm:$0xff] }
 0x361   : > { %8126 = vmatprep.subr.msk.bf16.mxu1 %vm309_vm0, %v10075_v32  ;;  %v5716_v6 = vld [vmem:[#allocation3 + $0x110] sm:$0xff] }
 0x362   : > { %v4580_v32 = vld [vmem:[#allocation3 + $0x90] sm:$0xff] }
 0x367   : > { %7433 = vmatpush3.bf16.xpose.msra.mxu0 %v10076_v45  ;;  %v5715_v45 = vld [vmem:[#allocation3 + $0x108] sm:$0xff] }
 0x368   : > { %7607 = vmatpush3.bf16.xpose.msra.mxu1 %v10077_v53  ;;  %8058 = vmatprep.subr.msk.bf16.mxu0 %vm309_vm0, %v10078_v36  ;;  %v8236_v53 = vld [vmem:[%s10014_s4 + $0x60] sm:$0xff]  }
 0x369   : > { %8127 = vmatprep.subr.msk.bf16.mxu1 %vm309_vm0, %v10079_v52  ;;  %v4592_v52 = vpack.c.bf16 %v4581_v50, %v4580_v32  ;;  %v5834_v50 = vld [vmem:[#allocation3 + $0xf1] sm:$0xff] }
 0x36b   : > { %v4625_v14 = vsel %vm309_vm0, %v4592_v52, 0 }
 0x36e   : > { %7435 = vmatmul.mubr.msk.bf16.vlgmr.msra.gmra.mrb[16].mxu0 %vm309_vm0, %v8227_v61 }
 0x36f   : > { %7439 = vmatpush3.bf16.xpose.msra.mxu0 %v10080_v42  ;;  %7454 = vmatprep.mubr.msk.bf16.mxu0 %vm309_vm0, %v8230_v40  ;;  %v5730_v40 = vpack.c.bf16 %v5716_v6, %v5715_v45  ;;  %v4583_v42 = vld [vmem:[#allocation3 + $0xb0] sm:$0xff] }
 0x370   : > { %7609 = vmatpush3.bf16.xpose.msra.mxu1 %v10081_v25  ;;  %8059 = vmatprep.subr.msk.bf16.mxu0 %vm309_vm0, %v10082_v26  ;;  %v5718_v25 = vld [vmem:[#allocation3 + $0x128] sm:$0xff] }
 0x371   : > { %8128 = vmatprep.subr.msk.bf16.mxu1 %vm309_vm0, %v10083_v47  ;;  %v4582_v26 = vld [vmem:[#allocation3 + $0xa8] sm:$0xff]  ;;  %v5717_v47 = vld [vmem:[#allocation3 + $0x120] sm:$0xff] }
 0x372   : > { %v4593_v60 = vpack.c.bf16 %v4583_v42, %v4582_v26  ;;  %v8240_v42 = vld [vmem:[%s10014_s4 + $0x70] sm:$0xff]  }
 0x377   : > { %7441 = vmatpush3.bf16.xpose.msra.mxu0 %v10084_v63  ;;  %v5757_v63 = vsel %vm309_vm0, %v5730_v40, 0 }
 0x378   : > { %7611 = vmatpush3.bf16.xpose.msra.mxu1 %v10085_v21  ;;  %8060 = vmatprep.subr.msk.bf16.mxu0 %vm309_vm0, %v10086_v30  ;;  %v5731_v21 = vpack.c.bf16 %v5718_v25, %v5717_v47  ;;  %v4585_v30 = vld [vmem:[#allocation3 + $0xc8] sm:$0xff] }
 0x379   : > { %8129 = vmatprep.subr.msk.bf16.mxu1 %vm309_vm0, %v9746_v55 }
 0x37f   : > { %7443 = vmatpush3.bf16.xpose.msra.mxu0 %v9494_v3  ;;  %v8234_v3 = vld [vmem:[%s10014_s4 + $0x60] sm:$0xff]  }
 0x380   : > { %7613 = vmatpush3.bf16.xpose.msra.mxu1 %v9756_v8  ;;  %8061 = vmatprep.subr.msk.bf16.mxu0 %vm309_vm0, %v10087_v31  ;;  %v5720_v31 = vld [vmem:[#allocation3 + $0x140] sm:$0xff] }
 0x381   : > { %8130 = vmatprep.subr.msk.bf16.mxu1 %vm309_vm0, %v10088_v1  ;;  %v4584_v1 = vld [vmem:[#allocation3 + $0xc0] sm:$0xff] }
 0x387   : > { %7615 = vmatmul.mubr.msk.bf16.vlgmr.msra.gmra.mrb[16].mxu1 %vm309_vm0, %v8229_v5  ;;  %7445 = vmatpush3.bf16.xpose.msra.mxu0 %v10089_v29  ;;  %v5719_v5 = vld [vmem:[#allocation3 + $0x138] sm:$0xff]  ;;  %v4594_v29 = vpack.c.bf16 %v4585_v30, %v4584_v1  ;;  %v5839_v30 = vld [vmem:[#allocation3 + $0x129] sm:$0xff] }
 0x388   : > { %7619 = vmatpush3.bf16.xpose.msra.mxu1 %v10090_v62  ;;  %8062 = vmatprep.subr.msk.bf16.mxu0 %vm309_vm0, %v10091_v37  ;;  %v5760_v62 = vsel %vm309_vm0, %v5731_v21, 0  ;;  %v5732_v37 = vpack.c.bf16 %v5720_v31, %v5719_v5  ;;  %v4936_v31 = vld [vmem:[%s10015_s5 + $0x18] sm:$0xff] }
 0x389   : > { %8131 = vmatprep.subr.msk.bf16.mxu1 %vm309_vm0, %v10092_v15  ;;  %7634 = vmatprep.mubr.msk.bf16.mxu1 %vm309_vm0, %v8232_v59  ;;  %v4628_v59 = vsel %vm309_vm0, %v4593_v60, 0  ;;  %v4587_v15 = vld [vmem:[#allocation3 + $0xe0] sm:$0xff]  ;;  %v4704_v1 = vld [vmem:[#allocation3 + $0xa9] sm:$0xff] }
 0x38a   : > { %v5838_v5 = vld [vmem:[#allocation3 + $0x121] sm:$0xff] }
 0x38f   : > { %7447 = vmatpush3.bf16.xpose.msra.mxu0 %v10093_v18  ;;  %v5722_v18 = vld [vmem:[#allocation3 + $0x158] sm:$0xff] }
 0x390   : > { %7621 = vmatpush3.bf16.xpose.msra.mxu1 %v10094_v48  ;;  %8063 = vmatprep.subr.msk.bf16.mxu0 %vm309_vm0, %v10095_v0  ;;  %v4586_v48 = vld [vmem:[#allocation3 + $0xd8] sm:$0xff]  ;;  %v5721_v0 = vld [vmem:[#allocation3 + $0x150] sm:$0xff] }
 0x391   : > { %8132 = vmatprep.subr.msk.bf16.mxu1 %vm309_vm0, %v9540_v33  ;;  %v4573_v33 = vld [vmem:[#allocation3 + $0x38] sm:$0xff] }
 0x397   : > { %7449 = vmatpush3.bf16.xpose.msra.mxu0 %v9550_v27  ;;  %v4572_v27 = vld [vmem:[#allocation3 + $0x30] sm:$0xff] }
 0x398   : > { %7623 = vmatpush3.bf16.xpose.msra.mxu1 %v10096_v56  ;;  %8064 = vmatprep.subr.msk.bf16.mxu0 %vm309_vm0, %v10097_v49  ;;  %v4588_v38 = vpack.c.bf16 %v4573_v33, %v4572_v27  ;;  %v4631_v56 = vsel %vm309_vm0, %v4594_v29, 0  ;;  %v4595_v49 = vpack.c.bf16 %v4587_v15, %v4586_v48  ;;  %v5724_v33 = vld [vmem:[#allocation3 + $0x170] sm:$0xff]  ;;  %v4934_v15 = vld [vmem:[%s10015_s5 + $0x8] sm:$0xff]  ;;  %v5841_v48 = vld [vmem:[#allocation3 + $0x141] sm:$0xff] }
 0x399   : > { %8133 = vmatprep.subr.msk.bf16.mxu1 %vm309_vm0, %v9558_v7  ;;  %v4694_v27 = vld [vmem:[#allocation3 + $0x31] sm:$0xff] }
 0x39a   : > { %v4613_v7 = vsel %vm309_vm0, %v4588_v38, 0 }
 0x39f   : > { %7451 = vmatpush3.bf16.xpose.msra.mxu0 %v9568_v51  ;;  %v4577_v51 = vld [vmem:[#allocation3 + $0x68] sm:$0xff] }
 0x3a0   : > { %7625 = vmatpush3.bf16.xpose.msra.mxu1 %v10098_v58  ;;  %8065 = vmatprep.subr.msk.bf16.mxu0 %vm309_vm0, %v10099_v46  ;;  %v5763_v58 = vsel %vm309_vm0, %v5732_v37, 0  ;;  %v5733_v46 = vpack.c.bf16 %v5722_v18, %v5721_v0  ;;  %v4707_v18 = vld [vmem:[#allocation3 + $0xc9] sm:$0xff]  ;;  %v4706_v0 = vld [vmem:[#allocation3 + $0xc1] sm:$0xff] }
 0x3a1   : > { %8134 = vmatprep.subr.msk.bf16.mxu1 %vm309_vm0, %v10100_v2  ;;  %v4695_v2 = vld [vmem:[#allocation3 + $0x39] sm:$0xff] }
 0x3a2   : > { %v5766_v19 = vsel %vm309_vm0, %v5733_v46, 0 }
 0x3a7   : > { %7453 = vmatpush3.bf16.xpose.msra.mxu0 %v10101_v10  ;;  %v4634_v10 = vsel %vm309_vm0, %v4595_v49, 0 }
 0x3a8   : > { %7627 = vmatpush3.bf16.xpose.msra.mxu1 %v9591_v12  ;;  %8066 = vmatprep.subr.msk.bf16.mxu0 %vm309_vm0, %v4588_v38  ;;  %v4576_v12 = vld [vmem:[#allocation3 + $0x60] sm:$0xff]  ;;  %v5723_v38 = vld [vmem:[#allocation3 + $0x168] sm:$0xff] }
 0x3a9   : > { %8135 = vmatprep.subr.msk.bf16.mxu1 %vm309_vm0, %v9593_v4  ;;  %v4616_v4 = vsel %vm309_vm0, %v4589_v20, 0  ;;  %v4590_v11 = vpack.c.bf16 %v4577_v51, %v4576_v12  ;;  %v5734_v57 = vpack.c.bf16 %v5724_v33, %v5723_v38  ;;  %v8238_v51 = vld [vmem:[%s10014_s4 + $0x70] sm:$0xff]  }
 0x3aa   : > { %v4709_v33 = vld [vmem:[#allocation3 + $0xe1] sm:$0xff]  ;;  %v4708_v38 = vld [vmem:[#allocation3 + $0xd9] sm:$0xff] }
 0x3ab   : > { %v4619_v28 = vsel %vm309_vm0, %v4590_v11, 0  ;;  %v5769_v12 = vsel %vm309_vm0, %v5734_v57, 0 }
 0x3ae   : > { %7455 = vmatmul.mubr.msk.bf16.vlgmr.msra.gmra.mrb[16].mxu0 %vm309_vm0, %v8231_v16  ;;  %v4710_v16 = vpack.c.bf16 %v4695_v2, %v4694_v27  ;;  %v5843_v27 = vld [vmem:[#allocation3 + $0x159] sm:$0xff] }
 0x3af   : > { %7459 = vmatpush3.bf16.xpose.msra.mxu0 %v4613_v7  ;;  %7474 = vmatprep.mubr.msk.bf16.mxu0 %vm309_vm0, %v8234_v3  ;;  %v8235_v3 = vld [vmem:[%s10014_s4 + $0x68] sm:$0xff]  }
 0x3b0   : > { %7629 = vmatpush3.bf16.xpose.msra.mxu1 %v9604_v43  ;;  %8067 = vmatprep.subr.msk.bf16.mxu0 %vm309_vm0, %v4589_v20  ;;  %v4579_v43 = vld [vmem:[#allocation3 + $0x80] sm:$0xff]  ;;  %v4697_v7 = vld [vmem:[#allocation3 + $0x51] sm:$0xff]  ;;  %v4696_v20 = vld [vmem:[#allocation3 + $0x49] sm:$0xff]  ;;  %v4735_v9 = vsel %vm309_vm0, %v4710_v16, 0 }
 0x3b1   : > { %8136 = vmatprep.subr.msk.bf16.mxu1 %vm309_vm0, %v9606_v35  ;;  %v5714_v35 = vld [vmem:[#allocation3 + $0xf8] sm:$0xff]  ;;  %v4591_v41 = vpack.c.bf16 %v4579_v43, %v4578_v13  ;;  %v4711_v54 = vpack.c.bf16 %v4697_v7, %v4696_v20  ;;  %v4699_v43 = vld [vmem:[#allocation3 + $0x69] sm:$0xff]  ;;  %v4698_v13 = vld [vmem:[#allocation3 + $0x61] sm:$0xff] }
 0x3b2   : > { %v5729_v39 = vpack.c.bf16 %v5714_v35, %v5713_v17  ;;  %v4816_v7 = vld [vmem:[#allocation3 + $0x32] sm:$0xff]  ;;  %v4817_v20 = vld [vmem:[#allocation3 + $0x3a] sm:$0xff] }
 0x3b3   : > { %v4622_v36 = vsel %vm309_vm0, %v4591_v41, 0  ;;  %v4738_v17 = vsel %vm309_vm0, %v4711_v54, 0 }
 0x3b4   : > { %v5754_v61 = vsel %vm309_vm0, %v5729_v39, 0 }
 0x3b7   : > { %7461 = vmatpush3.bf16.xpose.msra.mxu0 %v4616_v4  ;;  %v5727_v4 = vld [vmem:[#allocation3 + $0x198] sm:$0xff] }
 0x3b8   : > { %7631 = vmatpush3.bf16.xpose.msra.mxu1 %v9616_v22  ;;  %8068 = vmatprep.subr.msk.bf16.mxu0 %vm309_vm0, %v4590_v11  ;;  %v8233_v22 = vld [vmem:[%s10014_s4 + $0x58] sm:$0xff]   ;;  %v5728_v11 = vld [vmem:[#allocation3 + $0x1a0] sm:$0xff] }
 0x3b9   : > { %8137 = vmatprep.subr.msk.bf16.mxu1 %vm309_vm0, %v9815_v23  ;;  %v5736_v35 = vpack.c.bf16 %v5728_v11, %v5727_v4 }
 0x3bf   : > { %7463 = vmatpush3.bf16.xpose.msra.mxu0 %v4619_v28  ;;  %v4712_v28 = vpack.c.bf16 %v4699_v43, %v4698_v13  ;;  %v8239_v43 = vld [vmem:[%s10014_s4 + $0x78] sm:$0xff]   ;;  %v4819_v13 = vld [vmem:[#allocation3 + $0x52] sm:$0xff] }
 0x3c0   : > { %7633 = vmatpush3.bf16.xpose.msra.mxu1 %v9824_v44  ;;  %8069 = vmatprep.subr.msk.bf16.mxu0 %vm309_vm0, %v4591_v41  ;;  %v4701_v41 = vld [vmem:[#allocation3 + $0x81] sm:$0xff] }
 0x3c1   : > { %8138 = vmatprep.subr.msk.bf16.mxu1 %vm309_vm0, %v5729_v39  ;;  %v5835_v39 = vld [vmem:[#allocation3 + $0xf9] sm:$0xff]  ;;  %v4741_v6 = vsel %vm309_vm0, %v4712_v28, 0 }
 0x3c2   : > { %v5850_v45 = vpack.c.bf16 %v5835_v39, %v5834_v50  ;;  %v4820_v50 = vld [vmem:[#allocation3 + $0x62] sm:$0xff] }
 0x3c4   : > { %v5875_v26 = vsel %vm309_vm0, %v5850_v45, 0 }
 0x3c7   : > { %7635 = vmatmul.mubr.msk.bf16.vlgmr.msra.gmra.mrb[16].mxu1 %vm309_vm0, %v8233_v22  ;;  %7465 = vmatpush3.bf16.xpose.msra.mxu0 %v4622_v36  ;;  %v4700_v22 = vld [vmem:[#allocation3 + $0x79] sm:$0xff]  ;;  %v5837_v36 = vld [vmem:[#allocation3 + $0x111] sm:$0xff] }
 0x3c8   : > { %7639 = vmatpush3.bf16.xpose.msra.mxu1 %v5754_v61  ;;  %8070 = vmatprep.subr.msk.bf16.mxu0 %vm309_vm0, %v4592_v52  ;;  %v4713_v32 = vpack.c.bf16 %v4701_v41, %v4700_v22  ;;  %v4702_v52 = vld [vmem:[#allocation3 + $0x91] sm:$0xff]  ;;  %v5849_v22 = vld [vmem:[#allocation3 + $0x1a1] sm:$0xff] }
 0x3c9   : > { %8139 = vmatprep.subr.msk.bf16.mxu1 %vm309_vm0, %v5730_v40  ;;  %7654 = vmatprep.mubr.msk.bf16.mxu1 %vm309_vm0, %v8236_v53  ;;  %v8237_v53 = vld [vmem:[%s10014_s4 + $0x68] sm:$0xff]   ;;  %v5836_v40 = vld [vmem:[#allocation3 + $0x109] sm:$0xff] }
 0x3ca   : > { %v4744_v25 = vsel %vm309_vm0, %v4713_v32, 0  ;;  %v5851_v47 = vpack.c.bf16 %v5837_v36, %v5836_v40  ;;  %v4823_v36 = vld [vmem:[#allocation3 + $0x82] sm:$0xff] }
 0x3cf   : > { %7467 = vmatpush3.bf16.xpose.msra.mxu0 %v4625_v14  ;;  %v4935_v14 = vld [vmem:[%s10015_s5 + $0x10] sm:$0xff] }
 0x3d0   : > { %7641 = vmatpush3.bf16.xpose.msra.mxu1 %v5757_v63  ;;  %8071 = vmatprep.subr.msk.bf16.mxu0 %vm309_vm0, %v4593_v60  ;;  %v4933_v60 = vld [vmem:[%s10015_s5] sm:$0xff]  ;;  %v8255_v63 = vmov 0  }
 0x3d1   : > { %8140 = vmatprep.subr.msk.bf16.mxu1 %vm309_vm0, %v5731_v21  ;;  %8173 = vset.pattern.permute.xlu1 %v8255_v63  ;;  %v4705_v21 = vld [vmem:[#allocation3 + $0xb1] sm:$0xff] }
 0x3d2   : > { %8172 = vset.pattern.permute.xlu0 %v8255_v63  ;;  %4949 = vperm.xlu1 %8173, %v4935_v14   ;;  %v8244_v63 = vld [vmem:[%s10014_s4 + $0x80] sm:$0xff]  }
 0x3d3   : > { %4939 = vperm.xlu0 %8172, %v4933_v60  }
 0x3d6   : > { %4954 = vperm.xlu1 %8173, %v4936_v31  }
 0x3d7   : > { %7469 = vmatpush3.bf16.xpose.msra.mxu0 %v4628_v59  ;;  %4944 = vperm.xlu0 %8172, %v4934_v15  }
 0x3d8   : > { %7643 = vmatpush3.bf16.xpose.msra.mxu1 %v5760_v62  ;;  %8072 = vmatprep.subr.msk.bf16.mxu0 %vm309_vm0, %v4594_v29  ;;  %v4715_v29 = vpack.c.bf16 %v4705_v21, %v4704_v1  ;;  %v5878_v62 = vsel %vm309_vm0, %v5851_v47, 0 }
 0x3d9   : > { %8141 = vmatprep.subr.msk.bf16.mxu1 %vm309_vm0, %v5732_v37  ;;  %v5852_v37 = vpack.c.bf16 %v5839_v30, %v5838_v5  ;;  %v4826_v5 = vld [vmem:[#allocation3 + $0xaa] sm:$0xff] }
 0x3da   : > { %6083 = vperm.xlu1 %8173, %v4934_v15  }
 0x3db   : > { %6078 = vperm.xlu0 %8172, %v4933_v60   ;;  %v5958_v60 = vld [vmem:[#allocation3 + $0x112] sm:$0xff] }
 0x3de   : > { %6093 = vperm.xlu1 %8173, %v4936_v31  }
 0x3df   : > { %7471 = vmatpush3.bf16.xpose.msra.mxu0 %v4631_v56  ;;  %v5840_v56 = vld [vmem:[#allocation3 + $0x139] sm:$0xff]  ;;  %6088 = vperm.xlu0 %8172, %v4935_v14   ;;  %v5957_v14 = vld [vmem:[#allocation3 + $0x10a] sm:$0xff] }
 0x3e0   : > { %7645 = vmatpush3.bf16.xpose.msra.mxu1 %v5763_v58  ;;  %8073 = vmatprep.subr.msk.bf16.mxu0 %vm309_vm0, %v4595_v49  ;;  %v4750_v49 = vsel %vm309_vm0, %v4715_v29, 0  ;;  %v4716_v58 = vpack.c.bf16 %v4707_v18, %v4706_v0  ;;  %v5853_v2 = vpack.c.bf16 %v5841_v48, %v5840_v56  ;;  %v5972_v1 = vpack.c.bf16 %v5958_v60, %v5957_v14  ;;  %v4828_v0 = vld [vmem:[#allocation3 + $0xc2] sm:$0xff]  ;;  %v4829_v56 = vld [vmem:[#allocation3 + $0xca] sm:$0xff] }
 0x3e1   : > { %8142 = vmatprep.subr.msk.bf16.mxu1 %vm309_vm0, %v5733_v46  ;;  %v5881_v46 = vsel %vm309_vm0, %v5852_v37, 0 }
 0x3e2   : > { %v5999_v18 = vsel %vm309_vm0, %v5972_v1, 0 }
 0x3e7   : > { %7473 = vmatpush3.bf16.xpose.msra.mxu0 %v4634_v10  ;;  %v5842_v10 = vld [vmem:[#allocation3 + $0x151] sm:$0xff] }
 0x3e8   : > { %7647 = vmatpush3.bf16.xpose.msra.mxu1 %v5766_v19  ;;  %8074 = vmatprep.subr.msk.bf16.mxu0 %vm309_vm0, %v4710_v16  ;;  %v4753_v16 = vsel %vm309_vm0, %v4716_v58, 0  ;;  %v4717_v19 = vpack.c.bf16 %v4709_v33, %v4708_v38  ;;  %v4830_v38 = vld [vmem:[#allocation3 + $0xda] sm:$0xff] }
 0x3e9   : > { %8143 = vmatprep.subr.msk.bf16.mxu1 %vm309_vm0, %v5734_v57  ;;  %v5884_v57 = vsel %vm309_vm0, %v5853_v2, 0 }
 0x3ee   : > { %7475 = vmatmul.mubr.msk.bf16.vlgmr.msra.gmra.mrb[16].mxu0 %vm309_vm0, %v8235_v3  ;;  %v5854_v3 = vpack.c.bf16 %v5843_v27, %v5842_v10  ;;  %v4831_v10 = vld [vmem:[#allocation3 + $0xe2] sm:$0xff] }
 0x3ef   : > { %7479 = vmatpush3.bf16.xpose.msra.mxu0 %v4735_v9  ;;  %7494 = vmatprep.mubr.msk.bf16.mxu0 %vm309_vm0, %v8238_v51  ;;  %v5845_v51 = vld [vmem:[#allocation3 + $0x171] sm:$0xff]  ;;  %v5844_v9 = vld [vmem:[#allocation3 + $0x169] sm:$0xff] }
 0x3f0   : > { %7649 = vmatpush3.bf16.xpose.msra.mxu1 %v5769_v12  ;;  %8075 = vmatprep.subr.msk.bf16.mxu0 %vm309_vm0, %v4711_v54  ;;  %v4756_v54 = vsel %vm309_vm0, %v4717_v19, 0  ;;  %v4832_v12 = vpack.c.bf16 %v4817_v20, %v4816_v7  ;;  %v5887_v4 = vsel %vm309_vm0, %v5854_v3, 0  ;;  %v5855_v11 = vpack.c.bf16 %v5845_v51, %v5844_v9  ;;  %v5965_v51 = vld [vmem:[#allocation3 + $0x16a] sm:$0xff]  ;;  %v5966_v9 = vld [vmem:[#allocation3 + $0x172] sm:$0xff] }
 0x3f1   : > { %8144 = vmatprep.subr.msk.bf16.mxu1 %vm309_vm0, %v9676_v24  ;;  %v5775_v24 = vsel %vm309_vm0, %v5736_v35, 0 }
 0x3f2   : > { %v5890_v39 = vsel %vm309_vm0, %v5855_v11, 0 }
 0x3f7   : > { %7481 = vmatpush3.bf16.xpose.msra.mxu0 %v4738_v17  ;;  %v8242_v17 = vld [vmem:[%s10014_s4 + $0x80] sm:$0xff]  }
 0x3f8   : > { %7651 = vmatpush3.bf16.xpose.msra.mxu1 %v9686_v34  ;;  %8076 = vmatprep.subr.msk.bf16.mxu0 %vm309_vm0, %v4712_v28  ;;  %v4703_v34 = vld [vmem:[#allocation3 + $0x99] sm:$0xff]  ;;  %v4857_v28 = vsel %vm309_vm0, %v4832_v12, 0 }
 0x3f9   : > { %8145 = vmatprep.subr.msk.bf16.mxu1 %vm309_vm0, %v5736_v35  ;;  %v4714_v61 = vpack.c.bf16 %v4703_v34, %v4702_v52  ;;  %v4818_v35 = vld [vmem:[#allocation3 + $0x4a] sm:$0xff]  ;;  %v5956_v52 = vld [vmem:[#allocation3 + $0xfa] sm:$0xff] }
 0x3fa   : > { %v4833_v41 = vpack.c.bf16 %v4819_v13, %v4818_v35  ;;  %v5969_v35 = vld [vmem:[#allocation3 + $0x19a] sm:$0xff]  ;;  %v5970_v13 = vld [vmem:[#allocation3 + $0x1a2] sm:$0xff] }
 0x3fb   : > { %v4747_v59 = vsel %vm309_vm0, %v4714_v61, 0 }
 0x3ff   : > { %7483 = vmatpush3.bf16.xpose.msra.mxu0 %v4741_v6  ;;  %v4821_v6 = vld [vmem:[#allocation3 + $0x6a] sm:$0xff] }
 0x400   : > { %7653 = vmatpush3.bf16.xpose.msra.mxu1 %v5775_v24  ;;  %8077 = vmatprep.subr.msk.bf16.mxu0 %vm309_vm0, %v4713_v32  ;;  %v5848_v24 = vld [vmem:[#allocation3 + $0x199] sm:$0xff]  ;;  %v4834_v34 = vpack.c.bf16 %v4821_v6, %v4820_v50 }
 0x401   : > { %8146 = vmatprep.subr.msk.bf16.mxu1 %vm309_vm0, %v5850_v45  ;;  %v5857_v32 = vpack.c.bf16 %v5849_v22, %v5848_v24  ;;  %v4860_v45 = vsel %vm309_vm0, %v4833_v41, 0 }
 0x402   : > { %v4863_v40 = vsel %vm309_vm0, %v4834_v34, 0 }
 0x407   : > { %7655 = vmatmul.mubr.msk.bf16.vlgmr.msra.gmra.mrb[16].mxu1 %vm309_vm0, %v8237_v53  ;;  %7485 = vmatpush3.bf16.xpose.msra.mxu0 %v4744_v25  ;;  %v4822_v53 = vld [vmem:[#allocation3 + $0x7a] sm:$0xff] }
 0x408   : > { %7659 = vmatpush3.bf16.xpose.msra.mxu1 %v5875_v26  ;;  %8078 = vmatprep.subr.msk.bf16.mxu0 %vm309_vm0, %v4714_v61  ;;  %v5896_v61 = vsel %vm309_vm0, %v5857_v32, 0  ;;  %v8241_v26 = vld [vmem:[%s10014_s4 + $0x78] sm:$0xff]  }
 0x409   : > { %8147 = vmatprep.subr.msk.bf16.mxu1 %vm309_vm0, %v5851_v47  ;;  %7674 = vmatprep.mubr.msk.bf16.mxu1 %vm309_vm0, %v8240_v42  ;;  %v4835_v42 = vpack.c.bf16 %v4823_v36, %v4822_v53  ;;  %v4825_v47 = vld [vmem:[#allocation3 + $0x9a] sm:$0xff] }
 0x40b   : > { %v4866_v21 = vsel %vm309_vm0, %v4835_v42, 0 }
 0x40f   : > { %7487 = vmatpush3.bf16.xpose.msra.mxu0 %v4747_v59  ;;  %v4827_v59 = vld [vmem:[#allocation3 + $0xb2] sm:$0xff] }
 0x410   : > { %7661 = vmatpush3.bf16.xpose.msra.mxu1 %v5878_v62  ;;  %8079 = vmatprep.subr.msk.bf16.mxu0 %vm309_vm0, %v4715_v29  ;;  %v5959_v29 = vld [vmem:[#allocation3 + $0x122] sm:$0xff]  ;;  %v5960_v62 = vld [vmem:[#allocation3 + $0x12a] sm:$0xff]  ;;  %v4837_v15 = vpack.c.bf16 %v4827_v59, %v4826_v5 }
 0x411   : > { %8148 = vmatprep.subr.msk.bf16.mxu1 %vm309_vm0, %v5852_v37  ;;  %v5973_v48 = vpack.c.bf16 %v5960_v62, %v5959_v29 }
 0x413   : > { %v6002_v33 = vsel %vm309_vm0, %v5973_v48, 0 }
 0x417   : > { %7489 = vmatpush3.bf16.xpose.msra.mxu0 %v4750_v49  ;;  %v5961_v49 = vld [vmem:[#allocation3 + $0x13a] sm:$0xff] }
 0x418   : > { %7663 = vmatpush3.bf16.xpose.msra.mxu1 %v5881_v46  ;;  %8080 = vmatprep.subr.msk.bf16.mxu0 %vm309_vm0, %v4716_v58  ;;  %v5962_v58 = vld [vmem:[#allocation3 + $0x142] sm:$0xff]  ;;  %v4872_v46 = vsel %vm309_vm0, %v4837_v15, 0 }
 0x419   : > { %8149 = vmatprep.subr.msk.bf16.mxu1 %vm309_vm0, %v5853_v2  ;;  %v4838_v2 = vpack.c.bf16 %v4829_v56, %v4828_v0  ;;  %v5974_v27 = vpack.c.bf16 %v5962_v58, %v5961_v49 }
 0x41b   : > { %v6005_v7 = vsel %vm309_vm0, %v5974_v27, 0 }
 0x41f   : > { %7491 = vmatpush3.bf16.xpose.msra.mxu0 %v4753_v16  ;;  %v5963_v16 = vld [vmem:[#allocation3 + $0x152] sm:$0xff] }
 0x420   : > { %7665 = vmatpush3.bf16.xpose.msra.mxu1 %v5884_v57  ;;  %8081 = vmatprep.subr.msk.bf16.mxu0 %vm309_vm0, %v4717_v19  ;;  %v5964_v19 = vld [vmem:[#allocation3 + $0x15a] sm:$0xff]  ;;  %v4875_v57 = vsel %vm309_vm0, %v4838_v2, 0 }
 0x421   : > { %8150 = vmatprep.subr.msk.bf16.mxu1 %vm309_vm0, %v5854_v3  ;;  %v4839_v3 = vpack.c.bf16 %v4831_v10, %v4830_v38  ;;  %v5975_v20 = vpack.c.bf16 %v5964_v19, %v5963_v16  ;;  %v6118_v19 = vld [vmem:[%s9984_s20 + $0x28] sm:$0xff] }
 0x427   : > { %7493 = vmatpush3.bf16.xpose.msra.mxu0 %v4756_v54  ;;  %v4878_v54 = vsel %vm309_vm0, %v4839_v3, 0 }
 0x428   : > { %7667 = vmatpush3.bf16.xpose.msra.mxu1 %v5887_v4  ;;  %8082 = vmatprep.subr.msk.bf16.mxu0 %vm309_vm0, %v4832_v12  ;;  %v6008_v12 = vsel %vm309_vm0, %v5975_v20, 0  ;;  %v5976_v4 = vpack.c.bf16 %v5966_v9, %v5965_v51 }
 0x429   : > { %8151 = vmatprep.subr.msk.bf16.mxu1 %vm309_vm0, %v5855_v11  ;;  %v8243_v11 = vld [vmem:[%s10014_s4 + $0x88] sm:$0xff]  }
 0x42e   : > { %7495 = vmatmul.mubr.msk.bf16.vlgmr.msra.gmra.mrb[16].mxu0 %vm309_vm0, %v8239_v43  ;;  %v6011_v43 = vsel %vm309_vm0, %v5976_v4, 0 }
 0x42f   : > { %7499 = vmatpush3.bf16.xpose.msra.mxu0 %v4857_v28  ;;  %7514 = vmatprep.mubr.msk.bf16.mxu0 %vm309_vm0, %v8242_v17  ;;  %v5978_v17 = vpack.c.bf16 %v5970_v13, %v5969_v35  ;;  %v6117_v35 = vld [vmem:[%s9984_s20 + $0x18] sm:$0xff] }
 0x430   : > { %7669 = vmatpush3.bf16.xpose.msra.mxu1 %v5890_v39  ;;  %8083 = vmatprep.subr.msk.bf16.mxu0 %vm309_vm0, %v4833_v41  ;;  %v8245_v41 = vld [vmem:[%s10014_s4 + $0x88] sm:$0xff]  }
 0x431   : > { %8152 = vmatprep.subr.msk.bf16.mxu1 %vm309_vm0, %v9746_v55  ;;  %v5955_v55 = vld [vmem:[#allocation3 + $0xf2] sm:$0xff]  ;;  %v6017_v28 = vsel %vm309_vm0, %v5978_v17, 0 }
 0x432   : > { %v5971_v25 = vpack.c.bf16 %v5956_v52, %v5955_v55 }
 0x434   : > { %v5996_v31 = vsel %vm309_vm0, %v5971_v25, 0 }
 0x437   : > { %7501 = vmatpush3.bf16.xpose.msra.mxu0 %v4860_v45 }
 0x438   : > { %7671 = vmatpush3.bf16.xpose.msra.mxu1 %v9756_v8  ;;  %8084 = vmatprep.subr.msk.bf16.mxu0 %vm309_vm0, %v4834_v34  ;;  %v4824_v8 = vld [vmem:[#allocation3 + $0x92] sm:$0xff] }
 0x439   : > { %8153 = vmatprep.subr.msk.bf16.mxu1 %vm309_vm0, %v5857_v32  ;;  %v4836_v30 = vpack.c.bf16 %v4825_v47, %v4824_v8 }
 0x43b   : > { %v4869_v37 = vsel %vm309_vm0, %v4836_v30, 0 }
 0x43f   : > { %7503 = vmatpush3.bf16.xpose.msra.mxu0 %v4863_v40  ;;  %v4979_v40 = vld [vmem:[%s9984_s20 + $0x20] sm:$0xff] }
 0x440   : > { %7673 = vmatpush3.bf16.xpose.msra.mxu1 %v5896_v61  ;;  %8085 = vmatprep.subr.msk.bf16.mxu0 %vm309_vm0, %v4835_v42 }
 0x441   : > { %8154 = vmatprep.subr.msk.bf16.mxu1 %vm309_vm0, %v5971_v25 }
 0x447   : > { %7675 = vmatmul.mubr.msk.bf16.vlgmr.msra.gmra.mrb[16].mxu1 %vm309_vm0, %v8241_v26  ;;  %7505 = vmatpush3.bf16.xpose.msra.mxu0 %v4866_v21  ;;  %v4977_v26 = vld [vmem:[%s9984_s20] sm:$0xff] }
 0x448   : > { %7679 = vmatpush3.bf16.xpose.msra.mxu1 %v5996_v31  ;;  %8086 = vmatprep.subr.msk.bf16.mxu0 %vm309_vm0, %v4836_v30 }
 0x449   : > { %8155 = vmatprep.subr.msk.bf16.mxu1 %vm309_vm0, %v5972_v1  ;;  %7694 = vmatprep.mubr.msk.bf16.mxu1 %vm309_vm0, %v8244_v63  ;;  %v4980_v63 = vld [vmem:[%s9984_s20 + $0x30] sm:$0xff] }
 0x44a   : > { %v4978_v1 = vld [vmem:[%s9984_s20 + $0x10] sm:$0xff] }
 0x44f   : > { %7507 = vmatpush3.bf16.xpose.msra.mxu0 %v4869_v37 }
 0x450   : > { %7681 = vmatpush3.bf16.xpose.msra.mxu1 %v5999_v18  ;;  %8087 = vmatprep.subr.msk.bf16.mxu0 %vm309_vm0, %v4837_v15 }
 0x451   : > { %8156 = vmatprep.subr.msk.bf16.mxu1 %vm309_vm0, %v5973_v48  ;;  %v4950_v39 = vpop.permute.xlu1 %4949 }
 0x452   : > { %v4940_v24 = vpop.permute.xlu0 %4939 }
 0x455   : > { %v4955_v22 = vpop.permute.xlu1 %4954 }
 0x456   : > { %v4945_v32 = vpop.permute.xlu0 %4944 }
 0x457   : > { %7509 = vmatpush3.bf16.xpose.msra.mxu0 %v4872_v46 }
 0x458   : > { %7683 = vmatpush3.bf16.xpose.msra.mxu1 %v6002_v33  ;;  %8088 = vmatprep.subr.msk.bf16.mxu0 %vm309_vm0, %v4838_v2 }
 0x459   : > { %8157 = vmatprep.subr.msk.bf16.mxu1 %vm309_vm0, %v5974_v27  ;;  %v6084_v15 = vpop.permute.xlu1 %6083 }
 0x45a   : > { %v6079_v37 = vpop.permute.xlu0 %6078 }
 0x45d   : > { %v6094_v49 = vpop.permute.xlu1 %6093 }
 0x45e   : > { %v6089_v18 = vpop.permute.xlu0 %6088 }
 0x45f   : > { %7511 = vmatpush3.bf16.xpose.msra.mxu0 %v4875_v57 }
 0x460   : > { %7685 = vmatpush3.bf16.xpose.msra.mxu1 %v6005_v7  ;;  %8089 = vmatprep.subr.msk.bf16.mxu0 %vm309_vm0, %v4839_v3 }
 0x461   : > { %8158 = vmatprep.subr.msk.bf16.mxu1 %vm309_vm0, %v5975_v20  ;;  %v6116_v20 = vld [vmem:[%s9984_s20 + $0x8] sm:$0xff] }
 0x467   : > { %7513 = vmatpush3.bf16.xpose.msra.mxu0 %v4878_v54 }
 0x468   : > { %7687 = vmatpush3.bf16.xpose.msra.mxu1 %v6008_v12  ;;  %v6119_v12 = vld [vmem:[%s9984_s20 + $0x38] sm:$0xff] }
 0x469   : > { %8159 = vmatprep.subr.msk.bf16.mxu1 %vm309_vm0, %v5976_v4 }
 0x46e   : > { %7515 = vmatmul.mubr.msk.bf16.vlgmr.msra.gmra.mrb[16].mxu0 %vm309_vm0, %v8243_v11 }
 0x470   : > { %7689 = vmatpush3.bf16.xpose.msra.mxu1 %v6011_v43 }
 0x471   : > { %8160 = vmatprep.subr.msk.bf16.mxu1 %vm309_vm0, %v9815_v23 }
 0x478   : > { %7691 = vmatpush3.bf16.xpose.msra.mxu1 %v9824_v44 }
 0x479   : > { %8161 = vmatprep.subr.msk.bf16.mxu1 %vm309_vm0, %v5978_v17 }
 0x480   : > { %7693 = vmatpush3.bf16.xpose.msra.mxu1 %v6017_v28 }
 0x487   : > { %7695 = vmatmul.mubr.msk.bf16.vlgmr.msra.gmra.mrb[16].mxu1 %vm309_vm0, %v8245_v41 }
 0x541   : > { %v7516_v23 = vpop.f32.mrb[16].mxu0 }
 0x542   : > { %v4959_v50 = vadd.f32 %v7516_v23, %v4950_v39  ;;  %v4914_v6 = vpop.f32.mrb[17].mxu0 }
 0x543   : > { %v4957_v44 = vadd.f32 %v4940_v24, %v4914_v6  ;;  %v7517_v45 = vpop.f32.mrb[18].mxu0 }
 0x544   : > { %vm4963_vm2 = vcmp.ge.f32.partialorder %v4959_v50, 0.0  ;;  %v4967_v34 = vmul.f32 0.2, %v4959_v50  ;;  %v4960_v53 = vadd.f32 %v7517_v45, %v4955_v22  ;;  %v4917_v36 = vpop.f32.mrb[19].mxu0 }
 0x545   : > { %vm4961_vm0 = vcmp.ge.f32.partialorder %v4957_v44, 0.0  ;;  %v4965_v55 = vmul.f32 0.2, %v4957_v44  ;;  %v4958_v52 = vadd.f32 %v4945_v32, %v4917_v36 }
 0x546   : > { %v4971_v61 = vsel %vm4963_vm2, %v4959_v50, %v4967_v34  ;;  %vm4964_vm7 = vcmp.ge.f32.partialorder %v4960_v53, 0.0  ;;  %v4968_v42 = vmul.f32 0.2, %v4960_v53 }
 0x547   : > { %v4975_v25 = vmul.f32 0.1, %v4971_v61  ;;  %v4969_v8 = vsel %vm4961_vm0, %v4957_v44, %v4965_v55  ;;  %vm4962_vm8 = vcmp.ge.f32.partialorder %v4958_v52, 0.0  ;;  %v4966_v47 = vmul.f32 0.2, %v4958_v52 }
 0x548   : > { %v4973_v14 = vmul.f32 0.1, %v4969_v8  ;;  %v4972_v60 = vsel %vm4964_vm7, %v4960_v53, %v4968_v42 }
 0x549   : > { %v4983_v21 = vadd.f32 %v4979_v40, %v4975_v25  ;;  %v4976_v30 = vmul.f32 0.1, %v4972_v60  ;;  %v4970_v31 = vsel %vm4962_vm8, %v4958_v52, %v4966_v47 }
 0x54a   : > { %v4981_v5 = vadd.f32 %v4977_v26, %v4973_v14  ;;  %v4974_v59 = vmul.f32 0.1, %v4970_v31 }
 0x54b   : > { %4987 = vst [vmem:[%s9991_s22 + $0x20] sm:$0xff] %v4983_v21  ;;  %v4984_v29 = vadd.f32 %v4980_v63, %v4976_v30 }
 0x54c   : > { %4985 = vst [vmem:[%s9991_s22] sm:$0xff] %v4981_v5  ;;  %v4982_v62 = vadd.f32 %v4978_v1, %v4974_v59 }
 0x54d   : > { %4988 = vst [vmem:[%s9991_s22 + $0x30] sm:$0xff] %v4984_v29 }
 0x54e   : > { %4986 = vst [vmem:[%s9991_s22 + $0x10] sm:$0xff] %v4982_v62 }
 0x55a   : > { %v7696_v48 = vpop.f32.mrb[16].mxu1 }
 0x55b   : > { %v6098_v0 = vadd.f32 %v7696_v48, %v6089_v18  ;;  %v6053_v56 = vpop.f32.mrb[17].mxu1 }
 0x55c   : > { %v6096_v58 = vadd.f32 %v6079_v37, %v6053_v56  ;;  %v7697_v46 = vpop.f32.mrb[18].mxu1 }
 0x55d   : > { %vm6102_vm9 = vcmp.ge.f32.partialorder %v6098_v0, 0.0  ;;  %v6106_v2 = vmul.f32 0.2, %v6098_v0  ;;  %v6099_v33 = vadd.f32 %v7697_v46, %v6094_v49  ;;  %v6056_v27 = vpop.f32.mrb[19].mxu1 }
 0x55e   : > { %vm6100_vm10 = vcmp.ge.f32.partialorder %v6096_v58, 0.0  ;;  %v6104_v38 = vmul.f32 0.2, %v6096_v58  ;;  %v6097_v10 = vadd.f32 %v6084_v15, %v6056_v27 }
 0x55f   : > { %v6110_v16 = vsel %vm6102_vm9, %v6098_v0, %v6106_v2  ;;  %vm6103_vm11 = vcmp.ge.f32.partialorder %v6099_v33, 0.0  ;;  %v6107_v57 = vmul.f32 0.2, %v6099_v33 }
 0x560   : > { %v6114_v3 = vmul.f32 0.1, %v6110_v16  ;;  %v6108_v7 = vsel %vm6100_vm10, %v6096_v58, %v6104_v38  ;;  %vm6101_vm12 = vcmp.ge.f32.partialorder %v6097_v10, 0.0  ;;  %v6105_v51 = vmul.f32 0.2, %v6097_v10 }
 0x561   : > { %v6112_v9 = vmul.f32 0.1, %v6108_v7  ;;  %v6111_v54 = vsel %vm6103_vm11, %v6099_v33, %v6107_v57 }
 0x562   : > { %v6122_v4 = vadd.f32 %v6118_v19, %v6114_v3  ;;  %v6115_v11 = vmul.f32 0.1, %v6111_v54  ;;  %v6109_v43 = vsel %vm6101_vm12, %v6097_v10, %v6105_v51 }
 0x563   : > { %v6120_v13 = vadd.f32 %v6116_v20, %v6112_v9  ;;  %v6113_v17 = vmul.f32 0.1, %v6109_v43 }
 0x564   : > { %6126 = vst [vmem:[%s9991_s22 + $0x28] sm:$0xff] %v6122_v4  ;;  %v6123_v28 = vadd.f32 %v6119_v12, %v6115_v11 }
 0x565   : > { %6124 = vst [vmem:[%s9991_s22 + $0x8] sm:$0xff] %v6120_v13  ;;  %v6121_v41 = vadd.f32 %v6117_v35, %v6113_v17 }
 0x566   : > { %6127 = vst [vmem:[%s9991_s22 + $0x38] sm:$0xff] %v6123_v28 }
 0x567   : > { %6125 = vst [vmem:[%s9991_s22 + $0x18] sm:$0xff] %v6121_v41 }
 0x568 PF: > { %s18_s24 = sadd.s32 1, %s8252_s24  }
 0x569   : > { %p15_p4 = scmp.ge.s32.totalorder %s18_s24, 4  }
 0x56b   :  { %17 = sbr.rel (!%p15_p4) target bundleno = 1 (0x1), region = 117 }

</bundles_post_ra>
